<compile_context>
chip_gen: v7x
topology: tpu7x:2x2x1
jax: 0.10.0
libtpu: 0.0.40
codegen_flags: <defaults>
</compile_context>

<pallas_src>
import functools

import numpy as np

import jax
import jax.numpy as jnp
from jax.experimental import pallas as pl
from jax.experimental.pallas import tpu as pltpu


def _round_up(x, m):
    return (x + m - 1) // m * m


# ----------------------------------------------------------------------------
# Trace-time weight preparation (plain JAX / numpy, negligible cost)
# ----------------------------------------------------------------------------
def _toeplitz_weight(w, w_in, w_out, stride=2, pad=2):
    """Fold kw taps + stride + conv W zero-padding into a dense matmul weight.

    w : [Cout, Cin, K, K] (PyTorch conv layout).
    Returns [K * w_in * Cin, w_out * Cout] with
      out[kh*w_in*Cin + wi*Cin + ci, ow*Cout + co] = w[co, ci, kh, wi - stride*ow + pad]
    (zero when the tap index is outside [0, K)).
    """
    cout, cin, k, _ = w.shape
    sel = np.zeros((w_in, w_out, k), dtype=np.float32)
    for ow in range(w_out):
        for t in range(k):
            wi = stride * ow + t - pad
            if 0 <= wi < w_in:
                sel[wi, ow, t] = 1.0
    wt = jnp.transpose(w, (2, 3, 1, 0))                       # [kh, kw, cin, cout]
    big = jnp.einsum("hkic,wok->hwioc", wt, jnp.asarray(sel))  # [kh, wi, ci, ow, co]
    return big.reshape(k * w_in * cin, w_out * cout)


def _prepare_params(params, DIM, zdim, n_out_pad):
    C1, C2, C3 = DIM, 2 * DIM, 4 * DIM
    # conv1 consumes the wrapper-padded 32-wide input rows (keeps the per-kh
    # weight row blocks 16-sublane aligned for bf16; extra rows are zero).
    w1 = _toeplitz_weight(params["w1"], 32, 14).astype(jnp.bfloat16)   # [160, 14*C1]
    w2 = _toeplitz_weight(params["w2"], 14, 7).astype(jnp.bfloat16)    # [5*14*C1, 7*C2]
    w3 = _toeplitz_weight(params["w3"], 7, 4).astype(jnp.bfloat16)     # [5*7*C2, 4*C3]
    b1 = jnp.tile(params["b1"], 14).reshape(1, 14 * C1).astype(jnp.float32)
    b2 = jnp.tile(params["b2"], 7).reshape(1, 7 * C2).astype(jnp.float32)
    b3 = jnp.tile(params["b3"], 4).reshape(1, 4 * C3).astype(jnp.float32)
    # PyTorch Linear weight is [2*zdim, C3*4*4] over the NCHW flatten
    # (col = c*16 + h*4 + w); the kernel flattens (h, w, c), so permute rows.
    wl = params["wl"].reshape(2 * zdim, C3, 4, 4)
    wl = jnp.transpose(wl, (2, 3, 1, 0)).reshape(16 * C3, 2 * zdim)
    wl = jnp.pad(wl, ((0, 0), (0, n_out_pad - 2 * zdim))).astype(jnp.bfloat16)
    bl = jnp.pad(params["bl"], (0, n_out_pad - 2 * zdim)).reshape(1, n_out_pad)
    bl = bl.astype(jnp.float32)
    return w1, b1, w2, b2, w3, b3, wl, bl


# ----------------------------------------------------------------------------
# Fused encoder kernel
# ----------------------------------------------------------------------------
def _make_encoder_kernel(DIM, tile_b):
    C1, C2, C3 = DIM, 2 * DIM, 4 * DIM
    K1, K2, K3 = 32, 14 * C1, 7 * C2          # per-kh contraction widths
    N1, N2, N3 = 14 * C1, 7 * C2, 4 * C3      # per-layer output lane widths

    def conv_layer(read_row, ho, k_rows, w_ref, b_ref, n_lanes):
        """One conv layer for the whole tile: 5 matmuls with M = ho*tile_b."""
        acc = jnp.zeros((ho * tile_b, n_lanes), jnp.float32)
        for kh in range(5):
            slabs = [read_row(2 * o + kh) for o in range(ho)]   # each [tile_b, k_rows]
            lhs = jnp.concatenate(slabs, axis=0)                # [ho*tile_b, k_rows]
            rhs = w_ref[kh * k_rows:(kh + 1) * k_rows, :]       # [k_rows, n_lanes]
            acc = acc + jnp.dot(lhs, rhs, preferred_element_type=jnp.float32)
        return jnp.maximum(acc + b_ref[...], 0.0)               # bias + ReLU (f32)

    def padded_reader(act_ref, h_valid, k_rows):
        """Row reader in padded coords; H-pad rows become zero slabs."""
        def read(r_pad):
            r = r_pad - 2
            if 0 <= r < h_valid:
                return act_ref[r]
            return jnp.zeros((tile_b, k_rows), jnp.bfloat16)
        return read

    def kernel(x_ref, w1_ref, b1_ref, w2_ref, b2_ref, w3_ref, b3_ref,
               wl_ref, bl_ref, out_ref, a2_ref, a3_ref):
        # conv1: input is already H/W zero-padded and in [32, tile_b, 32] layout.
        y1 = conv_layer(lambda r: x_ref[r], 14, K1, w1_ref, b1_ref, N1)
        a2_ref[...] = y1.astype(jnp.bfloat16).reshape(14, tile_b, N1)

        # conv2: 14x14xC1 -> 7x7xC2
        y2 = conv_layer(padded_reader(a2_ref, 14, K2), 7, K2, w2_ref, b2_ref, N2)
        a3_ref[...] = y2.astype(jnp.bfloat16).reshape(7, tile_b, N2)

        # conv3: 7x7xC2 -> 4x4xC3
        y3 = conv_layer(padded_reader(a3_ref, 7, K3), 4, K3, w3_ref, b3_ref, N3)
        y3 = y3.astype(jnp.bfloat16).reshape(4, tile_b, N3)

        # Linear: concat the 4 output rows along lanes -> one [tile_b,16*C3] matmul.
        lhs = jnp.concatenate([y3[h] for h in range(4)], axis=-1)
        out_ref[...] = (jnp.dot(lhs, wl_ref[...], preferred_element_type=jnp.float32)
                        + bl_ref[...])

    return kernel


# ----------------------------------------------------------------------------
# Encoder forward (single fused pallas_call)
# ----------------------------------------------------------------------------
@functools.partial(jax.jit, static_argnames=("DIM", "zdim", "tile_b"))
def encoder_forward(params, x, DIM=16, zdim=32, tile_b=32):
    C1, C2, C3 = DIM, 2 * DIM, 4 * DIM
    n_out = 2 * zdim
    n_out_pad = _round_up(max(n_out, 128), 128)

    x = x.reshape(-1, 28, 28)                        # input.view(-1, 1, 28, 28)
    B = x.shape[0]
    # Keep >= 2 grid steps whenever the batch allows it (v7x: 2 TensorCores
    # share the single "parallel" axis); tile_b stays a multiple of 16.
    tile_b = min(tile_b, max(16, _round_up(B, 32) // 2))
    Bp = _round_up(B, tile_b)

    # H-pad 2+2, W-pad +4 (pure lane/sublane alignment; the conv's own W-pad is
    # folded into the Toeplitz weights), transpose to the kernel's [H, B, W]
    # layout and cast to bf16 so the kernel DMAs straight into conv1's layout.
    x = jnp.pad(x, ((0, Bp - B), (2, 2), (0, 4)))
    x = jnp.transpose(x.astype(jnp.bfloat16), (1, 0, 2))      # [32, Bp, 32]

    w1, b1, w2, b2, w3, b3, wl, bl = _prepare_params(params, DIM, zdim, n_out_pad)
    kernel = _make_encoder_kernel(DIM, tile_b)

    flops = 2 * Bp * (14 * 14 * 25 * 1 * C1 + 7 * 7 * 25 * C1 * C2
                      + 4 * 4 * 25 * C2 * C3 + 16 * C3 * n_out)
    bytes_accessed = (x.size * 2 + (w1.size + w2.size + w3.size + wl.size) * 2
                      + (b1.size + b2.size + b3.size + bl.size) * 4
                      + Bp * n_out_pad * 4)

    out = pl.pallas_call(
        kernel,
        out_shape=jax.ShapeDtypeStruct((Bp, n_out_pad), jnp.float32),
        grid=(Bp // tile_b,),
        in_specs=[
            pl.BlockSpec((32, tile_b, 32), lambda i: (0, i, 0)),
            pl.BlockSpec(w1.shape, lambda i: (0, 0)),
            pl.BlockSpec(b1.shape, lambda i: (0, 0)),
            pl.BlockSpec(w2.shape, lambda i: (0, 0)),
            pl.BlockSpec(b2.shape, lambda i: (0, 0)),
            pl.BlockSpec(w3.shape, lambda i: (0, 0)),
            pl.BlockSpec(b3.shape, lambda i: (0, 0)),
            pl.BlockSpec(wl.shape, lambda i: (0, 0)),
            pl.BlockSpec(bl.shape, lambda i: (0, 0)),
        ],
        out_specs=pl.BlockSpec((tile_b, n_out_pad), lambda i: (i, 0)),
        scratch_shapes=[
            pltpu.VMEM((14, tile_b, 14 * C1), jnp.bfloat16),   # conv1 output
            pltpu.VMEM((7, tile_b, 7 * C2), jnp.bfloat16),     # conv2 output
        ],
        compiler_params=pltpu.CompilerParams(
            dimension_semantics=("parallel",),
        ),
        cost_estimate=pl.CostEstimate(
            flops=int(flops), transcendentals=0, bytes_accessed=int(bytes_accessed)),
    )(x, w1, b1, w2, b2, w3, b3, wl, bl)

    return out[:B, :n_out]


# ----------------------------------------------------------------------------
# Parameters (PyTorch layouts) and a plain-JAX reference for the check
# ----------------------------------------------------------------------------
def make_encoder_params(key, DIM=16, zdim=32):
    ks = jax.random.split(key, 8)
    scale = 0.05
    return {
        "w1": scale * jax.random.normal(ks[0], (DIM, 1, 5, 5), jnp.float32),
        "b1": scale * jax.random.normal(ks[1], (DIM,), jnp.float32),
        "w2": scale * jax.random.normal(ks[2], (2 * DIM, DIM, 5, 5), jnp.float32),
        "b2": scale * jax.random.normal(ks[3], (2 * DIM,), jnp.float32),
        "w3": scale * jax.random.normal(ks[4], (4 * DIM, 2 * DIM, 5, 5), jnp.float32),
        "b3": scale * jax.random.normal(ks[5], (4 * DIM,), jnp.float32),
        # nn.Linear.weight layout: [out_features, in_features]
        "wl": scale * jax.random.normal(ks[6], (2 * zdim, 4 * 4 * 4 * DIM), jnp.float32),
        "bl": scale * jax.random.normal(ks[7], (2 * zdim,), jnp.float32),
    }


def encoder_reference(params, x, DIM=16):
    x = x.reshape(-1, 1, 28, 28).astype(jnp.float32)
    B = x.shape[0]

    def conv(h, w, b):
        y = jax.lax.conv_general_dilated(
            h, w, window_strides=(2, 2), padding=((2, 2), (2, 2)),
            dimension_numbers=("NCHW", "OIHW", "NCHW"))
        return jnp.maximum(y + b[None, :, None, None], 0.0)

    out = conv(x, params["w1"], params["b1"])
    out = conv(out, params["w2"], params["b2"])
    out = conv(out, params["w3"], params["b3"])
    out = out.reshape(B, 4 * 4 * 4 * DIM)
    out = out @ params["wl"].T + params["bl"]
    return out


if __name__ == "__main__":
    DIM, zdim, B = 16, 32, 64
    key = jax.random.PRNGKey(0)
    kparams, kx = jax.random.split(key)
    params = make_encoder_params(kparams, DIM=DIM, zdim=zdim)
    x = jax.random.normal(kx, (B, 1, 28, 28), jnp.float32)

    out = jax.block_until_ready(encoder_forward(params, x, DIM=DIM, zdim=zdim))
    assert out.shape == (B, 2 * zdim), out.shape

    ref = jax.block_until_ready(encoder_reference(params, x, DIM=DIM))
    rel_err = float(jnp.max(jnp.abs(out - ref)) / (jnp.max(jnp.abs(ref)) + 1e-6))
    assert rel_err < 5e-2, f"mismatch vs reference: rel_err={rel_err}"

    print("KERNEL_OK")
</pallas_src>

<mosaic_0001>
module attributes {stable_mosaic.version = 11 : i64} {
  func.func @kernel(%arg0: i32, %arg1: memref<32x32x32xbf16, #tpu.memory_space<vmem>>, %arg2: memref<160x224xbf16, #tpu.memory_space<vmem>>, %arg3: memref<1x224xf32, #tpu.memory_space<vmem>>, %arg4: memref<1120x224xbf16, #tpu.memory_space<vmem>>, %arg5: memref<1x224xf32, #tpu.memory_space<vmem>>, %arg6: memref<1120x256xbf16, #tpu.memory_space<vmem>>, %arg7: memref<1x256xf32, #tpu.memory_space<vmem>>, %arg8: memref<1024x128xbf16, #tpu.memory_space<vmem>>, %arg9: memref<1x128xf32, #tpu.memory_space<vmem>>, %arg10: memref<32x128xf32, #tpu.memory_space<vmem>>, %arg11: memref<14x32x224xbf16, #tpu.memory_space<vmem>>, %arg12: memref<7x32x224xbf16, #tpu.memory_space<vmem>>) attributes {dimension_semantics = [#tpu.dimension_semantics<parallel>], iteration_bounds = array<i64: 2>, scalar_prefetch = 0 : i64, scratch_operands = 2 : i64, tpu.core_type = #tpu.core_type<tc>, window_params = [{transform_indices = @transform_0, window_bounds = array<i64: 32, 32, 32>}, {pipeline_mode = #tpu.pipeline_mode<synchronous>, transform_indices = @transform_1, window_bounds = array<i64: 160, 224>}, {pipeline_mode = #tpu.pipeline_mode<synchronous>, transform_indices = @transform_2, window_bounds = array<i64: 1, 224>}, {pipeline_mode = #tpu.pipeline_mode<synchronous>, transform_indices = @transform_3, window_bounds = array<i64: 1120, 224>}, {pipeline_mode = #tpu.pipeline_mode<synchronous>, transform_indices = @transform_4, window_bounds = array<i64: 1, 224>}, {pipeline_mode = #tpu.pipeline_mode<synchronous>, transform_indices = @transform_5, window_bounds = array<i64: 1120, 256>}, {pipeline_mode = #tpu.pipeline_mode<synchronous>, transform_indices = @transform_6, window_bounds = array<i64: 1, 256>}, {pipeline_mode = #tpu.pipeline_mode<synchronous>, transform_indices = @transform_7, window_bounds = array<i64: 1024, 128>}, {pipeline_mode = #tpu.pipeline_mode<synchronous>, transform_indices = @transform_8, window_bounds = array<i64: 1, 128>}, {transform_indices = @transform_9, window_bounds = array<i64: 32, 128>}]} {
    %cst = arith.constant 0.000000e+00 : f32
    %0 = vector.broadcast %cst : f32 to vector<448x224xf32>
    %c0 = arith.constant 0 : index
    %c0_0 = arith.constant 0 : index
    %c0_1 = arith.constant 0 : index
    %1 = vector.load %arg1[%c0, %c0_0, %c0_1] : memref<32x32x32xbf16, #tpu.memory_space<vmem>>, vector<1x32x32xbf16>
    %2 = vector.shape_cast %1 : vector<1x32x32xbf16> to vector<32x32xbf16>
    %c2 = arith.constant 2 : index
    %c0_2 = arith.constant 0 : index
    %c0_3 = arith.constant 0 : index
    %3 = vector.load %arg1[%c2, %c0_2, %c0_3] : memref<32x32x32xbf16, #tpu.memory_space<vmem>>, vector<1x32x32xbf16>
    %4 = vector.shape_cast %3 : vector<1x32x32xbf16> to vector<32x32xbf16>
    %c4 = arith.constant 4 : index
    %c0_4 = arith.constant 0 : index
    %c0_5 = arith.constant 0 : index
    %5 = vector.load %arg1[%c4, %c0_4, %c0_5] : memref<32x32x32xbf16, #tpu.memory_space<vmem>>, vector<1x32x32xbf16>
    %6 = vector.shape_cast %5 : vector<1x32x32xbf16> to vector<32x32xbf16>
    %c6 = arith.constant 6 : index
    %c0_6 = arith.constant 0 : index
    %c0_7 = arith.constant 0 : index
    %7 = vector.load %arg1[%c6, %c0_6, %c0_7] : memref<32x32x32xbf16, #tpu.memory_space<vmem>>, vector<1x32x32xbf16>
    %8 = vector.shape_cast %7 : vector<1x32x32xbf16> to vector<32x32xbf16>
    %c8 = arith.constant 8 : index
    %c0_8 = arith.constant 0 : index
    %c0_9 = arith.constant 0 : index
    %9 = vector.load %arg1[%c8, %c0_8, %c0_9] : memref<32x32x32xbf16, #tpu.memory_space<vmem>>, vector<1x32x32xbf16>
    %10 = vector.shape_cast %9 : vector<1x32x32xbf16> to vector<32x32xbf16>
    %c10 = arith.constant 10 : index
    %c0_10 = arith.constant 0 : index
    %c0_11 = arith.constant 0 : index
    %11 = vector.load %arg1[%c10, %c0_10, %c0_11] : memref<32x32x32xbf16, #tpu.memory_space<vmem>>, vector<1x32x32xbf16>
    %12 = vector.shape_cast %11 : vector<1x32x32xbf16> to vector<32x32xbf16>
    %c12 = arith.constant 12 : index
    %c0_12 = arith.constant 0 : index
    %c0_13 = arith.constant 0 : index
    %13 = vector.load %arg1[%c12, %c0_12, %c0_13] : memref<32x32x32xbf16, #tpu.memory_space<vmem>>, vector<1x32x32xbf16>
    %14 = vector.shape_cast %13 : vector<1x32x32xbf16> to vector<32x32xbf16>
    %c14 = arith.constant 14 : index
    %c0_14 = arith.constant 0 : index
    %c0_15 = arith.constant 0 : index
    %15 = vector.load %arg1[%c14, %c0_14, %c0_15] : memref<32x32x32xbf16, #tpu.memory_space<vmem>>, vector<1x32x32xbf16>
    %16 = vector.shape_cast %15 : vector<1x32x32xbf16> to vector<32x32xbf16>
    %c16 = arith.constant 16 : index
    %c0_16 = arith.constant 0 : index
    %c0_17 = arith.constant 0 : index
    %17 = vector.load %arg1[%c16, %c0_16, %c0_17] : memref<32x32x32xbf16, #tpu.memory_space<vmem>>, vector<1x32x32xbf16>
    %18 = vector.shape_cast %17 : vector<1x32x32xbf16> to vector<32x32xbf16>
    %c18 = arith.constant 18 : index
    %c0_18 = arith.constant 0 : index
    %c0_19 = arith.constant 0 : index
    %19 = vector.load %arg1[%c18, %c0_18, %c0_19] : memref<32x32x32xbf16, #tpu.memory_space<vmem>>, vector<1x32x32xbf16>
    %20 = vector.shape_cast %19 : vector<1x32x32xbf16> to vector<32x32xbf16>
    %c20 = arith.constant 20 : index
    %c0_20 = arith.constant 0 : index
    %c0_21 = arith.constant 0 : index
    %21 = vector.load %arg1[%c20, %c0_20, %c0_21] : memref<32x32x32xbf16, #tpu.memory_space<vmem>>, vector<1x32x32xbf16>
    %22 = vector.shape_cast %21 : vector<1x32x32xbf16> to vector<32x32xbf16>
    %c22 = arith.constant 22 : index
    %c0_22 = arith.constant 0 : index
    %c0_23 = arith.constant 0 : index
    %23 = vector.load %arg1[%c22, %c0_22, %c0_23] : memref<32x32x32xbf16, #tpu.memory_space<vmem>>, vector<1x32x32xbf16>
    %24 = vector.shape_cast %23 : vector<1x32x32xbf16> to vector<32x32xbf16>
    %c24 = arith.constant 24 : index
    %c0_24 = arith.constant 0 : index
    %c0_25 = arith.constant 0 : index
    %25 = vector.load %arg1[%c24, %c0_24, %c0_25] : memref<32x32x32xbf16, #tpu.memory_space<vmem>>, vector<1x32x32xbf16>
    %26 = vector.shape_cast %25 : vector<1x32x32xbf16> to vector<32x32xbf16>
    %c26 = arith.constant 26 : index
    %c0_26 = arith.constant 0 : index
    %c0_27 = arith.constant 0 : index
    %27 = vector.load %arg1[%c26, %c0_26, %c0_27] : memref<32x32x32xbf16, #tpu.memory_space<vmem>>, vector<1x32x32xbf16>
    %28 = vector.shape_cast %27 : vector<1x32x32xbf16> to vector<32x32xbf16>
    %29 = tpu.concatenate %2, %4, %6, %8, %10, %12, %14, %16, %18, %20, %22, %24, %26, %28 in 0 : vector<32x32xbf16>, vector<32x32xbf16>, vector<32x32xbf16>, vector<32x32xbf16>, vector<32x32xbf16>, vector<32x32xbf16>, vector<32x32xbf16>, vector<32x32xbf16>, vector<32x32xbf16>, vector<32x32xbf16>, vector<32x32xbf16>, vector<32x32xbf16>, vector<32x32xbf16>, vector<32x32xbf16> -> vector<448x32xbf16>
    %c0_28 = arith.constant 0 : index
    %c0_29 = arith.constant 0 : index
    %30 = vector.load %arg2[%c0_28, %c0_29] : memref<160x224xbf16, #tpu.memory_space<vmem>>, vector<32x224xbf16>
    %cst_30 = arith.constant dense<0.000000e+00> : vector<448x224xf32>
    %31 = tpu.matmul %29, %30, %cst_30 {dimension_numbers = #tpu.dot_dimension_numbers<[1], [0], [0], [1], [0, 0, 1, 1], [], []>} : vector<448x32xbf16>, vector<32x224xbf16>, vector<448x224xf32> -> vector<448x224xf32>
    %32 = arith.addf %0, %31 : vector<448x224xf32>
    %c1 = arith.constant 1 : index
    %c0_31 = arith.constant 0 : index
    %c0_32 = arith.constant 0 : index
    %33 = vector.load %arg1[%c1, %c0_31, %c0_32] : memref<32x32x32xbf16, #tpu.memory_space<vmem>>, vector<1x32x32xbf16>
    %34 = vector.shape_cast %33 : vector<1x32x32xbf16> to vector<32x32xbf16>
    %c3 = arith.constant 3 : index
    %c0_33 = arith.constant 0 : index
    %c0_34 = arith.constant 0 : index
    %35 = vector.load %arg1[%c3, %c0_33, %c0_34] : memref<32x32x32xbf16, #tpu.memory_space<vmem>>, vector<1x32x32xbf16>
    %36 = vector.shape_cast %35 : vector<1x32x32xbf16> to vector<32x32xbf16>
    %c5 = arith.constant 5 : index
    %c0_35 = arith.constant 0 : index
    %c0_36 = arith.constant 0 : index
    %37 = vector.load %arg1[%c5, %c0_35, %c0_36] : memref<32x32x32xbf16, #tpu.memory_space<vmem>>, vector<1x32x32xbf16>
    %38 = vector.shape_cast %37 : vector<1x32x32xbf16> to vector<32x32xbf16>
    %c7 = arith.constant 7 : index
    %c0_37 = arith.constant 0 : index
    %c0_38 = arith.constant 0 : index
    %39 = vector.load %arg1[%c7, %c0_37, %c0_38] : memref<32x32x32xbf16, #tpu.memory_space<vmem>>, vector<1x32x32xbf16>
    %40 = vector.shape_cast %39 : vector<1x32x32xbf16> to vector<32x32xbf16>
    %c9 = arith.constant 9 : index
    %c0_39 = arith.constant 0 : index
    %c0_40 = arith.constant 0 : index
    %41 = vector.load %arg1[%c9, %c0_39, %c0_40] : memref<32x32x32xbf16, #tpu.memory_space<vmem>>, vector<1x32x32xbf16>
    %42 = vector.shape_cast %41 : vector<1x32x32xbf16> to vector<32x32xbf16>
    %c11 = arith.constant 11 : index
    %c0_41 = arith.constant 0 : index
    %c0_42 = arith.constant 0 : index
    %43 = vector.load %arg1[%c11, %c0_41, %c0_42] : memref<32x32x32xbf16, #tpu.memory_space<vmem>>, vector<1x32x32xbf16>
    %44 = vector.shape_cast %43 : vector<1x32x32xbf16> to vector<32x32xbf16>
    %c13 = arith.constant 13 : index
    %c0_43 = arith.constant 0 : index
    %c0_44 = arith.constant 0 : index
    %45 = vector.load %arg1[%c13, %c0_43, %c0_44] : memref<32x32x32xbf16, #tpu.memory_space<vmem>>, vector<1x32x32xbf16>
    %46 = vector.shape_cast %45 : vector<1x32x32xbf16> to vector<32x32xbf16>
    %c15 = arith.constant 15 : index
    %c0_45 = arith.constant 0 : index
    %c0_46 = arith.constant 0 : index
    %47 = vector.load %arg1[%c15, %c0_45, %c0_46] : memref<32x32x32xbf16, #tpu.memory_space<vmem>>, vector<1x32x32xbf16>
    %48 = vector.shape_cast %47 : vector<1x32x32xbf16> to vector<32x32xbf16>
    %c17 = arith.constant 17 : index
    %c0_47 = arith.constant 0 : index
    %c0_48 = arith.constant 0 : index
    %49 = vector.load %arg1[%c17, %c0_47, %c0_48] : memref<32x32x32xbf16, #tpu.memory_space<vmem>>, vector<1x32x32xbf16>
    %50 = vector.shape_cast %49 : vector<1x32x32xbf16> to vector<32x32xbf16>
    %c19 = arith.constant 19 : index
    %c0_49 = arith.constant 0 : index
    %c0_50 = arith.constant 0 : index
    %51 = vector.load %arg1[%c19, %c0_49, %c0_50] : memref<32x32x32xbf16, #tpu.memory_space<vmem>>, vector<1x32x32xbf16>
    %52 = vector.shape_cast %51 : vector<1x32x32xbf16> to vector<32x32xbf16>
    %c21 = arith.constant 21 : index
    %c0_51 = arith.constant 0 : index
    %c0_52 = arith.constant 0 : index
    %53 = vector.load %arg1[%c21, %c0_51, %c0_52] : memref<32x32x32xbf16, #tpu.memory_space<vmem>>, vector<1x32x32xbf16>
    %54 = vector.shape_cast %53 : vector<1x32x32xbf16> to vector<32x32xbf16>
    %c23 = arith.constant 23 : index
    %c0_53 = arith.constant 0 : index
    %c0_54 = arith.constant 0 : index
    %55 = vector.load %arg1[%c23, %c0_53, %c0_54] : memref<32x32x32xbf16, #tpu.memory_space<vmem>>, vector<1x32x32xbf16>
    %56 = vector.shape_cast %55 : vector<1x32x32xbf16> to vector<32x32xbf16>
    %c25 = arith.constant 25 : index
    %c0_55 = arith.constant 0 : index
    %c0_56 = arith.constant 0 : index
    %57 = vector.load %arg1[%c25, %c0_55, %c0_56] : memref<32x32x32xbf16, #tpu.memory_space<vmem>>, vector<1x32x32xbf16>
    %58 = vector.shape_cast %57 : vector<1x32x32xbf16> to vector<32x32xbf16>
    %c27 = arith.constant 27 : index
    %c0_57 = arith.constant 0 : index
    %c0_58 = arith.constant 0 : index
    %59 = vector.load %arg1[%c27, %c0_57, %c0_58] : memref<32x32x32xbf16, #tpu.memory_space<vmem>>, vector<1x32x32xbf16>
    %60 = vector.shape_cast %59 : vector<1x32x32xbf16> to vector<32x32xbf16>
    %61 = tpu.concatenate %34, %36, %38, %40, %42, %44, %46, %48, %50, %52, %54, %56, %58, %60 in 0 : vector<32x32xbf16>, vector<32x32xbf16>, vector<32x32xbf16>, vector<32x32xbf16>, vector<32x32xbf16>, vector<32x32xbf16>, vector<32x32xbf16>, vector<32x32xbf16>, vector<32x32xbf16>, vector<32x32xbf16>, vector<32x32xbf16>, vector<32x32xbf16>, vector<32x32xbf16>, vector<32x32xbf16> -> vector<448x32xbf16>
    %c32 = arith.constant 32 : index
    %c0_59 = arith.constant 0 : index
    %62 = vector.load %arg2[%c32, %c0_59] : memref<160x224xbf16, #tpu.memory_space<vmem>>, vector<32x224xbf16>
    %cst_60 = arith.constant dense<0.000000e+00> : vector<448x224xf32>
    %63 = tpu.matmul %61, %62, %cst_60 {dimension_numbers = #tpu.dot_dimension_numbers<[1], [0], [0], [1], [0, 0, 1, 1], [], []>} : vector<448x32xbf16>, vector<32x224xbf16>, vector<448x224xf32> -> vector<448x224xf32>
    %64 = arith.addf %32, %63 : vector<448x224xf32>
    %c2_61 = arith.constant 2 : index
    %c0_62 = arith.constant 0 : index
    %c0_63 = arith.constant 0 : index
    %65 = vector.load %arg1[%c2_61, %c0_62, %c0_63] : memref<32x32x32xbf16, #tpu.memory_space<vmem>>, vector<1x32x32xbf16>
    %66 = vector.shape_cast %65 : vector<1x32x32xbf16> to vector<32x32xbf16>
    %c4_64 = arith.constant 4 : index
    %c0_65 = arith.constant 0 : index
    %c0_66 = arith.constant 0 : index
    %67 = vector.load %arg1[%c4_64, %c0_65, %c0_66] : memref<32x32x32xbf16, #tpu.memory_space<vmem>>, vector<1x32x32xbf16>
    %68 = vector.shape_cast %67 : vector<1x32x32xbf16> to vector<32x32xbf16>
    %c6_67 = arith.constant 6 : index
    %c0_68 = arith.constant 0 : index
    %c0_69 = arith.constant 0 : index
    %69 = vector.load %arg1[%c6_67, %c0_68, %c0_69] : memref<32x32x32xbf16, #tpu.memory_space<vmem>>, vector<1x32x32xbf16>
    %70 = vector.shape_cast %69 : vector<1x32x32xbf16> to vector<32x32xbf16>
    %c8_70 = arith.constant 8 : index
    %c0_71 = arith.constant 0 : index
    %c0_72 = arith.constant 0 : index
    %71 = vector.load %arg1[%c8_70, %c0_71, %c0_72] : memref<32x32x32xbf16, #tpu.memory_space<vmem>>, vector<1x32x32xbf16>
    %72 = vector.shape_cast %71 : vector<1x32x32xbf16> to vector<32x32xbf16>
    %c10_73 = arith.constant 10 : index
    %c0_74 = arith.constant 0 : index
    %c0_75 = arith.constant 0 : index
    %73 = vector.load %arg1[%c10_73, %c0_74, %c0_75] : memref<32x32x32xbf16, #tpu.memory_space<vmem>>, vector<1x32x32xbf16>
    %74 = vector.shape_cast %73 : vector<1x32x32xbf16> to vector<32x32xbf16>
    %c12_76 = arith.constant 12 : index
    %c0_77 = arith.constant 0 : index
    %c0_78 = arith.constant 0 : index
    %75 = vector.load %arg1[%c12_76, %c0_77, %c0_78] : memref<32x32x32xbf16, #tpu.memory_space<vmem>>, vector<1x32x32xbf16>
    %76 = vector.shape_cast %75 : vector<1x32x32xbf16> to vector<32x32xbf16>
    %c14_79 = arith.constant 14 : index
    %c0_80 = arith.constant 0 : index
    %c0_81 = arith.constant 0 : index
    %77 = vector.load %arg1[%c14_79, %c0_80, %c0_81] : memref<32x32x32xbf16, #tpu.memory_space<vmem>>, vector<1x32x32xbf16>
    %78 = vector.shape_cast %77 : vector<1x32x32xbf16> to vector<32x32xbf16>
    %c16_82 = arith.constant 16 : index
    %c0_83 = arith.constant 0 : index
    %c0_84 = arith.constant 0 : index
    %79 = vector.load %arg1[%c16_82, %c0_83, %c0_84] : memref<32x32x32xbf16, #tpu.memory_space<vmem>>, vector<1x32x32xbf16>
    %80 = vector.shape_cast %79 : vector<1x32x32xbf16> to vector<32x32xbf16>
    %c18_85 = arith.constant 18 : index
    %c0_86 = arith.constant 0 : index
    %c0_87 = arith.constant 0 : index
    %81 = vector.load %arg1[%c18_85, %c0_86, %c0_87] : memref<32x32x32xbf16, #tpu.memory_space<vmem>>, vector<1x32x32xbf16>
    %82 = vector.shape_cast %81 : vector<1x32x32xbf16> to vector<32x32xbf16>
    %c20_88 = arith.constant 20 : index
    %c0_89 = arith.constant 0 : index
    %c0_90 = arith.constant 0 : index
    %83 = vector.load %arg1[%c20_88, %c0_89, %c0_90] : memref<32x32x32xbf16, #tpu.memory_space<vmem>>, vector<1x32x32xbf16>
    %84 = vector.shape_cast %83 : vector<1x32x32xbf16> to vector<32x32xbf16>
    %c22_91 = arith.constant 22 : index
    %c0_92 = arith.constant 0 : index
    %c0_93 = arith.constant 0 : index
    %85 = vector.load %arg1[%c22_91, %c0_92, %c0_93] : memref<32x32x32xbf16, #tpu.memory_space<vmem>>, vector<1x32x32xbf16>
    %86 = vector.shape_cast %85 : vector<1x32x32xbf16> to vector<32x32xbf16>
    %c24_94 = arith.constant 24 : index
    %c0_95 = arith.constant 0 : index
    %c0_96 = arith.constant 0 : index
    %87 = vector.load %arg1[%c24_94, %c0_95, %c0_96] : memref<32x32x32xbf16, #tpu.memory_space<vmem>>, vector<1x32x32xbf16>
    %88 = vector.shape_cast %87 : vector<1x32x32xbf16> to vector<32x32xbf16>
    %c26_97 = arith.constant 26 : index
    %c0_98 = arith.constant 0 : index
    %c0_99 = arith.constant 0 : index
    %89 = vector.load %arg1[%c26_97, %c0_98, %c0_99] : memref<32x32x32xbf16, #tpu.memory_space<vmem>>, vector<1x32x32xbf16>
    %90 = vector.shape_cast %89 : vector<1x32x32xbf16> to vector<32x32xbf16>
    %c28 = arith.constant 28 : index
    %c0_100 = arith.constant 0 : index
    %c0_101 = arith.constant 0 : index
    %91 = vector.load %arg1[%c28, %c0_100, %c0_101] : memref<32x32x32xbf16, #tpu.memory_space<vmem>>, vector<1x32x32xbf16>
    %92 = vector.shape_cast %91 : vector<1x32x32xbf16> to vector<32x32xbf16>
    %93 = tpu.concatenate %66, %68, %70, %72, %74, %76, %78, %80, %82, %84, %86, %88, %90, %92 in 0 : vector<32x32xbf16>, vector<32x32xbf16>, vector<32x32xbf16>, vector<32x32xbf16>, vector<32x32xbf16>, vector<32x32xbf16>, vector<32x32xbf16>, vector<32x32xbf16>, vector<32x32xbf16>, vector<32x32xbf16>, vector<32x32xbf16>, vector<32x32xbf16>, vector<32x32xbf16>, vector<32x32xbf16> -> vector<448x32xbf16>
    %c64 = arith.constant 64 : index
    %c0_102 = arith.constant 0 : index
    %94 = vector.load %arg2[%c64, %c0_102] : memref<160x224xbf16, #tpu.memory_space<vmem>>, vector<32x224xbf16>
    %cst_103 = arith.constant dense<0.000000e+00> : vector<448x224xf32>
    %95 = tpu.matmul %93, %94, %cst_103 {dimension_numbers = #tpu.dot_dimension_numbers<[1], [0], [0], [1], [0, 0, 1, 1], [], []>} : vector<448x32xbf16>, vector<32x224xbf16>, vector<448x224xf32> -> vector<448x224xf32>
    %96 = arith.addf %64, %95 : vector<448x224xf32>
    %c3_104 = arith.constant 3 : index
    %c0_105 = arith.constant 0 : index
    %c0_106 = arith.constant 0 : index
    %97 = vector.load %arg1[%c3_104, %c0_105, %c0_106] : memref<32x32x32xbf16, #tpu.memory_space<vmem>>, vector<1x32x32xbf16>
    %98 = vector.shape_cast %97 : vector<1x32x32xbf16> to vector<32x32xbf16>
    %c5_107 = arith.constant 5 : index
    %c0_108 = arith.constant 0 : index
    %c0_109 = arith.constant 0 : index
    %99 = vector.load %arg1[%c5_107, %c0_108, %c0_109] : memref<32x32x32xbf16, #tpu.memory_space<vmem>>, vector<1x32x32xbf16>
    %100 = vector.shape_cast %99 : vector<1x32x32xbf16> to vector<32x32xbf16>
    %c7_110 = arith.constant 7 : index
    %c0_111 = arith.constant 0 : index
    %c0_112 = arith.constant 0 : index
    %101 = vector.load %arg1[%c7_110, %c0_111, %c0_112] : memref<32x32x32xbf16, #tpu.memory_space<vmem>>, vector<1x32x32xbf16>
    %102 = vector.shape_cast %101 : vector<1x32x32xbf16> to vector<32x32xbf16>
    %c9_113 = arith.constant 9 : index
    %c0_114 = arith.constant 0 : index
    %c0_115 = arith.constant 0 : index
    %103 = vector.load %arg1[%c9_113, %c0_114, %c0_115] : memref<32x32x32xbf16, #tpu.memory_space<vmem>>, vector<1x32x32xbf16>
    %104 = vector.shape_cast %103 : vector<1x32x32xbf16> to vector<32x32xbf16>
    %c11_116 = arith.constant 11 : index
    %c0_117 = arith.constant 0 : index
    %c0_118 = arith.constant 0 : index
    %105 = vector.load %arg1[%c11_116, %c0_117, %c0_118] : memref<32x32x32xbf16, #tpu.memory_space<vmem>>, vector<1x32x32xbf16>
    %106 = vector.shape_cast %105 : vector<1x32x32xbf16> to vector<32x32xbf16>
    %c13_119 = arith.constant 13 : index
    %c0_120 = arith.constant 0 : index
    %c0_121 = arith.constant 0 : index
    %107 = vector.load %arg1[%c13_119, %c0_120, %c0_121] : memref<32x32x32xbf16, #tpu.memory_space<vmem>>, vector<1x32x32xbf16>
    %108 = vector.shape_cast %107 : vector<1x32x32xbf16> to vector<32x32xbf16>
    %c15_122 = arith.constant 15 : index
    %c0_123 = arith.constant 0 : index
    %c0_124 = arith.constant 0 : index
    %109 = vector.load %arg1[%c15_122, %c0_123, %c0_124] : memref<32x32x32xbf16, #tpu.memory_space<vmem>>, vector<1x32x32xbf16>
    %110 = vector.shape_cast %109 : vector<1x32x32xbf16> to vector<32x32xbf16>
    %c17_125 = arith.constant 17 : index
    %c0_126 = arith.constant 0 : index
    %c0_127 = arith.constant 0 : index
    %111 = vector.load %arg1[%c17_125, %c0_126, %c0_127] : memref<32x32x32xbf16, #tpu.memory_space<vmem>>, vector<1x32x32xbf16>
    %112 = vector.shape_cast %111 : vector<1x32x32xbf16> to vector<32x32xbf16>
    %c19_128 = arith.constant 19 : index
    %c0_129 = arith.constant 0 : index
    %c0_130 = arith.constant 0 : index
    %113 = vector.load %arg1[%c19_128, %c0_129, %c0_130] : memref<32x32x32xbf16, #tpu.memory_space<vmem>>, vector<1x32x32xbf16>
    %114 = vector.shape_cast %113 : vector<1x32x32xbf16> to vector<32x32xbf16>
    %c21_131 = arith.constant 21 : index
    %c0_132 = arith.constant 0 : index
    %c0_133 = arith.constant 0 : index
    %115 = vector.load %arg1[%c21_131, %c0_132, %c0_133] : memref<32x32x32xbf16, #tpu.memory_space<vmem>>, vector<1x32x32xbf16>
    %116 = vector.shape_cast %115 : vector<1x32x32xbf16> to vector<32x32xbf16>
    %c23_134 = arith.constant 23 : index
    %c0_135 = arith.constant 0 : index
    %c0_136 = arith.constant 0 : index
    %117 = vector.load %arg1[%c23_134, %c0_135, %c0_136] : memref<32x32x32xbf16, #tpu.memory_space<vmem>>, vector<1x32x32xbf16>
    %118 = vector.shape_cast %117 : vector<1x32x32xbf16> to vector<32x32xbf16>
    %c25_137 = arith.constant 25 : index
    %c0_138 = arith.constant 0 : index
    %c0_139 = arith.constant 0 : index
    %119 = vector.load %arg1[%c25_137, %c0_138, %c0_139] : memref<32x32x32xbf16, #tpu.memory_space<vmem>>, vector<1x32x32xbf16>
    %120 = vector.shape_cast %119 : vector<1x32x32xbf16> to vector<32x32xbf16>
    %c27_140 = arith.constant 27 : index
    %c0_141 = arith.constant 0 : index
    %c0_142 = arith.constant 0 : index
    %121 = vector.load %arg1[%c27_140, %c0_141, %c0_142] : memref<32x32x32xbf16, #tpu.memory_space<vmem>>, vector<1x32x32xbf16>
    %122 = vector.shape_cast %121 : vector<1x32x32xbf16> to vector<32x32xbf16>
    %c29 = arith.constant 29 : index
    %c0_143 = arith.constant 0 : index
    %c0_144 = arith.constant 0 : index
    %123 = vector.load %arg1[%c29, %c0_143, %c0_144] : memref<32x32x32xbf16, #tpu.memory_space<vmem>>, vector<1x32x32xbf16>
    %124 = vector.shape_cast %123 : vector<1x32x32xbf16> to vector<32x32xbf16>
    %125 = tpu.concatenate %98, %100, %102, %104, %106, %108, %110, %112, %114, %116, %118, %120, %122, %124 in 0 : vector<32x32xbf16>, vector<32x32xbf16>, vector<32x32xbf16>, vector<32x32xbf16>, vector<32x32xbf16>, vector<32x32xbf16>, vector<32x32xbf16>, vector<32x32xbf16>, vector<32x32xbf16>, vector<32x32xbf16>, vector<32x32xbf16>, vector<32x32xbf16>, vector<32x32xbf16>, vector<32x32xbf16> -> vector<448x32xbf16>
    %c96 = arith.constant 96 : index
    %c0_145 = arith.constant 0 : index
    %126 = vector.load %arg2[%c96, %c0_145] : memref<160x224xbf16, #tpu.memory_space<vmem>>, vector<32x224xbf16>
    %cst_146 = arith.constant dense<0.000000e+00> : vector<448x224xf32>
    %127 = tpu.matmul %125, %126, %cst_146 {dimension_numbers = #tpu.dot_dimension_numbers<[1], [0], [0], [1], [0, 0, 1, 1], [], []>} : vector<448x32xbf16>, vector<32x224xbf16>, vector<448x224xf32> -> vector<448x224xf32>
    %128 = arith.addf %96, %127 : vector<448x224xf32>
    %c4_147 = arith.constant 4 : index
    %c0_148 = arith.constant 0 : index
    %c0_149 = arith.constant 0 : index
    %129 = vector.load %arg1[%c4_147, %c0_148, %c0_149] : memref<32x32x32xbf16, #tpu.memory_space<vmem>>, vector<1x32x32xbf16>
    %130 = vector.shape_cast %129 : vector<1x32x32xbf16> to vector<32x32xbf16>
    %c6_150 = arith.constant 6 : index
    %c0_151 = arith.constant 0 : index
    %c0_152 = arith.constant 0 : index
    %131 = vector.load %arg1[%c6_150, %c0_151, %c0_152] : memref<32x32x32xbf16, #tpu.memory_space<vmem>>, vector<1x32x32xbf16>
    %132 = vector.shape_cast %131 : vector<1x32x32xbf16> to vector<32x32xbf16>
    %c8_153 = arith.constant 8 : index
    %c0_154 = arith.constant 0 : index
    %c0_155 = arith.constant 0 : index
    %133 = vector.load %arg1[%c8_153, %c0_154, %c0_155] : memref<32x32x32xbf16, #tpu.memory_space<vmem>>, vector<1x32x32xbf16>
    %134 = vector.shape_cast %133 : vector<1x32x32xbf16> to vector<32x32xbf16>
    %c10_156 = arith.constant 10 : index
    %c0_157 = arith.constant 0 : index
    %c0_158 = arith.constant 0 : index
    %135 = vector.load %arg1[%c10_156, %c0_157, %c0_158] : memref<32x32x32xbf16, #tpu.memory_space<vmem>>, vector<1x32x32xbf16>
    %136 = vector.shape_cast %135 : vector<1x32x32xbf16> to vector<32x32xbf16>
    %c12_159 = arith.constant 12 : index
    %c0_160 = arith.constant 0 : index
    %c0_161 = arith.constant 0 : index
    %137 = vector.load %arg1[%c12_159, %c0_160, %c0_161] : memref<32x32x32xbf16, #tpu.memory_space<vmem>>, vector<1x32x32xbf16>
    %138 = vector.shape_cast %137 : vector<1x32x32xbf16> to vector<32x32xbf16>
    %c14_162 = arith.constant 14 : index
    %c0_163 = arith.constant 0 : index
    %c0_164 = arith.constant 0 : index
    %139 = vector.load %arg1[%c14_162, %c0_163, %c0_164] : memref<32x32x32xbf16, #tpu.memory_space<vmem>>, vector<1x32x32xbf16>
    %140 = vector.shape_cast %139 : vector<1x32x32xbf16> to vector<32x32xbf16>
    %c16_165 = arith.constant 16 : index
    %c0_166 = arith.constant 0 : index
    %c0_167 = arith.constant 0 : index
    %141 = vector.load %arg1[%c16_165, %c0_166, %c0_167] : memref<32x32x32xbf16, #tpu.memory_space<vmem>>, vector<1x32x32xbf16>
    %142 = vector.shape_cast %141 : vector<1x32x32xbf16> to vector<32x32xbf16>
    %c18_168 = arith.constant 18 : index
    %c0_169 = arith.constant 0 : index
    %c0_170 = arith.constant 0 : index
    %143 = vector.load %arg1[%c18_168, %c0_169, %c0_170] : memref<32x32x32xbf16, #tpu.memory_space<vmem>>, vector<1x32x32xbf16>
    %144 = vector.shape_cast %143 : vector<1x32x32xbf16> to vector<32x32xbf16>
    %c20_171 = arith.constant 20 : index
    %c0_172 = arith.constant 0 : index
    %c0_173 = arith.constant 0 : index
    %145 = vector.load %arg1[%c20_171, %c0_172, %c0_173] : memref<32x32x32xbf16, #tpu.memory_space<vmem>>, vector<1x32x32xbf16>
    %146 = vector.shape_cast %145 : vector<1x32x32xbf16> to vector<32x32xbf16>
    %c22_174 = arith.constant 22 : index
    %c0_175 = arith.constant 0 : index
    %c0_176 = arith.constant 0 : index
    %147 = vector.load %arg1[%c22_174, %c0_175, %c0_176] : memref<32x32x32xbf16, #tpu.memory_space<vmem>>, vector<1x32x32xbf16>
    %148 = vector.shape_cast %147 : vector<1x32x32xbf16> to vector<32x32xbf16>
    %c24_177 = arith.constant 24 : index
    %c0_178 = arith.constant 0 : index
    %c0_179 = arith.constant 0 : index
    %149 = vector.load %arg1[%c24_177, %c0_178, %c0_179] : memref<32x32x32xbf16, #tpu.memory_space<vmem>>, vector<1x32x32xbf16>
    %150 = vector.shape_cast %149 : vector<1x32x32xbf16> to vector<32x32xbf16>
    %c26_180 = arith.constant 26 : index
    %c0_181 = arith.constant 0 : index
    %c0_182 = arith.constant 0 : index
    %151 = vector.load %arg1[%c26_180, %c0_181, %c0_182] : memref<32x32x32xbf16, #tpu.memory_space<vmem>>, vector<1x32x32xbf16>
    %152 = vector.shape_cast %151 : vector<1x32x32xbf16> to vector<32x32xbf16>
    %c28_183 = arith.constant 28 : index
    %c0_184 = arith.constant 0 : index
    %c0_185 = arith.constant 0 : index
    %153 = vector.load %arg1[%c28_183, %c0_184, %c0_185] : memref<32x32x32xbf16, #tpu.memory_space<vmem>>, vector<1x32x32xbf16>
    %154 = vector.shape_cast %153 : vector<1x32x32xbf16> to vector<32x32xbf16>
    %c30 = arith.constant 30 : index
    %c0_186 = arith.constant 0 : index
    %c0_187 = arith.constant 0 : index
    %155 = vector.load %arg1[%c30, %c0_186, %c0_187] : memref<32x32x32xbf16, #tpu.memory_space<vmem>>, vector<1x32x32xbf16>
    %156 = vector.shape_cast %155 : vector<1x32x32xbf16> to vector<32x32xbf16>
    %157 = tpu.concatenate %130, %132, %134, %136, %138, %140, %142, %144, %146, %148, %150, %152, %154, %156 in 0 : vector<32x32xbf16>, vector<32x32xbf16>, vector<32x32xbf16>, vector<32x32xbf16>, vector<32x32xbf16>, vector<32x32xbf16>, vector<32x32xbf16>, vector<32x32xbf16>, vector<32x32xbf16>, vector<32x32xbf16>, vector<32x32xbf16>, vector<32x32xbf16>, vector<32x32xbf16>, vector<32x32xbf16> -> vector<448x32xbf16>
    %c128 = arith.constant 128 : index
    %c0_188 = arith.constant 0 : index
    %158 = vector.load %arg2[%c128, %c0_188] : memref<160x224xbf16, #tpu.memory_space<vmem>>, vector<32x224xbf16>
    %cst_189 = arith.constant dense<0.000000e+00> : vector<448x224xf32>
    %159 = tpu.matmul %157, %158, %cst_189 {dimension_numbers = #tpu.dot_dimension_numbers<[1], [0], [0], [1], [0, 0, 1, 1], [], []>} : vector<448x32xbf16>, vector<32x224xbf16>, vector<448x224xf32> -> vector<448x224xf32>
    %160 = arith.addf %128, %159 : vector<448x224xf32>
    %c0_190 = arith.constant 0 : index
    %c0_191 = arith.constant 0 : index
    %161 = vector.load %arg3[%c0_190, %c0_191] : memref<1x224xf32, #tpu.memory_space<vmem>>, vector<1x224xf32>
    %162 = vector.broadcast %161 : vector<1x224xf32> to vector<448x224xf32>
    %163 = arith.addf %160, %162 : vector<448x224xf32>
    %cst_192 = arith.constant 0.000000e+00 : f32
    %164 = vector.broadcast %cst_192 : f32 to vector<448x224xf32>
    %165 = arith.maximumf %163, %164 : vector<448x224xf32>
    %166 = arith.truncf %165 : vector<448x224xf32> to vector<448x224xbf16>
    %167 = vector.shape_cast %166 : vector<448x224xbf16> to vector<14x32x224xbf16>
    %c0_193 = arith.constant 0 : index
    %c0_194 = arith.constant 0 : index
    %c0_195 = arith.constant 0 : index
    %168 = vector.load %arg11[%c0_193, %c0_194, %c0_195] : memref<14x32x224xbf16, #tpu.memory_space<vmem>>, vector<14x32x224xbf16>
    tpu.vector_store %arg11[%c0_193, %c0_194, %c0_195], %167 {strides = array<i32>} : memref<14x32x224xbf16, #tpu.memory_space<vmem>>, vector<14x32x224xbf16>,
    %cst_196 = arith.constant 0.000000e+00 : f32
    %169 = vector.broadcast %cst_196 : f32 to vector<224x224xf32>
    %cst_197 = arith.constant 0.000000e+00 : bf16
    %170 = vector.broadcast %cst_197 : bf16 to vector<32x224xbf16>
    %c0_198 = arith.constant 0 : index
    %c0_199 = arith.constant 0 : index
    %c0_200 = arith.constant 0 : index
    %171 = vector.load %arg11[%c0_198, %c0_199, %c0_200] : memref<14x32x224xbf16, #tpu.memory_space<vmem>>, vector<1x32x224xbf16>
    %172 = vector.shape_cast %171 : vector<1x32x224xbf16> to vector<32x224xbf16>
    %c2_201 = arith.constant 2 : index
    %c0_202 = arith.constant 0 : index
    %c0_203 = arith.constant 0 : index
    %173 = vector.load %arg11[%c2_201, %c0_202, %c0_203] : memref<14x32x224xbf16, #tpu.memory_space<vmem>>, vector<1x32x224xbf16>
    %174 = vector.shape_cast %173 : vector<1x32x224xbf16> to vector<32x224xbf16>
    %c4_204 = arith.constant 4 : index
    %c0_205 = arith.constant 0 : index
    %c0_206 = arith.constant 0 : index
    %175 = vector.load %arg11[%c4_204, %c0_205, %c0_206] : memref<14x32x224xbf16, #tpu.memory_space<vmem>>, vector<1x32x224xbf16>
    %176 = vector.shape_cast %175 : vector<1x32x224xbf16> to vector<32x224xbf16>
    %c6_207 = arith.constant 6 : index
    %c0_208 = arith.constant 0 : index
    %c0_209 = arith.constant 0 : index
    %177 = vector.load %arg11[%c6_207, %c0_208, %c0_209] : memref<14x32x224xbf16, #tpu.memory_space<vmem>>, vector<1x32x224xbf16>
    %178 = vector.shape_cast %177 : vector<1x32x224xbf16> to vector<32x224xbf16>
    %c8_210 = arith.constant 8 : index
    %c0_211 = arith.constant 0 : index
    %c0_212 = arith.constant 0 : index
    %179 = vector.load %arg11[%c8_210, %c0_211, %c0_212] : memref<14x32x224xbf16, #tpu.memory_space<vmem>>, vector<1x32x224xbf16>
    %180 = vector.shape_cast %179 : vector<1x32x224xbf16> to vector<32x224xbf16>
    %c10_213 = arith.constant 10 : index
    %c0_214 = arith.constant 0 : index
    %c0_215 = arith.constant 0 : index
    %181 = vector.load %arg11[%c10_213, %c0_214, %c0_215] : memref<14x32x224xbf16, #tpu.memory_space<vmem>>, vector<1x32x224xbf16>
    %182 = vector.shape_cast %181 : vector<1x32x224xbf16> to vector<32x224xbf16>
    %183 = tpu.concatenate %170, %172, %174, %176, %178, %180, %182 in 0 : vector<32x224xbf16>, vector<32x224xbf16>, vector<32x224xbf16>, vector<32x224xbf16>, vector<32x224xbf16>, vector<32x224xbf16>, vector<32x224xbf16> -> vector<224x224xbf16>
    %c0_216 = arith.constant 0 : index
    %c0_217 = arith.constant 0 : index
    %184 = vector.load %arg4[%c0_216, %c0_217] : memref<1120x224xbf16, #tpu.memory_space<vmem>>, vector<224x224xbf16>
    %cst_218 = arith.constant dense<0.000000e+00> : vector<224x224xf32>
    %185 = tpu.matmul %183, %184, %cst_218 {dimension_numbers = #tpu.dot_dimension_numbers<[1], [0], [0], [1], [0, 0, 1, 1], [], []>} : vector<224x224xbf16>, vector<224x224xbf16>, vector<224x224xf32> -> vector<224x224xf32>
    %186 = arith.addf %169, %185 : vector<224x224xf32>
    %cst_219 = arith.constant 0.000000e+00 : bf16
    %187 = vector.broadcast %cst_219 : bf16 to vector<32x224xbf16>
    %c1_220 = arith.constant 1 : index
    %c0_221 = arith.constant 0 : index
    %c0_222 = arith.constant 0 : index
    %188 = vector.load %arg11[%c1_220, %c0_221, %c0_222] : memref<14x32x224xbf16, #tpu.memory_space<vmem>>, vector<1x32x224xbf16>
    %189 = vector.shape_cast %188 : vector<1x32x224xbf16> to vector<32x224xbf16>
    %c3_223 = arith.constant 3 : index
    %c0_224 = arith.constant 0 : index
    %c0_225 = arith.constant 0 : index
    %190 = vector.load %arg11[%c3_223, %c0_224, %c0_225] : memref<14x32x224xbf16, #tpu.memory_space<vmem>>, vector<1x32x224xbf16>
    %191 = vector.shape_cast %190 : vector<1x32x224xbf16> to vector<32x224xbf16>
    %c5_226 = arith.constant 5 : index
    %c0_227 = arith.constant 0 : index
    %c0_228 = arith.constant 0 : index
    %192 = vector.load %arg11[%c5_226, %c0_227, %c0_228] : memref<14x32x224xbf16, #tpu.memory_space<vmem>>, vector<1x32x224xbf16>
    %193 = vector.shape_cast %192 : vector<1x32x224xbf16> to vector<32x224xbf16>
    %c7_229 = arith.constant 7 : index
    %c0_230 = arith.constant 0 : index
    %c0_231 = arith.constant 0 : index
    %194 = vector.load %arg11[%c7_229, %c0_230, %c0_231] : memref<14x32x224xbf16, #tpu.memory_space<vmem>>, vector<1x32x224xbf16>
    %195 = vector.shape_cast %194 : vector<1x32x224xbf16> to vector<32x224xbf16>
    %c9_232 = arith.constant 9 : index
    %c0_233 = arith.constant 0 : index
    %c0_234 = arith.constant 0 : index
    %196 = vector.load %arg11[%c9_232, %c0_233, %c0_234] : memref<14x32x224xbf16, #tpu.memory_space<vmem>>, vector<1x32x224xbf16>
    %197 = vector.shape_cast %196 : vector<1x32x224xbf16> to vector<32x224xbf16>
    %c11_235 = arith.constant 11 : index
    %c0_236 = arith.constant 0 : index
    %c0_237 = arith.constant 0 : index
    %198 = vector.load %arg11[%c11_235, %c0_236, %c0_237] : memref<14x32x224xbf16, #tpu.memory_space<vmem>>, vector<1x32x224xbf16>
    %199 = vector.shape_cast %198 : vector<1x32x224xbf16> to vector<32x224xbf16>
    %200 = tpu.concatenate %187, %189, %191, %193, %195, %197, %199 in 0 : vector<32x224xbf16>, vector<32x224xbf16>, vector<32x224xbf16>, vector<32x224xbf16>, vector<32x224xbf16>, vector<32x224xbf16>, vector<32x224xbf16> -> vector<224x224xbf16>
    %c224 = arith.constant 224 : index
    %c0_238 = arith.constant 0 : index
    %201 = vector.load %arg4[%c224, %c0_238] : memref<1120x224xbf16, #tpu.memory_space<vmem>>, vector<224x224xbf16>
    %cst_239 = arith.constant dense<0.000000e+00> : vector<224x224xf32>
    %202 = tpu.matmul %200, %201, %cst_239 {dimension_numbers = #tpu.dot_dimension_numbers<[1], [0], [0], [1], [0, 0, 1, 1], [], []>} : vector<224x224xbf16>, vector<224x224xbf16>, vector<224x224xf32> -> vector<224x224xf32>
    %203 = arith.addf %186, %202 : vector<224x224xf32>
    %c0_240 = arith.constant 0 : index
    %c0_241 = arith.constant 0 : index
    %c0_242 = arith.constant 0 : index
    %204 = vector.load %arg11[%c0_240, %c0_241, %c0_242] : memref<14x32x224xbf16, #tpu.memory_space<vmem>>, vector<1x32x224xbf16>
    %205 = vector.shape_cast %204 : vector<1x32x224xbf16> to vector<32x224xbf16>
    %c2_243 = arith.constant 2 : index
    %c0_244 = arith.constant 0 : index
    %c0_245 = arith.constant 0 : index
    %206 = vector.load %arg11[%c2_243, %c0_244, %c0_245] : memref<14x32x224xbf16, #tpu.memory_space<vmem>>, vector<1x32x224xbf16>
    %207 = vector.shape_cast %206 : vector<1x32x224xbf16> to vector<32x224xbf16>
    %c4_246 = arith.constant 4 : index
    %c0_247 = arith.constant 0 : index
    %c0_248 = arith.constant 0 : index
    %208 = vector.load %arg11[%c4_246, %c0_247, %c0_248] : memref<14x32x224xbf16, #tpu.memory_space<vmem>>, vector<1x32x224xbf16>
    %209 = vector.shape_cast %208 : vector<1x32x224xbf16> to vector<32x224xbf16>
    %c6_249 = arith.constant 6 : index
    %c0_250 = arith.constant 0 : index
    %c0_251 = arith.constant 0 : index
    %210 = vector.load %arg11[%c6_249, %c0_250, %c0_251] : memref<14x32x224xbf16, #tpu.memory_space<vmem>>, vector<1x32x224xbf16>
    %211 = vector.shape_cast %210 : vector<1x32x224xbf16> to vector<32x224xbf16>
    %c8_252 = arith.constant 8 : index
    %c0_253 = arith.constant 0 : index
    %c0_254 = arith.constant 0 : index
    %212 = vector.load %arg11[%c8_252, %c0_253, %c0_254] : memref<14x32x224xbf16, #tpu.memory_space<vmem>>, vector<1x32x224xbf16>
    %213 = vector.shape_cast %212 : vector<1x32x224xbf16> to vector<32x224xbf16>
    %c10_255 = arith.constant 10 : index
    %c0_256 = arith.constant 0 : index
    %c0_257 = arith.constant 0 : index
    %214 = vector.load %arg11[%c10_255, %c0_256, %c0_257] : memref<14x32x224xbf16, #tpu.memory_space<vmem>>, vector<1x32x224xbf16>
    %215 = vector.shape_cast %214 : vector<1x32x224xbf16> to vector<32x224xbf16>
    %c12_258 = arith.constant 12 : index
    %c0_259 = arith.constant 0 : index
    %c0_260 = arith.constant 0 : index
    %216 = vector.load %arg11[%c12_258, %c0_259, %c0_260] : memref<14x32x224xbf16, #tpu.memory_space<vmem>>, vector<1x32x224xbf16>
    %217 = vector.shape_cast %216 : vector<1x32x224xbf16> to vector<32x224xbf16>
    %218 = tpu.concatenate %205, %207, %209, %211, %213, %215, %217 in 0 : vector<32x224xbf16>, vector<32x224xbf16>, vector<32x224xbf16>, vector<32x224xbf16>, vector<32x224xbf16>, vector<32x224xbf16>, vector<32x224xbf16> -> vector<224x224xbf16>
    %c448 = arith.constant 448 : index
    %c0_261 = arith.constant 0 : index
    %219 = vector.load %arg4[%c448, %c0_261] : memref<1120x224xbf16, #tpu.memory_space<vmem>>, vector<224x224xbf16>
    %cst_262 = arith.constant dense<0.000000e+00> : vector<224x224xf32>
    %220 = tpu.matmul %218, %219, %cst_262 {dimension_numbers = #tpu.dot_dimension_numbers<[1], [0], [0], [1], [0, 0, 1, 1], [], []>} : vector<224x224xbf16>, vector<224x224xbf16>, vector<224x224xf32> -> vector<224x224xf32>
    %221 = arith.addf %203, %220 : vector<224x224xf32>
    %c1_263 = arith.constant 1 : index
    %c0_264 = arith.constant 0 : index
    %c0_265 = arith.constant 0 : index
    %222 = vector.load %arg11[%c1_263, %c0_264, %c0_265] : memref<14x32x224xbf16, #tpu.memory_space<vmem>>, vector<1x32x224xbf16>
    %223 = vector.shape_cast %222 : vector<1x32x224xbf16> to vector<32x224xbf16>
    %c3_266 = arith.constant 3 : index
    %c0_267 = arith.constant 0 : index
    %c0_268 = arith.constant 0 : index
    %224 = vector.load %arg11[%c3_266, %c0_267, %c0_268] : memref<14x32x224xbf16, #tpu.memory_space<vmem>>, vector<1x32x224xbf16>
    %225 = vector.shape_cast %224 : vector<1x32x224xbf16> to vector<32x224xbf16>
    %c5_269 = arith.constant 5 : index
    %c0_270 = arith.constant 0 : index
    %c0_271 = arith.constant 0 : index
    %226 = vector.load %arg11[%c5_269, %c0_270, %c0_271] : memref<14x32x224xbf16, #tpu.memory_space<vmem>>, vector<1x32x224xbf16>
    %227 = vector.shape_cast %226 : vector<1x32x224xbf16> to vector<32x224xbf16>
    %c7_272 = arith.constant 7 : index
    %c0_273 = arith.constant 0 : index
    %c0_274 = arith.constant 0 : index
    %228 = vector.load %arg11[%c7_272, %c0_273, %c0_274] : memref<14x32x224xbf16, #tpu.memory_space<vmem>>, vector<1x32x224xbf16>
    %229 = vector.shape_cast %228 : vector<1x32x224xbf16> to vector<32x224xbf16>
    %c9_275 = arith.constant 9 : index
    %c0_276 = arith.constant 0 : index
    %c0_277 = arith.constant 0 : index
    %230 = vector.load %arg11[%c9_275, %c0_276, %c0_277] : memref<14x32x224xbf16, #tpu.memory_space<vmem>>, vector<1x32x224xbf16>
    %231 = vector.shape_cast %230 : vector<1x32x224xbf16> to vector<32x224xbf16>
    %c11_278 = arith.constant 11 : index
    %c0_279 = arith.constant 0 : index
    %c0_280 = arith.constant 0 : index
    %232 = vector.load %arg11[%c11_278, %c0_279, %c0_280] : memref<14x32x224xbf16, #tpu.memory_space<vmem>>, vector<1x32x224xbf16>
    %233 = vector.shape_cast %232 : vector<1x32x224xbf16> to vector<32x224xbf16>
    %c13_281 = arith.constant 13 : index
    %c0_282 = arith.constant 0 : index
    %c0_283 = arith.constant 0 : index
    %234 = vector.load %arg11[%c13_281, %c0_282, %c0_283] : memref<14x32x224xbf16, #tpu.memory_space<vmem>>, vector<1x32x224xbf16>
    %235 = vector.shape_cast %234 : vector<1x32x224xbf16> to vector<32x224xbf16>
    %236 = tpu.concatenate %223, %225, %227, %229, %231, %233, %235 in 0 : vector<32x224xbf16>, vector<32x224xbf16>, vector<32x224xbf16>, vector<32x224xbf16>, vector<32x224xbf16>, vector<32x224xbf16>, vector<32x224xbf16> -> vector<224x224xbf16>
    %c672 = arith.constant 672 : index
    %c0_284 = arith.constant 0 : index
    %237 = vector.load %arg4[%c672, %c0_284] : memref<1120x224xbf16, #tpu.memory_space<vmem>>, vector<224x224xbf16>
    %cst_285 = arith.constant dense<0.000000e+00> : vector<224x224xf32>
    %238 = tpu.matmul %236, %237, %cst_285 {dimension_numbers = #tpu.dot_dimension_numbers<[1], [0], [0], [1], [0, 0, 1, 1], [], []>} : vector<224x224xbf16>, vector<224x224xbf16>, vector<224x224xf32> -> vector<224x224xf32>
    %239 = arith.addf %221, %238 : vector<224x224xf32>
    %c2_286 = arith.constant 2 : index
    %c0_287 = arith.constant 0 : index
    %c0_288 = arith.constant 0 : index
    %240 = vector.load %arg11[%c2_286, %c0_287, %c0_288] : memref<14x32x224xbf16, #tpu.memory_space<vmem>>, vector<1x32x224xbf16>
    %241 = vector.shape_cast %240 : vector<1x32x224xbf16> to vector<32x224xbf16>
    %c4_289 = arith.constant 4 : index
    %c0_290 = arith.constant 0 : index
    %c0_291 = arith.constant 0 : index
    %242 = vector.load %arg11[%c4_289, %c0_290, %c0_291] : memref<14x32x224xbf16, #tpu.memory_space<vmem>>, vector<1x32x224xbf16>
    %243 = vector.shape_cast %242 : vector<1x32x224xbf16> to vector<32x224xbf16>
    %c6_292 = arith.constant 6 : index
    %c0_293 = arith.constant 0 : index
    %c0_294 = arith.constant 0 : index
    %244 = vector.load %arg11[%c6_292, %c0_293, %c0_294] : memref<14x32x224xbf16, #tpu.memory_space<vmem>>, vector<1x32x224xbf16>
    %245 = vector.shape_cast %244 : vector<1x32x224xbf16> to vector<32x224xbf16>
    %c8_295 = arith.constant 8 : index
    %c0_296 = arith.constant 0 : index
    %c0_297 = arith.constant 0 : index
    %246 = vector.load %arg11[%c8_295, %c0_296, %c0_297] : memref<14x32x224xbf16, #tpu.memory_space<vmem>>, vector<1x32x224xbf16>
    %247 = vector.shape_cast %246 : vector<1x32x224xbf16> to vector<32x224xbf16>
    %c10_298 = arith.constant 10 : index
    %c0_299 = arith.constant 0 : index
    %c0_300 = arith.constant 0 : index
    %248 = vector.load %arg11[%c10_298, %c0_299, %c0_300] : memref<14x32x224xbf16, #tpu.memory_space<vmem>>, vector<1x32x224xbf16>
    %249 = vector.shape_cast %248 : vector<1x32x224xbf16> to vector<32x224xbf16>
    %c12_301 = arith.constant 12 : index
    %c0_302 = arith.constant 0 : index
    %c0_303 = arith.constant 0 : index
    %250 = vector.load %arg11[%c12_301, %c0_302, %c0_303] : memref<14x32x224xbf16, #tpu.memory_space<vmem>>, vector<1x32x224xbf16>
    %251 = vector.shape_cast %250 : vector<1x32x224xbf16> to vector<32x224xbf16>
    %cst_304 = arith.constant 0.000000e+00 : bf16
    %252 = vector.broadcast %cst_304 : bf16 to vector<32x224xbf16>
    %253 = tpu.concatenate %241, %243, %245, %247, %249, %251, %252 in 0 : vector<32x224xbf16>, vector<32x224xbf16>, vector<32x224xbf16>, vector<32x224xbf16>, vector<32x224xbf16>, vector<32x224xbf16>, vector<32x224xbf16> -> vector<224x224xbf16>
    %c896 = arith.constant 896 : index
    %c0_305 = arith.constant 0 : index
    %254 = vector.load %arg4[%c896, %c0_305] : memref<1120x224xbf16, #tpu.memory_space<vmem>>, vector<224x224xbf16>
    %cst_306 = arith.constant dense<0.000000e+00> : vector<224x224xf32>
    %255 = tpu.matmul %253, %254, %cst_306 {dimension_numbers = #tpu.dot_dimension_numbers<[1], [0], [0], [1], [0, 0, 1, 1], [], []>} : vector<224x224xbf16>, vector<224x224xbf16>, vector<224x224xf32> -> vector<224x224xf32>
    %256 = arith.addf %239, %255 : vector<224x224xf32>
    %c0_307 = arith.constant 0 : index
    %c0_308 = arith.constant 0 : index
    %257 = vector.load %arg5[%c0_307, %c0_308] : memref<1x224xf32, #tpu.memory_space<vmem>>, vector<1x224xf32>
    %258 = vector.broadcast %257 : vector<1x224xf32> to vector<224x224xf32>
    %259 = arith.addf %256, %258 : vector<224x224xf32>
    %cst_309 = arith.constant 0.000000e+00 : f32
    %260 = vector.broadcast %cst_309 : f32 to vector<224x224xf32>
    %261 = arith.maximumf %259, %260 : vector<224x224xf32>
    %262 = arith.truncf %261 : vector<224x224xf32> to vector<224x224xbf16>
    %263 = vector.shape_cast %262 : vector<224x224xbf16> to vector<7x32x224xbf16>
    %c0_310 = arith.constant 0 : index
    %c0_311 = arith.constant 0 : index
    %c0_312 = arith.constant 0 : index
    %264 = vector.load %arg12[%c0_310, %c0_311, %c0_312] : memref<7x32x224xbf16, #tpu.memory_space<vmem>>, vector<7x32x224xbf16>
    tpu.vector_store %arg12[%c0_310, %c0_311, %c0_312], %263 {strides = array<i32>} : memref<7x32x224xbf16, #tpu.memory_space<vmem>>, vector<7x32x224xbf16>,
    %cst_313 = arith.constant 0.000000e+00 : f32
    %265 = vector.broadcast %cst_313 : f32 to vector<128x256xf32>
    %cst_314 = arith.constant 0.000000e+00 : bf16
    %266 = vector.broadcast %cst_314 : bf16 to vector<32x224xbf16>
    %c0_315 = arith.constant 0 : index
    %c0_316 = arith.constant 0 : index
    %c0_317 = arith.constant 0 : index
    %267 = vector.load %arg12[%c0_315, %c0_316, %c0_317] : memref<7x32x224xbf16, #tpu.memory_space<vmem>>, vector<1x32x224xbf16>
    %268 = vector.shape_cast %267 : vector<1x32x224xbf16> to vector<32x224xbf16>
    %c2_318 = arith.constant 2 : index
    %c0_319 = arith.constant 0 : index
    %c0_320 = arith.constant 0 : index
    %269 = vector.load %arg12[%c2_318, %c0_319, %c0_320] : memref<7x32x224xbf16, #tpu.memory_space<vmem>>, vector<1x32x224xbf16>
    %270 = vector.shape_cast %269 : vector<1x32x224xbf16> to vector<32x224xbf16>
    %c4_321 = arith.constant 4 : index
    %c0_322 = arith.constant 0 : index
    %c0_323 = arith.constant 0 : index
    %271 = vector.load %arg12[%c4_321, %c0_322, %c0_323] : memref<7x32x224xbf16, #tpu.memory_space<vmem>>, vector<1x32x224xbf16>
    %272 = vector.shape_cast %271 : vector<1x32x224xbf16> to vector<32x224xbf16>
    %273 = tpu.concatenate %266, %268, %270, %272 in 0 : vector<32x224xbf16>, vector<32x224xbf16>, vector<32x224xbf16>, vector<32x224xbf16> -> vector<128x224xbf16>
    %c0_324 = arith.constant 0 : index
    %c0_325 = arith.constant 0 : index
    %274 = vector.load %arg6[%c0_324, %c0_325] : memref<1120x256xbf16, #tpu.memory_space<vmem>>, vector<224x256xbf16>
    %cst_326 = arith.constant dense<0.000000e+00> : vector<128x256xf32>
    %275 = tpu.matmul %273, %274, %cst_326 {dimension_numbers = #tpu.dot_dimension_numbers<[1], [0], [0], [1], [0, 0, 1, 1], [], []>} : vector<128x224xbf16>, vector<224x256xbf16>, vector<128x256xf32> -> vector<128x256xf32>
    %276 = arith.addf %265, %275 : vector<128x256xf32>
    %cst_327 = arith.constant 0.000000e+00 : bf16
    %277 = vector.broadcast %cst_327 : bf16 to vector<32x224xbf16>
    %c1_328 = arith.constant 1 : index
    %c0_329 = arith.constant 0 : index
    %c0_330 = arith.constant 0 : index
    %278 = vector.load %arg12[%c1_328, %c0_329, %c0_330] : memref<7x32x224xbf16, #tpu.memory_space<vmem>>, vector<1x32x224xbf16>
    %279 = vector.shape_cast %278 : vector<1x32x224xbf16> to vector<32x224xbf16>
    %c3_331 = arith.constant 3 : index
    %c0_332 = arith.constant 0 : index
    %c0_333 = arith.constant 0 : index
    %280 = vector.load %arg12[%c3_331, %c0_332, %c0_333] : memref<7x32x224xbf16, #tpu.memory_space<vmem>>, vector<1x32x224xbf16>
    %281 = vector.shape_cast %280 : vector<1x32x224xbf16> to vector<32x224xbf16>
    %c5_334 = arith.constant 5 : index
    %c0_335 = arith.constant 0 : index
    %c0_336 = arith.constant 0 : index
    %282 = vector.load %arg12[%c5_334, %c0_335, %c0_336] : memref<7x32x224xbf16, #tpu.memory_space<vmem>>, vector<1x32x224xbf16>
    %283 = vector.shape_cast %282 : vector<1x32x224xbf16> to vector<32x224xbf16>
    %284 = tpu.concatenate %277, %279, %281, %283 in 0 : vector<32x224xbf16>, vector<32x224xbf16>, vector<32x224xbf16>, vector<32x224xbf16> -> vector<128x224xbf16>
    %c224_337 = arith.constant 224 : index
    %c0_338 = arith.constant 0 : index
    %285 = vector.load %arg6[%c224_337, %c0_338] : memref<1120x256xbf16, #tpu.memory_space<vmem>>, vector<224x256xbf16>
    %cst_339 = arith.constant dense<0.000000e+00> : vector<128x256xf32>
    %286 = tpu.matmul %284, %285, %cst_339 {dimension_numbers = #tpu.dot_dimension_numbers<[1], [0], [0], [1], [0, 0, 1, 1], [], []>} : vector<128x224xbf16>, vector<224x256xbf16>, vector<128x256xf32> -> vector<128x256xf32>
    %287 = arith.addf %276, %286 : vector<128x256xf32>
    %c0_340 = arith.constant 0 : index
    %c0_341 = arith.constant 0 : index
    %c0_342 = arith.constant 0 : index
    %288 = vector.load %arg12[%c0_340, %c0_341, %c0_342] : memref<7x32x224xbf16, #tpu.memory_space<vmem>>, vector<1x32x224xbf16>
    %289 = vector.shape_cast %288 : vector<1x32x224xbf16> to vector<32x224xbf16>
    %c2_343 = arith.constant 2 : index
    %c0_344 = arith.constant 0 : index
    %c0_345 = arith.constant 0 : index
    %290 = vector.load %arg12[%c2_343, %c0_344, %c0_345] : memref<7x32x224xbf16, #tpu.memory_space<vmem>>, vector<1x32x224xbf16>
    %291 = vector.shape_cast %290 : vector<1x32x224xbf16> to vector<32x224xbf16>
    %c4_346 = arith.constant 4 : index
    %c0_347 = arith.constant 0 : index
    %c0_348 = arith.constant 0 : index
    %292 = vector.load %arg12[%c4_346, %c0_347, %c0_348] : memref<7x32x224xbf16, #tpu.memory_space<vmem>>, vector<1x32x224xbf16>
    %293 = vector.shape_cast %292 : vector<1x32x224xbf16> to vector<32x224xbf16>
    %c6_349 = arith.constant 6 : index
    %c0_350 = arith.constant 0 : index
    %c0_351 = arith.constant 0 : index
    %294 = vector.load %arg12[%c6_349, %c0_350, %c0_351] : memref<7x32x224xbf16, #tpu.memory_space<vmem>>, vector<1x32x224xbf16>
    %295 = vector.shape_cast %294 : vector<1x32x224xbf16> to vector<32x224xbf16>
    %296 = tpu.concatenate %289, %291, %293, %295 in 0 : vector<32x224xbf16>, vector<32x224xbf16>, vector<32x224xbf16>, vector<32x224xbf16> -> vector<128x224xbf16>
    %c448_352 = arith.constant 448 : index
    %c0_353 = arith.constant 0 : index
    %297 = vector.load %arg6[%c448_352, %c0_353] : memref<1120x256xbf16, #tpu.memory_space<vmem>>, vector<224x256xbf16>
    %cst_354 = arith.constant dense<0.000000e+00> : vector<128x256xf32>
    %298 = tpu.matmul %296, %297, %cst_354 {dimension_numbers = #tpu.dot_dimension_numbers<[1], [0], [0], [1], [0, 0, 1, 1], [], []>} : vector<128x224xbf16>, vector<224x256xbf16>, vector<128x256xf32> -> vector<128x256xf32>
    %299 = arith.addf %287, %298 : vector<128x256xf32>
    %c1_355 = arith.constant 1 : index
    %c0_356 = arith.constant 0 : index
    %c0_357 = arith.constant 0 : index
    %300 = vector.load %arg12[%c1_355, %c0_356, %c0_357] : memref<7x32x224xbf16, #tpu.memory_space<vmem>>, vector<1x32x224xbf16>
    %301 = vector.shape_cast %300 : vector<1x32x224xbf16> to vector<32x224xbf16>
    %c3_358 = arith.constant 3 : index
    %c0_359 = arith.constant 0 : index
    %c0_360 = arith.constant 0 : index
    %302 = vector.load %arg12[%c3_358, %c0_359, %c0_360] : memref<7x32x224xbf16, #tpu.memory_space<vmem>>, vector<1x32x224xbf16>
    %303 = vector.shape_cast %302 : vector<1x32x224xbf16> to vector<32x224xbf16>
    %c5_361 = arith.constant 5 : index
    %c0_362 = arith.constant 0 : index
    %c0_363 = arith.constant 0 : index
    %304 = vector.load %arg12[%c5_361, %c0_362, %c0_363] : memref<7x32x224xbf16, #tpu.memory_space<vmem>>, vector<1x32x224xbf16>
    %305 = vector.shape_cast %304 : vector<1x32x224xbf16> to vector<32x224xbf16>
    %cst_364 = arith.constant 0.000000e+00 : bf16
    %306 = vector.broadcast %cst_364 : bf16 to vector<32x224xbf16>
    %307 = tpu.concatenate %301, %303, %305, %306 in 0 : vector<32x224xbf16>, vector<32x224xbf16>, vector<32x224xbf16>, vector<32x224xbf16> -> vector<128x224xbf16>
    %c672_365 = arith.constant 672 : index
    %c0_366 = arith.constant 0 : index
    %308 = vector.load %arg6[%c672_365, %c0_366] : memref<1120x256xbf16, #tpu.memory_space<vmem>>, vector<224x256xbf16>
    %cst_367 = arith.constant dense<0.000000e+00> : vector<128x256xf32>
    %309 = tpu.matmul %307, %308, %cst_367 {dimension_numbers = #tpu.dot_dimension_numbers<[1], [0], [0], [1], [0, 0, 1, 1], [], []>} : vector<128x224xbf16>, vector<224x256xbf16>, vector<128x256xf32> -> vector<128x256xf32>
    %310 = arith.addf %299, %309 : vector<128x256xf32>
    %c2_368 = arith.constant 2 : index
    %c0_369 = arith.constant 0 : index
    %c0_370 = arith.constant 0 : index
    %311 = vector.load %arg12[%c2_368, %c0_369, %c0_370] : memref<7x32x224xbf16, #tpu.memory_space<vmem>>, vector<1x32x224xbf16>
    %312 = vector.shape_cast %311 : vector<1x32x224xbf16> to vector<32x224xbf16>
    %c4_371 = arith.constant 4 : index
    %c0_372 = arith.constant 0 : index
    %c0_373 = arith.constant 0 : index
    %313 = vector.load %arg12[%c4_371, %c0_372, %c0_373] : memref<7x32x224xbf16, #tpu.memory_space<vmem>>, vector<1x32x224xbf16>
    %314 = vector.shape_cast %313 : vector<1x32x224xbf16> to vector<32x224xbf16>
    %c6_374 = arith.constant 6 : index
    %c0_375 = arith.constant 0 : index
    %c0_376 = arith.constant 0 : index
    %315 = vector.load %arg12[%c6_374, %c0_375, %c0_376] : memref<7x32x224xbf16, #tpu.memory_space<vmem>>, vector<1x32x224xbf16>
    %316 = vector.shape_cast %315 : vector<1x32x224xbf16> to vector<32x224xbf16>
    %cst_377 = arith.constant 0.000000e+00 : bf16
    %317 = vector.broadcast %cst_377 : bf16 to vector<32x224xbf16>
    %318 = tpu.concatenate %312, %314, %316, %317 in 0 : vector<32x224xbf16>, vector<32x224xbf16>, vector<32x224xbf16>, vector<32x224xbf16> -> vector<128x224xbf16>
    %c896_378 = arith.constant 896 : index
    %c0_379 = arith.constant 0 : index
    %319 = vector.load %arg6[%c896_378, %c0_379] : memref<1120x256xbf16, #tpu.memory_space<vmem>>, vector<224x256xbf16>
    %cst_380 = arith.constant dense<0.000000e+00> : vector<128x256xf32>
    %320 = tpu.matmul %318, %319, %cst_380 {dimension_numbers = #tpu.dot_dimension_numbers<[1], [0], [0], [1], [0, 0, 1, 1], [], []>} : vector<128x224xbf16>, vector<224x256xbf16>, vector<128x256xf32> -> vector<128x256xf32>
    %321 = arith.addf %310, %320 : vector<128x256xf32>
    %c0_381 = arith.constant 0 : index
    %c0_382 = arith.constant 0 : index
    %322 = vector.load %arg7[%c0_381, %c0_382] : memref<1x256xf32, #tpu.memory_space<vmem>>, vector<1x256xf32>
    %323 = vector.broadcast %322 : vector<1x256xf32> to vector<128x256xf32>
    %324 = arith.addf %321, %323 : vector<128x256xf32>
    %cst_383 = arith.constant 0.000000e+00 : f32
    %325 = vector.broadcast %cst_383 : f32 to vector<128x256xf32>
    %326 = arith.maximumf %324, %325 : vector<128x256xf32>
    %327 = arith.truncf %326 : vector<128x256xf32> to vector<128x256xbf16>
    %328 = vector.shape_cast %327 : vector<128x256xbf16> to vector<4x32x256xbf16>
    %329 = vector.extract_strided_slice %328 {offsets = [0, 0, 0], sizes = [1, 32, 256], strides = [1, 1, 1]} : vector<4x32x256xbf16> to vector<1x32x256xbf16>
    %330 = vector.shape_cast %329 : vector<1x32x256xbf16> to vector<32x256xbf16>
    %331 = vector.extract_strided_slice %328 {offsets = [1, 0, 0], sizes = [1, 32, 256], strides = [1, 1, 1]} : vector<4x32x256xbf16> to vector<1x32x256xbf16>
    %332 = vector.shape_cast %331 : vector<1x32x256xbf16> to vector<32x256xbf16>
    %333 = vector.extract_strided_slice %328 {offsets = [2, 0, 0], sizes = [1, 32, 256], strides = [1, 1, 1]} : vector<4x32x256xbf16> to vector<1x32x256xbf16>
    %334 = vector.shape_cast %333 : vector<1x32x256xbf16> to vector<32x256xbf16>
    %335 = vector.extract_strided_slice %328 {offsets = [3, 0, 0], sizes = [1, 32, 256], strides = [1, 1, 1]} : vector<4x32x256xbf16> to vector<1x32x256xbf16>
    %336 = vector.shape_cast %335 : vector<1x32x256xbf16> to vector<32x256xbf16>
    %337 = tpu.concatenate %330, %332, %334, %336 in 1 : vector<32x256xbf16>, vector<32x256xbf16>, vector<32x256xbf16>, vector<32x256xbf16> -> vector<32x1024xbf16>
    %c0_384 = arith.constant 0 : index
    %c0_385 = arith.constant 0 : index
    %338 = vector.load %arg8[%c0_384, %c0_385] : memref<1024x128xbf16, #tpu.memory_space<vmem>>, vector<1024x128xbf16>
    %cst_386 = arith.constant dense<0.000000e+00> : vector<32x128xf32>
    %339 = tpu.matmul %337, %338, %cst_386 {dimension_numbers = #tpu.dot_dimension_numbers<[1], [0], [0], [1], [0, 0, 1, 1], [], []>} : vector<32x1024xbf16>, vector<1024x128xbf16>, vector<32x128xf32> -> vector<32x128xf32>
    %c0_387 = arith.constant 0 : index
    %c0_388 = arith.constant 0 : index
    %340 = vector.load %arg9[%c0_387, %c0_388] : memref<1x128xf32, #tpu.memory_space<vmem>>, vector<1x128xf32>
    %341 = vector.broadcast %340 : vector<1x128xf32> to vector<32x128xf32>
    %342 = arith.addf %339, %341 : vector<32x128xf32>
    %c0_389 = arith.constant 0 : index
    %c0_390 = arith.constant 0 : index
    %343 = vector.load %arg10[%c0_389, %c0_390] : memref<32x128xf32, #tpu.memory_space<vmem>>, vector<32x128xf32>
    tpu.vector_store %arg10[%c0_389, %c0_390], %342 {strides = array<i32>} : memref<32x128xf32, #tpu.memory_space<vmem>>, vector<32x128xf32>,
    return
  }
  func.func @transform_0(%arg0: i32) -> (i32, i32, i32) {
    %c0_i32 = arith.constant 0 : i32
    %c0_i32_0 = arith.constant 0 : i32
    %c0_i32_1 = arith.constant 0 : i32
    return %c0_i32, %arg0, %c0_i32_0 : i32, i32, i32
  }
  func.func @transform_1(%arg0: i32) -> (i32, i32) {
    %c0_i32 = arith.constant 0 : i32
    %c0_i32_0 = arith.constant 0 : i32
    %c0_i32_1 = arith.constant 0 : i32
    return %c0_i32, %c0_i32_0 : i32, i32
  }
  func.func @transform_2(%arg0: i32) -> (i32, i32) {
    %c0_i32 = arith.constant 0 : i32
    %c0_i32_0 = arith.constant 0 : i32
    %c0_i32_1 = arith.constant 0 : i32
    return %c0_i32, %c0_i32_0 : i32, i32
  }
  func.func @transform_3(%arg0: i32) -> (i32, i32) {
    %c0_i32 = arith.constant 0 : i32
    %c0_i32_0 = arith.constant 0 : i32
    %c0_i32_1 = arith.constant 0 : i32
    return %c0_i32, %c0_i32_0 : i32, i32
  }
  func.func @transform_4(%arg0: i32) -> (i32, i32) {
    %c0_i32 = arith.constant 0 : i32
    %c0_i32_0 = arith.constant 0 : i32
    %c0_i32_1 = arith.constant 0 : i32
    return %c0_i32, %c0_i32_0 : i32, i32
  }
  func.func @transform_5(%arg0: i32) -> (i32, i32) {
    %c0_i32 = arith.constant 0 : i32
    %c0_i32_0 = arith.constant 0 : i32
    %c0_i32_1 = arith.constant 0 : i32
    return %c0_i32, %c0_i32_0 : i32, i32
  }
  func.func @transform_6(%arg0: i32) -> (i32, i32) {
    %c0_i32 = arith.constant 0 : i32
    %c0_i32_0 = arith.constant 0 : i32
    %c0_i32_1 = arith.constant 0 : i32
    return %c0_i32, %c0_i32_0 : i32, i32
  }
  func.func @transform_7(%arg0: i32) -> (i32, i32) {
    %c0_i32 = arith.constant 0 : i32
    %c0_i32_0 = arith.constant 0 : i32
    %c0_i32_1 = arith.constant 0 : i32
    return %c0_i32, %c0_i32_0 : i32, i32
  }
  func.func @transform_8(%arg0: i32) -> (i32, i32) {
    %c0_i32 = arith.constant 0 : i32
    %c0_i32_0 = arith.constant 0 : i32
    %c0_i32_1 = arith.constant 0 : i32
    return %c0_i32, %c0_i32_0 : i32, i32
  }
  func.func @transform_9(%arg0: i32) -> (i32, i32) {
    %c0_i32 = arith.constant 0 : i32
    %c0_i32_0 = arith.constant 0 : i32
    return %arg0, %c0_i32 : i32, i32
  }
}

</mosaic_0001>

<bundles_post_ra>
// kernel: tile.18
= control target key start
LH: loop header
LB: loop body
LE: loop exit
PB: predicated region body
PF: predicated region fallthrough
CT: control target
= control target key end

     0   :  { %s28_s0 = inlined_call_operand.vmem [shape: f32[16], index: 0, kind: input, shape index: {}]   ;;  %s29_s1 = inlined_call_operand.vmem [shape: f32[14,16], index: 1, kind: output, shape index: {}]  }
   0x1   :  { %v4_v0 = vld [vmem:[%s28_s0] ss:$0 sm:$0xff] }
   0x2   :  { %5 = vst [vmem:[%s29_s1] sm:$0xff] %v4_v0  ;;  %8 = vst [vmem:[%s29_s1 + $0x8] sm:$0xff] %v4_v0 }

// kernel: tile.19
= control target key start
LH: loop header
LB: loop body
LE: loop exit
PB: predicated region body
PF: predicated region fallthrough
CT: control target
= control target key end

     0   :  { %s19_s8 = smov 3  ;;  %s79_s9 = smov 112   ;;  %vm4_vm0 = vcmask 130048   ;;  %vm10_vm1 = vcmask 1048448   ;;  %vm16_vm2 = vcmask 917248   ;;  %vm23_vm3 = vcmask 786048   ;;  %s126_s0 = inlined_call_operand.vmem [shape: f32[14,16], index: 0, kind: input, shape index: {}]   ;;  %s127_s1 = inlined_call_operand.vmem [shape: f32[1,224], index: 1, kind: output, shape index: {}]  }
   0x1   :  { %v64_v0 = vld [vmem:[%s126_s0 + $0x7] sm:$0x1]   ;;  %v66_v1 = vld [vmem:[%s126_s0 + $0x5] ss:$8 sm:%s19_s8]   ;;  %s80_s12 = smov 80   ;;  %s26_s15 = smov 3 }
   0x2   :  { %8 = vrot.lane.b32.xlu0 %v64_v0, %s79_s9  ;;  %21 = vrot.lane.b32.xlu1 %v66_v1, %s80_s12  ;;  %v65_v2 = vld [vmem:[%s126_s0 + $0x6] sm:$0x1]   ;;  %s33_s18 = smov 3  ;;  %s40_s19 = smov 3  ;;  %vm30_vm4 = vcmask 654848   ;;  %vm37_vm5 = vcmask 523648  }
   0x3   :  { %v67_v3 = vld [vmem:[%s126_s0 + $0x4] ss:$8 sm:%s26_s15]   ;;  %s81_s20 = smov 96   ;;  %s82_s21 = smov 64   ;;  %v68_v4 = vld [vmem:[%s126_s0 + $0x3] ss:$8 sm:%s33_s18]  }
   0x4   :  { %s2_s24 = smov 3  ;;  %v69_v5 = vld [vmem:[%s126_s0 + $0x2] ss:$8 sm:%s40_s19]   ;;  %s47_s27 = smov 3  ;;  %vm44_vm6 = vcmask 392448   ;;  %vm51_vm7 = vcmask 261248  }
   0x5   :  { %v3_v6 = vld [vmem:[%s126_s0] ss:$8 sm:%s2_s24]   ;;  %s83_s30 = smov 48   ;;  %s84_s2 = smov 32   ;;  %v70_v7 = vld [vmem:[%s126_s0 + $0x1] ss:$8 sm:%s47_s27]  }
   0x6   :  { %14 = vrot.lane.b32.xlu0 %v65_v2, %s81_s20  ;;  %28 = vrot.lane.b32.xlu1 %v67_v3, %s82_s21  ;;  %5 = vst.msk [vmem:[#allocation0] ss:$8 sm:$0x3] %vm4_vm0, %v3_v6   ;;  %s85_s0 = smov 16  }
   0xa   :  { %35 = vrot.lane.b32.xlu0 %v68_v4, %s83_s30  ;;  %42 = vrot.lane.b32.xlu1 %v69_v5, %s84_s2 }
   0xe   :  { %49 = vrot.lane.b32.xlu0 %v70_v7, %s85_s0 }
  0x74   :  { %v9_v8 = vpop.permute.xlu0 %8   ;;  %v22_v9 = vpop.permute.xlu1 %21  }
  0x75   :  { %11 = vst.msk [vmem:[#allocation0] sm:$0x1] %vm10_vm1, %v9_v8  }
  0x78   :  { %v15_v10 = vpop.permute.xlu0 %14   ;;  %v29_v11 = vpop.permute.xlu1 %28  }
  0x79   :  { %17 = vst.msk [vmem:[#allocation0] sm:$0x1] %vm16_vm2, %v15_v10  }
  0x7a   :  { %24 = vst.msk [vmem:[#allocation0] ss:$8 sm:$0x3] %vm23_vm3, %v22_v9  }
  0x7b   :  { %31 = vst.msk [vmem:[#allocation0] ss:$8 sm:$0x3] %vm30_vm4, %v29_v11  }
  0x7c   :  { %v36_v12 = vpop.permute.xlu0 %35   ;;  %v43_v13 = vpop.permute.xlu1 %42  }
  0x7d   :  { %38 = vst.msk [vmem:[#allocation0] ss:$8 sm:$0x3] %vm37_vm5, %v36_v12  }
  0x7e   :  { %45 = vst.msk [vmem:[#allocation0] ss:$8 sm:$0x3] %vm44_vm6, %v43_v13  }
  0x80   :  { %v50_v14 = vpop.permute.xlu0 %49  }
  0x81   :  { %52 = vst.msk [vmem:[#allocation0] ss:$8 sm:$0x3] %vm51_vm7, %v50_v14  }
  0x88   :  { %v56_v15 = vld [vmem:[#allocation0] sm:$0x1]  ;;  %v60_v16 = vld [vmem:[#allocation0 + $0x8] sm:$0x1] }
  0x89   :  { %58 = vst [vmem:[%s127_s1] sm:$0x1] %v56_v15  ;;  %71 = vst [vmem:[%s127_s1 + $0x1] sm:$0x1] %v60_v16 }

// kernel: tile.23
= control target key start
LH: loop header
LB: loop body
LE: loop exit
PB: predicated region body
PF: predicated region fallthrough
CT: control target
= control target key end

     0   :  { %s22_s0 = inlined_call_operand.vmem [shape: f32[32], index: 0, kind: input, shape index: {}]   ;;  %s23_s1 = inlined_call_operand.vmem [shape: f32[7,32], index: 1, kind: output, shape index: {}]  }
   0x1   :  { %v4_v0 = vld [vmem:[%s22_s0] ss:$0 sm:$0xff] }
   0x2   :  { %5 = vst [vmem:[%s23_s1] sm:$0xff] %v4_v0 }

// kernel: tile.24
= control target key start
LH: loop header
LB: loop body
LE: loop exit
PB: predicated region body
PF: predicated region fallthrough
CT: control target
= control target key end

     0   :  { %s13_s8 = smov 3  ;;  %s44_s9 = smov 96   ;;  %vm4_vm0 = vcmask 261120   ;;  %vm10_vm1 = vcmask 1048320   ;;  %vm17_vm2 = vcmask 785920   ;;  %vm24_vm3 = vcmask 523520   ;;  %s75_s0 = inlined_call_operand.vmem [shape: f32[7,32], index: 0, kind: input, shape index: {}]   ;;  %s76_s1 = inlined_call_operand.vmem [shape: f32[1,224], index: 1, kind: output, shape index: {}]  }
   0x1   :  { %v37_v0 = vld [vmem:[%s75_s0 + $0x3] sm:$0x1]   ;;  %s20_s10 = smov 3  ;;  %v38_v1 = vld [vmem:[%s75_s0 + $0x2] ss:$4 sm:%s13_s8]   ;;  %s2_s15 = smov 3 }
   0x2   :  { %8 = vrot.lane.b32.xlu0 %v37_v0, %s44_s9  ;;  %v39_v2 = vld [vmem:[%s75_s0 + $0x1] ss:$4 sm:%s20_s10]   ;;  %s45_s16 = smov 32  }
   0x3   :  { %22 = vrot.lane.b32.xlu1 %v39_v2, %s45_s16  ;;  %v3_v3 = vld [vmem:[%s75_s0] ss:$4 sm:%s2_s15]   ;;  %s46_s0 = smov 64  }
   0x4   :  { %5 = vst.msk [vmem:[#allocation0] ss:$8 sm:$0x3] %vm4_vm0, %v3_v3  }
   0x6   :  { %15 = vrot.lane.b32.xlu0 %v38_v1, %s46_s0 }
  0x74   :  { %v9_v4 = vpop.permute.xlu0 %8  }
  0x75   :  { %11 = vst.msk [vmem:[#allocation0] sm:$0x1] %vm10_vm1, %v9_v4   ;;  %v23_v5 = vpop.permute.xlu1 %22  }
  0x78   :  { %v16_v6 = vpop.permute.xlu0 %15  }
  0x79   :  { %18 = vst.msk [vmem:[#allocation0] ss:$8 sm:$0x3] %vm17_vm2, %v16_v6  }
  0x7a   :  { %25 = vst.msk [vmem:[#allocation0] ss:$8 sm:$0x3] %vm24_vm3, %v23_v5  }
  0x81   :  { %v29_v7 = vld [vmem:[#allocation0] sm:$0x1]  ;;  %v33_v8 = vld [vmem:[#allocation0 + $0x8] sm:$0x1] }
  0x82   :  { %31 = vst [vmem:[%s76_s1] sm:$0x1] %v29_v7  ;;  %40 = vst [vmem:[%s76_s1 + $0x1] sm:$0x1] %v33_v8 }

// kernel: tile.28
= control target key start
LH: loop header
LB: loop body
LE: loop exit
PB: predicated region body
PF: predicated region fallthrough
CT: control target
= control target key end

     0   :  { %s22_s0 = inlined_call_operand.vmem [shape: f32[64], index: 0, kind: input, shape index: {}]   ;;  %s23_s1 = inlined_call_operand.vmem [shape: f32[4,64], index: 1, kind: output, shape index: {}]  }
   0x1   :  { %v4_v0 = vld [vmem:[%s22_s0] ss:$0 sm:$0xff] }
   0x2   :  { %5 = vst [vmem:[%s23_s1] sm:$0xf] %v4_v0 }

// kernel: tile.29
= control target key start
LH: loop header
LB: loop body
LE: loop exit
PB: predicated region body
PF: predicated region fallthrough
CT: control target
= control target key end

     0   :  { %s6_s8 = smov 3  ;;  %vm8_vm0 = vcmask 523264   ;;  %s30_s9 = smov 64   ;;  %vm15_vm1 = vcmask 1048064   ;;  %s50_s0 = inlined_call_operand.vmem [shape: f32[4,64], index: 0, kind: input, shape index: {}]   ;;  %s51_s1 = inlined_call_operand.vmem [shape: f32[1,256], index: 1, kind: output, shape index: {}]  }
   0x1   :  { %v4_v0 = vld [vmem:[%s50_s0] sm:$0xf]  ;;  %s11_s0 = smov 3 }
   0x2   :  { %5 = vst [vmem:[#allocation1] sm:$0xf] %v4_v0 }
   0x9   :  { %v12_v1 = vld [vmem:[#allocation1 + $0x1] ss:$2 sm:%s11_s0]   ;;  %v7_v2 = vld [vmem:[#allocation1] ss:$2 sm:%s6_s8]  }
   0xa   :  { %13 = vrot.lane.b32.xlu0 %v12_v1, %s30_s9  ;;  %9 = vst.msk [vmem:[#allocation0] ss:$8 sm:$0x3] %vm8_vm0, %v7_v2  }
  0x7c   :  { %v14_v3 = vpop.permute.xlu0 %13  }
  0x7d   :  { %16 = vst.msk [vmem:[#allocation0] ss:$8 sm:$0x3] %vm15_vm1, %v14_v3  }
  0x84   :  { %v20_v4 = vld [vmem:[#allocation0] sm:$0x1]  ;;  %v24_v5 = vld [vmem:[#allocation0 + $0x8] sm:$0x1] }
  0x85   :  { %22 = vst [vmem:[%s51_s1] sm:$0x1] %v20_v4  ;;  %28 = vst [vmem:[%s51_s1 + $0x1] sm:$0x1] %v24_v5 }

// kernel: encoder_forward.1
= control target key start
LH: loop header
LB: loop body
LE: loop exit
PB: predicated region body
PF: predicated region fallthrough
CT: control target
= control target key end

     0   :  { %14 = vsyncpa [#allocation6], 0  ;;  %s13728_s0 = inlined_call_operand.vmem [shape: bf16[32,64,32], index: 0, kind: input, shape index: {}]   ;;  %s13729_s1 = inlined_call_operand.vmem [shape: bf16[160,224], index: 1, kind: input, shape index: {}]   ;;  %s13730_s2 = inlined_call_operand.vmem [shape: f32[1,224], index: 2, kind: input, shape index: {}]   ;;  %s13731_s3 = inlined_call_operand.vmem [shape: bf16[1120,224], index: 3, kind: input, shape index: {}]   ;;  %s13732_s4 = inlined_call_operand.vmem [shape: f32[1,224], index: 4, kind: input, shape index: {}]   ;;  %s13733_s5 = inlined_call_operand.vmem [shape: bf16[1120,256], index: 5, kind: input, shape index: {}]   ;;  %s13734_s6 = inlined_call_operand.vmem [shape: f32[1,256], index: 6, kind: input, shape index: {}]   ;;  %s13735_s7 = inlined_call_operand.vmem [shape: bf16[1024,128], index: 7, kind: input, shape index: {}]   ;;  %s13736_s8 = inlined_call_operand.vmem [shape: f32[1,128], index: 8, kind: input, shape index: {}]   ;;  %s13737_s9 = inlined_call_operand.hbm [shape: f32[64,128], index: 9, kind: output, shape index: {}]  }
   0x1   :  { %16 = vsyncpa [#allocation6 + $0x1], 0  ;;  %s11062_s30 = smov 0   ;;  %s11064_s10 = smov 0  }
   0x2   :  { %s11066_s11 = smov 0   ;;  %s11068_s12 = smov 0  }
   0x3 LB: > { %s8583_s13 = sadd.s32 4294967295, %s11006_s12   ;;  %s8584_s14 = sadd.s32 4294967294, %s11006_s12   ;;  %s11006_s12 = sphi %s11068_s12, %s13743_s12   ;;  %s11002_s11 = sphi %s11066_s11, %s13742_s11   ;;  %s10998_s10 = sphi %s11064_s10, %s13741_s10   ;;  %s10994_s30 = sphi %s11062_s30, %s13740_s30  }
   0x4   : > { %s11085_s15 = sadd.s32 1, %s11006_s12   ;;  %s29_s16 = sadd.s32 1, %s11002_s11 }
   0x5   : > { %s26_s17 = ssub.s32 %s11006_s12, %s11085_s15  ;;  %p36_p0 = scmp.ne.s32.totalorder %s11002_s11, %s10998_s10 }
   0x6   : > { %p27_p1 = scmp.eq.s32.totalorder %s26_s17, 0  ;;  %p37_p2 = scmp.eq.s32.totalorder %s11006_s12, 0 }
   0x7   : > { %p234_p3 = scmp.eq.s32.totalorder %s8583_s13, 1  ;;  %p239_p4 = scmp.ne.s32.totalorder %s10998_s10, %s10994_s30 }
   0x8   : > { %s11098_s18 = scalar_select %p27_p1, %s11002_s11, %s29_s16  }
   0x9   : > { %p38_p5 = por %p37_p2, %p36_p0  ;;  %p11100_p6 = por %p234_p3, %p36_p0 }
   0xa   : > { %p240_p7 = scmp.eq.s32.totalorder %s8584_s14, 1  ;;  %p8586_p9 = scmp.ge.s32.totalorder %s11006_s12, 2 }
   0xc   : > { %p11104_p8 = por %p240_p7, %p239_p4  ;;  %280 = sbr.rel (%p8586_p9) target bundleno = 55 (0x37), region = 48 }
  0x13   : > { %283 = sbr.rel (!%p38_p5) target bundleno = 55 (0x37), region = 52  ;;  %s285_s21 = sand.u32 (%p38_p5), 1, %s11002_s11  }
  0x14   : > { %s9381_s22 = sshll.u32 (%p38_p5), %s11006_s12, 4  ;;  %s8587_s23 = sshll.u32 (%p38_p5), %s285_s21, 9 }
  0x15   : > { %s11116_s26 = scalar_lea.vmem (%p38_p5), %s13728_s0, %s9381_s22  ;;  %s11121_s27 = scalar_lea.vmem (%p38_p5), [#allocation4], %s8587_s23 }
  0x16   : > { %v306_v0 = vld [vmem:[%s11116_s26] sm:$0xff] (%p38_p5)   ;;  %v310_v1 = vld [vmem:[%s11116_s26 + $0x8] sm:$0xff] (%p38_p5)  }
  0x17   : > { %v314_v2 = vld [vmem:[%s11116_s26 + $0x20] sm:$0xff] (%p38_p5)   ;;  %307 = vst [vmem:[%s11121_s27] sm:$0xff] (%p38_p5), %v306_v0   ;;  %311 = vst [vmem:[%s11121_s27 + $0x8] sm:$0xff] (%p38_p5), %v310_v1   ;;  %v318_v3 = vld [vmem:[%s11116_s26 + $0x28] sm:$0xff] (%p38_p5)  }
  0x18   : > { %315 = vst [vmem:[%s11121_s27 + $0x10] sm:$0xff] (%p38_p5), %v314_v2   ;;  %v322_v4 = vld [vmem:[%s11116_s26 + $0x40] sm:$0xff] (%p38_p5)   ;;  %v326_v5 = vld [vmem:[%s11116_s26 + $0x48] sm:$0xff] (%p38_p5)   ;;  %319 = vst [vmem:[%s11121_s27 + $0x18] sm:$0xff] (%p38_p5), %v318_v3  }
  0x19   : > { %323 = vst [vmem:[%s11121_s27 + $0x20] sm:$0xff] (%p38_p5), %v322_v4   ;;  %327 = vst [vmem:[%s11121_s27 + $0x28] sm:$0xff] (%p38_p5), %v326_v5   ;;  %v330_v6 = vld [vmem:[%s11116_s26 + $0x60] sm:$0xff] (%p38_p5)   ;;  %v334_v7 = vld [vmem:[%s11116_s26 + $0x68] sm:$0xff] (%p38_p5)  }
  0x1a   : > { %v338_v8 = vld [vmem:[%s11116_s26 + $0x80] sm:$0xff]   ;;  %331 = vst [vmem:[%s11121_s27 + $0x30] sm:$0xff] %v330_v6   ;;  %335 = vst [vmem:[%s11121_s27 + $0x38] sm:$0xff] %v334_v7   ;;  %v342_v9 = vld [vmem:[%s11116_s26 + $0x88] sm:$0xff]  }
  0x1b   : > { %339 = vst [vmem:[%s11121_s27 + $0x40] sm:$0xff] %v338_v8   ;;  %v346_v10 = vld [vmem:[%s11116_s26 + $0xa0] sm:$0xff]   ;;  %v350_v11 = vld [vmem:[%s11116_s26 + $0xa8] sm:$0xff]   ;;  %343 = vst [vmem:[%s11121_s27 + $0x48] sm:$0xff] %v342_v9  }
  0x1c   : > { %347 = vst [vmem:[%s11121_s27 + $0x50] sm:$0xff] %v346_v10   ;;  %351 = vst [vmem:[%s11121_s27 + $0x58] sm:$0xff] %v350_v11   ;;  %v354_v12 = vld [vmem:[%s11116_s26 + $0xc0] sm:$0xff]   ;;  %v358_v13 = vld [vmem:[%s11116_s26 + $0xc8] sm:$0xff]  }
  0x1d   : > { %v362_v14 = vld [vmem:[%s11116_s26 + $0xe0] sm:$0xff]   ;;  %355 = vst [vmem:[%s11121_s27 + $0x60] sm:$0xff] %v354_v12   ;;  %359 = vst [vmem:[%s11121_s27 + $0x68] sm:$0xff] %v358_v13   ;;  %v366_v15 = vld [vmem:[%s11116_s26 + $0xe8] sm:$0xff]  }
  0x1e   : > { %363 = vst [vmem:[%s11121_s27 + $0x70] sm:$0xff] %v362_v14   ;;  %v370_v16 = vld [vmem:[%s11116_s26 + $0x100] sm:$0xff]   ;;  %v374_v17 = vld [vmem:[%s11116_s26 + $0x108] sm:$0xff]   ;;  %367 = vst [vmem:[%s11121_s27 + $0x78] sm:$0xff] %v366_v15  }
  0x1f   : > { %371 = vst [vmem:[%s11121_s27 + $0x80] sm:$0xff] %v370_v16   ;;  %375 = vst [vmem:[%s11121_s27 + $0x88] sm:$0xff] %v374_v17   ;;  %v378_v18 = vld [vmem:[%s11116_s26 + $0x120] sm:$0xff]   ;;  %v382_v19 = vld [vmem:[%s11116_s26 + $0x128] sm:$0xff]  }
  0x20   : > { %v386_v20 = vld [vmem:[%s11116_s26 + $0x140] sm:$0xff]   ;;  %379 = vst [vmem:[%s11121_s27 + $0x90] sm:$0xff] %v378_v18   ;;  %383 = vst [vmem:[%s11121_s27 + $0x98] sm:$0xff] %v382_v19   ;;  %v390_v21 = vld [vmem:[%s11116_s26 + $0x148] sm:$0xff]  }
  0x21   : > { %387 = vst [vmem:[%s11121_s27 + $0xa0] sm:$0xff] %v386_v20   ;;  %v394_v22 = vld [vmem:[%s11116_s26 + $0x160] sm:$0xff]   ;;  %v398_v23 = vld [vmem:[%s11116_s26 + $0x168] sm:$0xff]   ;;  %391 = vst [vmem:[%s11121_s27 + $0xa8] sm:$0xff] %v390_v21  }
  0x22   : > { %395 = vst [vmem:[%s11121_s27 + $0xb0] sm:$0xff] %v394_v22   ;;  %399 = vst [vmem:[%s11121_s27 + $0xb8] sm:$0xff] %v398_v23   ;;  %v402_v24 = vld [vmem:[%s11116_s26 + $0x180] sm:$0xff]   ;;  %v406_v25 = vld [vmem:[%s11116_s26 + $0x188] sm:$0xff]  }
  0x23   : > { %v410_v26 = vld [vmem:[%s11116_s26 + $0x1a0] sm:$0xff]   ;;  %403 = vst [vmem:[%s11121_s27 + $0xc0] sm:$0xff] %v402_v24   ;;  %407 = vst [vmem:[%s11121_s27 + $0xc8] sm:$0xff] %v406_v25   ;;  %v414_v27 = vld [vmem:[%s11116_s26 + $0x1a8] sm:$0xff]  }
  0x24   : > { %411 = vst [vmem:[%s11121_s27 + $0xd0] sm:$0xff] %v410_v26   ;;  %v418_v28 = vld [vmem:[%s11116_s26 + $0x1c0] sm:$0xff]   ;;  %v422_v29 = vld [vmem:[%s11116_s26 + $0x1c8] sm:$0xff]   ;;  %415 = vst [vmem:[%s11121_s27 + $0xd8] sm:$0xff] %v414_v27  }
  0x25   : > { %419 = vst [vmem:[%s11121_s27 + $0xe0] sm:$0xff] %v418_v28   ;;  %423 = vst [vmem:[%s11121_s27 + $0xe8] sm:$0xff] %v422_v29   ;;  %v426_v30 = vld [vmem:[%s11116_s26 + $0x1e0] sm:$0xff]   ;;  %v430_v31 = vld [vmem:[%s11116_s26 + $0x1e8] sm:$0xff]  }
  0x26   : > { %v434_v32 = vld [vmem:[%s11116_s26 + $0x200] sm:$0xff]   ;;  %427 = vst [vmem:[%s11121_s27 + $0xf0] sm:$0xff] %v426_v30   ;;  %431 = vst [vmem:[%s11121_s27 + $0xf8] sm:$0xff] %v430_v31   ;;  %v438_v33 = vld [vmem:[%s11116_s26 + $0x208] sm:$0xff]  }
  0x27   : > { %435 = vst [vmem:[%s11121_s27 + $0x100] sm:$0xff] %v434_v32   ;;  %v442_v34 = vld [vmem:[%s11116_s26 + $0x220] sm:$0xff]   ;;  %v446_v35 = vld [vmem:[%s11116_s26 + $0x228] sm:$0xff]   ;;  %439 = vst [vmem:[%s11121_s27 + $0x108] sm:$0xff] %v438_v33  }
  0x28   : > { %443 = vst [vmem:[%s11121_s27 + $0x110] sm:$0xff] %v442_v34   ;;  %447 = vst [vmem:[%s11121_s27 + $0x118] sm:$0xff] %v446_v35   ;;  %v450_v36 = vld [vmem:[%s11116_s26 + $0x240] sm:$0xff]   ;;  %v454_v37 = vld [vmem:[%s11116_s26 + $0x248] sm:$0xff]  }
  0x29   : > { %v458_v38 = vld [vmem:[%s11116_s26 + $0x260] sm:$0xff]   ;;  %451 = vst [vmem:[%s11121_s27 + $0x120] sm:$0xff] %v450_v36   ;;  %455 = vst [vmem:[%s11121_s27 + $0x128] sm:$0xff] %v454_v37   ;;  %v462_v39 = vld [vmem:[%s11116_s26 + $0x268] sm:$0xff]  }
  0x2a   : > { %459 = vst [vmem:[%s11121_s27 + $0x130] sm:$0xff] %v458_v38   ;;  %v466_v40 = vld [vmem:[%s11116_s26 + $0x280] sm:$0xff]   ;;  %v470_v41 = vld [vmem:[%s11116_s26 + $0x288] sm:$0xff]   ;;  %463 = vst [vmem:[%s11121_s27 + $0x138] sm:$0xff] %v462_v39  }
  0x2b   : > { %467 = vst [vmem:[%s11121_s27 + $0x140] sm:$0xff] %v466_v40   ;;  %471 = vst [vmem:[%s11121_s27 + $0x148] sm:$0xff] %v470_v41   ;;  %v474_v42 = vld [vmem:[%s11116_s26 + $0x2a0] sm:$0xff]   ;;  %v478_v43 = vld [vmem:[%s11116_s26 + $0x2a8] sm:$0xff]  }
  0x2c   : > { %v482_v44 = vld [vmem:[%s11116_s26 + $0x2c0] sm:$0xff]   ;;  %475 = vst [vmem:[%s11121_s27 + $0x150] sm:$0xff] %v474_v42   ;;  %479 = vst [vmem:[%s11121_s27 + $0x158] sm:$0xff] %v478_v43   ;;  %v486_v45 = vld [vmem:[%s11116_s26 + $0x2c8] sm:$0xff]  }
  0x2d   : > { %483 = vst [vmem:[%s11121_s27 + $0x160] sm:$0xff] %v482_v44   ;;  %v490_v46 = vld [vmem:[%s11116_s26 + $0x2e0] sm:$0xff]   ;;  %v494_v47 = vld [vmem:[%s11116_s26 + $0x2e8] sm:$0xff]   ;;  %487 = vst [vmem:[%s11121_s27 + $0x168] sm:$0xff] %v486_v45  }
  0x2e   : > { %491 = vst [vmem:[%s11121_s27 + $0x170] sm:$0xff] %v490_v46   ;;  %495 = vst [vmem:[%s11121_s27 + $0x178] sm:$0xff] %v494_v47   ;;  %v498_v48 = vld [vmem:[%s11116_s26 + $0x300] sm:$0xff]   ;;  %v502_v49 = vld [vmem:[%s11116_s26 + $0x308] sm:$0xff]  }
  0x2f   : > { %v506_v50 = vld [vmem:[%s11116_s26 + $0x320] sm:$0xff]   ;;  %499 = vst [vmem:[%s11121_s27 + $0x180] sm:$0xff] %v498_v48   ;;  %503 = vst [vmem:[%s11121_s27 + $0x188] sm:$0xff] %v502_v49   ;;  %v510_v51 = vld [vmem:[%s11116_s26 + $0x328] sm:$0xff]  }
  0x30   : > { %507 = vst [vmem:[%s11121_s27 + $0x190] sm:$0xff] %v506_v50   ;;  %v514_v52 = vld [vmem:[%s11116_s26 + $0x340] sm:$0xff]   ;;  %v518_v53 = vld [vmem:[%s11116_s26 + $0x348] sm:$0xff]   ;;  %511 = vst [vmem:[%s11121_s27 + $0x198] sm:$0xff] %v510_v51  }
  0x31   : > { %515 = vst [vmem:[%s11121_s27 + $0x1a0] sm:$0xff] %v514_v52   ;;  %519 = vst [vmem:[%s11121_s27 + $0x1a8] sm:$0xff] %v518_v53   ;;  %v522_v54 = vld [vmem:[%s11116_s26 + $0x360] sm:$0xff]   ;;  %v526_v55 = vld [vmem:[%s11116_s26 + $0x368] sm:$0xff]  }
  0x32   : > { %v530_v56 = vld [vmem:[%s11116_s26 + $0x380] sm:$0xff]   ;;  %523 = vst [vmem:[%s11121_s27 + $0x1b0] sm:$0xff] %v522_v54   ;;  %527 = vst [vmem:[%s11121_s27 + $0x1b8] sm:$0xff] %v526_v55   ;;  %v534_v57 = vld [vmem:[%s11116_s26 + $0x388] sm:$0xff]  }
  0x33   : > { %531 = vst [vmem:[%s11121_s27 + $0x1c0] sm:$0xff] %v530_v56   ;;  %v538_v58 = vld [vmem:[%s11116_s26 + $0x3a0] sm:$0xff]   ;;  %v542_v59 = vld [vmem:[%s11116_s26 + $0x3a8] sm:$0xff]   ;;  %535 = vst [vmem:[%s11121_s27 + $0x1c8] sm:$0xff] %v534_v57  }
  0x34   : > { %539 = vst [vmem:[%s11121_s27 + $0x1d0] sm:$0xff] %v538_v58   ;;  %543 = vst [vmem:[%s11121_s27 + $0x1d8] sm:$0xff] %v542_v59   ;;  %v546_v60 = vld [vmem:[%s11116_s26 + $0x3c0] sm:$0xff]   ;;  %v550_v61 = vld [vmem:[%s11116_s26 + $0x3c8] sm:$0xff]  }
  0x35   : > { %v554_v62 = vld [vmem:[%s11116_s26 + $0x3e0] sm:$0xff]   ;;  %547 = vst [vmem:[%s11121_s27 + $0x1e0] sm:$0xff] %v546_v60   ;;  %551 = vst [vmem:[%s11121_s27 + $0x1e8] sm:$0xff] %v550_v61   ;;  %v558_v63 = vld [vmem:[%s11116_s26 + $0x3e8] sm:$0xff]  }
  0x36   : > { %555 = vst [vmem:[%s11121_s27 + $0x1f0] sm:$0xff] %v554_v62   ;;  %559 = vst [vmem:[%s11121_s27 + $0x1f8] sm:$0xff] %v558_v63  }
  0x37 PF: > { %p8590_p10 = scmp.ge.s32.totalorder %s11006_s12, 1  ;;  %p839_p11 = scmp.lt.s32.totalorder %s11006_s12, 3 }
  0x39   : > { %p840_p12 = pnand %p8590_p10, %p839_p11 }
  0x3a   : > { %v10341_v0 = vld [vmem:[%s13729_s1 + $0x24] ss:$8 sps:$4 sm:$0xff] (!%p840_p12)   ;;  %s11254_s14 = sand.u32 (!%p840_p12), 1, %s10998_s10   ;;  %v10343_v1 = vld [vmem:[%s13729_s1 + $0x20] ss:$8 sps:$4 sm:$0xff] (!%p840_p12)   ;;  %v11008_v2 = vmov (!%p840_p12), 0  }
  0x3b   : > { %843 = sbr.rel (%p840_p12) target bundleno = 2738 (0xab2), region = 93  ;;  %1448 = vmatprep.mubr.bf16.mxu0 (!%p840_p12), %v11008_v2  ;;  %s8591_s21 = sshll.u32 (!%p840_p12), %s11254_s14, 9  ;;  %1648 = vmatprep.mubr.bf16.mxu1 (!%p840_p12), %v11008_v2  ;;  %v10344_v3 = vld [vmem:[%s13729_s1 + $0x34] ss:$8 sps:$4 sm:$0xff] (!%p840_p12)   ;;  %v10346_v4 = vld [vmem:[%s13729_s1 + $0x30] ss:$8 sps:$4 sm:$0xff] (!%p840_p12)  }
  0x3c   : > { %1416 = vmatprep.subr.bf16.mxu0 (!%p840_p12), %v10341_v0  ;;  %9495 = vmatprep.subr.bf16.mxu1 (!%p840_p12), %v10341_v0  ;;  %s11268_s26 = scalar_lea.vmem (!%p840_p12), [#allocation4], %s8591_s21  ;;  %v10350_v5 = vld [vmem:[%s13729_s1 + $0x4] ss:$8 sps:$4 sm:$0xff] (!%p840_p12)   ;;  %vm1331_vm0 = vcmask (!%p840_p12), 261120   ;;  %v10348_v7 = vld [vmem:[%s13729_s1] ss:$8 sps:$4 sm:$0xff] (!%p840_p12)  }
  0x3d   : > { %1417 = vmatpush1.bf16.msra.mxu0 (!%p840_p12), %v10343_v1  ;;  %9497 = vmatpush1.bf16.msra.mxu1 (!%p840_p12), %v10343_v1  ;;  %v10347_v6 = vld [vmem:[%s11268_s26 + $0x10] sm:$0xff] (!%p840_p12)   ;;  %v10351_v8 = vld [vmem:[%s11268_s26 + $0x18] sm:$0xff] (!%p840_p12)   ;;  %v10376_v14 = vld [vmem:[%s13729_s1 + $0x44] ss:$8 sps:$4 sm:$0xff] (!%p840_p12)   ;;  %vm3849_vm1 = vcmask (!%p840_p12), 785408   ;;  %s8592_s28 = sshll.u32 (!%p840_p12), %s11254_s14, 5 }
  0x3e   : > { %1418 = vmatprep.subr.bf16.mxu0 (!%p840_p12), %v10344_v3  ;;  %9496 = vmatprep.subr.bf16.mxu1 (!%p840_p12), %v10344_v3  ;;  %v10361_v9 = vld [vmem:[%s13729_s1 + $0x10] ss:$8 sps:$4 sm:$0xff] (!%p840_p12)   ;;  %v10363_v10 = vld [vmem:[%s13729_s1 + $0x14] ss:$8 sps:$4 sm:$0xff] (!%p840_p12)   ;;  %v10373_v30 = vld [vmem:[%s11268_s26] sm:$0xff] (!%p840_p12)   ;;  %s880_s29 = scalar_lea.vmem (!%p840_p12), [#allocation5], %s8592_s28 }
  0x3f   : > { %v10352_v11 = vld [vmem:[%s11268_s26 + $0x30] sm:$0xff] (!%p840_p12)   ;;  %v10353_v12 = vld [vmem:[%s11268_s26 + $0x38] sm:$0xff] (!%p840_p12)   ;;  %v10374_v31 = vld [vmem:[%s13729_s1 + $0x40] ss:$8 sps:$4 sm:$0xff] (!%p840_p12)   ;;  %s8516_s16 = sshll.u32 (!%p840_p12), %s880_s29, 4  ;;  %s9382_s17 = sshll.u32 (!%p840_p12), %s8583_s13, 9  ;;  %s13679_s16 = int_to_ptr.vmem [resolvable:$true] %s8516_s16 }
  0x40   : > { %v10354_v13 = vld [vmem:[%s11268_s26 + $0x50] sm:$0xff] (!%p840_p12)   ;;  %v10355_v15 = vld [vmem:[%s11268_s26 + $0x58] sm:$0xff] (!%p840_p12)   ;;  %v10377_v34 = vld [vmem:[%s11268_s26 + $0x8] sm:$0xff] (!%p840_p12)   ;;  %s13684_s22 = scalar_lea.hbm (!%p840_p12), %s13737_s9, %s9382_s17  ;;  %s8503_s23 = scalar_lea.sflag (!%p840_p12), [#allocation6], %s11254_s14 }
  0x41   : > { %1419 = vmatpush1.bf16.msra.mxu0 (!%p840_p12), %v10346_v4  ;;  %9498 = vmatpush1.bf16.msra.mxu1 (!%p840_p12), %v10346_v4  ;;  %v10356_v16 = vld [vmem:[%s11268_s26 + $0x70] sm:$0xff] (!%p840_p12)   ;;  %v10357_v17 = vld [vmem:[%s11268_s26 + $0x78] sm:$0xff] (!%p840_p12)   ;;  %v11382_v35 = vld [vmem:[%s11268_s26 + $0x20] sm:$0xff] (!%p840_p12)   ;;  %s10944_s24 = scalar_lea.vmem (!%p840_p12), %s13679_s16, 512  ;;  %s11009_s13 = smov (!%p840_p12), [#allocation5]  }
  0x42   : > { %1833 = vmatprep.subr.bf16.mxu0 %v10350_v5  ;;  %v10358_v18 = vld [vmem:[%s11268_s26 + $0x90] sm:$0xff]   ;;  %v10359_v19 = vld [vmem:[%s11268_s26 + $0x98] sm:$0xff]   ;;  %v11388_v36 = vld [vmem:[%s11268_s26 + $0x28] sm:$0xff]   ;;  %p10945_p13 = scmp.ne.s32.totalorder %s13679_s16, %s10944_s24  ;;  %s10948_s25 = sshll.u32 %s11009_s13, 4  ;;  %s10949_s25 = int_to_ptr.vmem [resolvable:$false] %s10948_s25 }
  0x43   : > { %v10360_v20 = vld [vmem:[%s11268_s26 + $0xb0] sm:$0xff]   ;;  %v10364_v21 = vld [vmem:[%s11268_s26 + $0xb8] sm:$0xff]   ;;  %v11394_v37 = vld [vmem:[%s11268_s26 + $0x40] sm:$0xff]   ;;  %s10950_s27 = scalar_lea.vmem %s10949_s25, 1024  ;;  %p10951_p2 = scmp.lt.s32.totalorder %s13679_s16, %s10949_s25 }
  0x44   : > { %8761 = vmatmul.mubr.msk.bf16.vlgmr.msra.gmra.mrb[0].mxu0 %vm1331_vm0, %v10347_v6  ;;  %v10365_v22 = vld [vmem:[%s11268_s26 + $0xd0] sm:$0xff]   ;;  %v11325_v23 = vld [vmem:[%s11268_s26 + $0xd8] sm:$0xff]   ;;  %v11400_v38 = vld [vmem:[%s11268_s26 + $0x48] sm:$0xff]   ;;  %p10946_p0 = pnand %p10945_p13, %p11100_p6  ;;  %p10952_p3 = scmp.lt.s32.totalorder %s10950_s27, %s10944_s24 }
  0x45   : > { %1834 = vmatpush1.bf16.msra.mxu0 %v10348_v7  ;;  %1458 = vmatprep.mubr.bf16.mxu0 %v11008_v2  ;;  %v11331_v24 = vld [vmem:[%s11268_s26 + $0xf0] sm:$0xff]   ;;  %v11337_v25 = vld [vmem:[%s11268_s26 + $0xf8] sm:$0xff]   ;;  %v11406_v39 = vld [vmem:[%s11268_s26 + $0x60] sm:$0xff]  }
  0x46   : > { %1835 = vmatprep.subr.bf16.mxu0 %v10363_v10  ;;  %v11343_v26 = vld [vmem:[%s11268_s26 + $0x110] sm:$0xff]   ;;  %v11349_v27 = vld [vmem:[%s11268_s26 + $0x118] sm:$0xff]   ;;  %v11412_v40 = vld [vmem:[%s11268_s26 + $0x68] sm:$0xff]   ;;  %p10947_p1 = pneg %p10946_p0  ;;  %p10953_p4 = por %p10952_p3, %p10951_p2 }
  0x47   : > { %v11355_v28 = vld [vmem:[%s11268_s26 + $0x130] sm:$0xff]   ;;  %v11361_v29 = vld [vmem:[%s11268_s26 + $0x138] sm:$0xff]   ;;  %v11418_v41 = vld [vmem:[%s11268_s26 + $0x80] sm:$0xff]  }
  0x48   : > { %v10393_v32 = vld [vmem:[%s13729_s1 + $0x54] ss:$8 sps:$4 sm:$0xff]   ;;  %v10391_v33 = vld [vmem:[%s13729_s1 + $0x50] ss:$8 sps:$4 sm:$0xff]   ;;  %v11424_v42 = vld [vmem:[%s11268_s26 + $0x88] sm:$0xff]   ;;  %p10954_p5 = pnand %p10953_p4, %p10947_p1 }
  0x49   : > { %1836 = vmatpush1.bf16.msra.mxu0 %v10361_v9  ;;  %v11430_v43 = vld [vmem:[%s11268_s26 + $0xa0] sm:$0xff]   ;;  %v11436_v44 = vld [vmem:[%s11268_s26 + $0xa8] sm:$0xff]   ;;  %v10412_v63 = vld [vmem:[%s13729_s1 + $0x74] ss:$8 sps:$4 sm:$0xff]  }
  0x4a   : > { %2191 = vmatprep.subr.bf16.mxu0 %v10376_v14  ;;  %v11442_v45 = vld [vmem:[%s11268_s26 + $0xc0] sm:$0xff]   ;;  %v11451_v47 = vld [vmem:[%s11268_s26 + $0xc8] sm:$0xff]   ;;  %v10410_v0 = vld [vmem:[%s13729_s1 + $0x70] ss:$8 sps:$4 sm:$0xff]  }
  0x4b   : > { %v10409_v46 = vld [vmem:[%s13729_s1 + $0x64] ss:$8 sps:$4 sm:$0xff]   ;;  %v10407_v62 = vld [vmem:[%s13729_s1 + $0x60] ss:$8 sps:$4 sm:$0xff]   ;;  %v10420_v6 = vld [vmem:[%s13729_s1 + $0x94] ss:$8 sps:$4 sm:$0xff]  }
  0x4c   : > { %8762 = vmatmul.mubr.msk.bf16.gmra.mrb[4].mxu0 %vm1331_vm0, %v10351_v8  ;;  %v11457_v48 = vld [vmem:[%s11268_s26 + $0xe0] sm:$0xff]   ;;  %v11463_v49 = vld [vmem:[%s11268_s26 + $0xe8] sm:$0xff]   ;;  %v10917_v7 = vld [vmem:[%s11268_s26 + $0x30] sm:$0xff]  }
  0x4d   : > { %1468 = vmatprep.mubr.bf16.mxu0 %v11008_v2  ;;  %v11469_v50 = vld [vmem:[%s11268_s26 + $0x100] sm:$0xff]   ;;  %v11475_v51 = vld [vmem:[%s11268_s26 + $0x108] sm:$0xff]   ;;  %v10418_v8 = vld [vmem:[%s13729_s1 + $0x90] ss:$8 sps:$4 sm:$0xff]  }
  0x4e   : > { %v11481_v52 = vld [vmem:[%s11268_s26 + $0x120] sm:$0xff]   ;;  %v11487_v53 = vld [vmem:[%s11268_s26 + $0x128] sm:$0xff]   ;;  %v10918_v9 = vld [vmem:[%s11268_s26 + $0x38] sm:$0xff]  }
  0x4f   : > { %v11493_v54 = vld [vmem:[%s11268_s26 + $0x140] sm:$0xff]   ;;  %v11499_v55 = vld [vmem:[%s11268_s26 + $0x148] sm:$0xff]   ;;  %v11658_v10 = vld [vmem:[%s11268_s26 + $0x150] sm:$0xff]  }
  0x50   : > { %v11505_v56 = vld [vmem:[%s11268_s26 + $0x160] sm:$0xff]   ;;  %v11511_v57 = vld [vmem:[%s11268_s26 + $0x168] sm:$0xff]   ;;  %8781 = vmatmul.mubr.msk.bf16.vlgmr.msra.gmra.mrb[0].mxu1 %vm1331_vm0, %v11658_v10  ;;  %v10423_v14 = vld [vmem:[%s11268_s26 + $0x170] sm:$0xff]  }
  0x51   : > { %v11517_v58 = vld [vmem:[%s11268_s26 + $0x180] sm:$0xff]   ;;  %v11523_v59 = vld [vmem:[%s11268_s26 + $0x188] sm:$0xff]   ;;  %1658 = vmatprep.mubr.bf16.mxu1 %v11008_v2 }
  0x52   : > { %v11529_v60 = vld [vmem:[%s11268_s26 + $0x1a0] sm:$0xff]   ;;  %v11535_v61 = vld [vmem:[%s11268_s26 + $0x1a8] sm:$0xff]  }
  0x53   : > { %v10417_v1 = vld [vmem:[%s13729_s1 + $0x84] ss:$8 sps:$4 sm:$0xff]   ;;  %v10415_v5 = vld [vmem:[%s13729_s1 + $0x80] ss:$8 sps:$4 sm:$0xff]  }
  0x54   : > { %8763 = vmatmul.mubr.msk.bf16.gmra.mrb[8].mxu0 %vm1331_vm0, %v10352_v11  ;;  %v11631_v3 = vld [vmem:[%s11268_s26 + $0x1c0] sm:$0xff]   ;;  %v11637_v4 = vld [vmem:[%s11268_s26 + $0x1c8] sm:$0xff]   ;;  %v10919_v11 = vld [vmem:[%s11268_s26 + $0x50] sm:$0xff]  }
  0x55   : > { %1478 = vmatprep.mubr.bf16.mxu0 %v11008_v2 }
  0x5c   : > { %8764 = vmatmul.mubr.msk.bf16.gmra.mrb[12].mxu0 %vm1331_vm0, %v10353_v12  ;;  %v10422_v12 = vld [vmem:[%s11268_s26 + $0x158] sm:$0xff]  }
  0x5d   : > { %1488 = vmatprep.mubr.bf16.mxu0 %v11008_v2  ;;  %8782 = vmatmul.mubr.msk.bf16.gmra.mrb[4].mxu1 %vm1331_vm0, %v10422_v12 }
  0x5e   : > { %1668 = vmatprep.mubr.bf16.mxu1 %v11008_v2 }
  0x64   : > { %8765 = vmatmul.mubr.msk.bf16.gmra.mrb[16].mxu0 %vm1331_vm0, %v10354_v13  ;;  %v10920_v13 = vld [vmem:[%s11268_s26 + $0x58] sm:$0xff]  }
  0x65   : > { %1498 = vmatprep.mubr.bf16.mxu0 %v11008_v2  ;;  %8783 = vmatmul.mubr.msk.bf16.gmra.mrb[8].mxu1 %vm1331_vm0, %v10423_v14 }
  0x66   : > { %1678 = vmatprep.mubr.bf16.mxu1 %v11008_v2 }
  0x6c   : > { %8766 = vmatmul.mubr.msk.bf16.gmra.mrb[20].mxu0 %vm1331_vm0, %v10355_v15  ;;  %v10921_v15 = vld [vmem:[%s11268_s26 + $0x70] sm:$0xff]  }
  0x6d   : > { %1508 = vmatprep.mubr.bf16.mxu0 %v11008_v2 }
  0x74   : > { %8767 = vmatmul.mubr.msk.bf16.gmra.mrb[24].mxu0 %vm1331_vm0, %v10356_v16  ;;  %v10424_v16 = vld [vmem:[%s11268_s26 + $0x178] sm:$0xff]  }
  0x75   : > { %1518 = vmatprep.mubr.bf16.mxu0 %v11008_v2  ;;  %8784 = vmatmul.mubr.msk.bf16.gmra.mrb[12].mxu1 %vm1331_vm0, %v10424_v16 }
  0x76   : > { %1688 = vmatprep.mubr.bf16.mxu1 %v11008_v2 }
  0x7c   : > { %8768 = vmatmul.mubr.msk.bf16.gmra.mrb[28].mxu0 %vm1331_vm0, %v10357_v17  ;;  %v10922_v17 = vld [vmem:[%s11268_s26 + $0x78] sm:$0xff]  }
  0x7d   : > { %1528 = vmatprep.mubr.bf16.mxu0 %v11008_v2 }
  0x84   : > { %8769 = vmatmul.mubr.msk.bf16.gmra.mrb[32].mxu0 %vm1331_vm0, %v10358_v18  ;;  %v10425_v18 = vld [vmem:[%s11268_s26 + $0x190] sm:$0xff]  }
  0x85   : > { %1538 = vmatprep.mubr.bf16.mxu0 %v11008_v2  ;;  %8785 = vmatmul.mubr.msk.bf16.gmra.mrb[16].mxu1 %vm1331_vm0, %v10425_v18 }
  0x86   : > { %1698 = vmatprep.mubr.bf16.mxu1 %v11008_v2 }
  0x8c   : > { %8770 = vmatmul.mubr.msk.bf16.gmra.mrb[36].mxu0 %vm1331_vm0, %v10359_v19  ;;  %v10923_v19 = vld [vmem:[%s11268_s26 + $0x90] sm:$0xff]  }
  0x8d   : > { %1548 = vmatprep.mubr.bf16.mxu0 %v11008_v2 }
  0x94   : > { %8771 = vmatmul.mubr.msk.bf16.gmra.mrb[40].mxu0 %vm1331_vm0, %v10360_v20  ;;  %v10426_v20 = vld [vmem:[%s11268_s26 + $0x198] sm:$0xff]  }
  0x95   : > { %1558 = vmatprep.mubr.bf16.mxu0 %v11008_v2  ;;  %8786 = vmatmul.mubr.msk.bf16.gmra.mrb[20].mxu1 %vm1331_vm0, %v10426_v20 }
  0x96   : > { %1708 = vmatprep.mubr.bf16.mxu1 %v11008_v2 }
  0x9c   : > { %8772 = vmatmul.mubr.msk.bf16.gmra.mrb[44].mxu0 %vm1331_vm0, %v10364_v21  ;;  %v10924_v21 = vld [vmem:[%s11268_s26 + $0x98] sm:$0xff]  }
  0x9d   : > { %1568 = vmatprep.mubr.bf16.mxu0 %v11008_v2 }
  0xa4   : > { %8773 = vmatmul.mubr.msk.bf16.gmra.mrb[48].mxu0 %vm1331_vm0, %v10365_v22  ;;  %v10427_v22 = vld [vmem:[%s11268_s26 + $0x1b0] sm:$0xff]  }
  0xa5   : > { %1578 = vmatprep.mubr.bf16.mxu0 %v11008_v2  ;;  %8787 = vmatmul.mubr.msk.bf16.gmra.mrb[24].mxu1 %vm1331_vm0, %v10427_v22 }
  0xa6   : > { %1718 = vmatprep.mubr.bf16.mxu1 %v11008_v2 }
  0xac   : > { %8774 = vmatmul.mubr.msk.bf16.gmra.mrb[52].mxu0 %vm1331_vm0, %v11325_v23 }
  0xad   : > { %1588 = vmatprep.mubr.bf16.mxu0 %v11008_v2 }
  0xb4   : > { %8775 = vmatmul.mubr.msk.bf16.gmra.mrb[56].mxu0 %vm1331_vm0, %v11331_v24 }
  0xb5   : > { %1598 = vmatprep.mubr.bf16.mxu0 %v11008_v2 }
  0xbc   : > { %8776 = vmatmul.mubr.msk.bf16.gmra.mrb[60].mxu0 %vm1331_vm0, %v11337_v25 }
  0xbd   : > { %1608 = vmatprep.mubr.bf16.mxu0 %v11008_v2 }
  0xc4   : > { %8777 = vmatmul.mubr.msk.bf16.gmra.mrb[64].mxu0 %vm1331_vm0, %v11343_v26 }
  0xc5   : > { %1618 = vmatprep.mubr.bf16.mxu0 %v11008_v2 }
  0xcc   : > { %8778 = vmatmul.mubr.msk.bf16.gmra.mrb[68].mxu0 %vm1331_vm0, %v11349_v27 }
  0xcd   : > { %1628 = vmatprep.mubr.bf16.mxu0 %v11008_v2 }
  0xd4   : > { %8779 = vmatmul.mubr.msk.bf16.gmra.mrb[72].mxu0 %vm1331_vm0, %v11355_v28 }
  0xd5   : > { %1638 = vmatprep.mubr.bf16.mxu0 %v11008_v2 }
  0xdc   : > { %8780 = vmatmul.mubr.msk.bf16.gmra.mrb[76].mxu0 %vm1331_vm0, %v11361_v29 }
  0xdd   : > { %1865 = vmatprep.mubr.bf16.mxu0 %v11008_v2 }
  0xe4   : > { %8793 = vmatmul.mubr.msk.bf16.vlgmr.msra.gmra.mrb[0].mxu0 %vm1331_vm0, %v10373_v30  ;;  %v10925_v30 = vld [vmem:[%s11268_s26 + $0xb0] sm:$0xff]  }
  0xe5   : > { %2192 = vmatpush1.bf16.msra.mxu0 %v10374_v31  ;;  %1875 = vmatprep.mubr.bf16.mxu0 %v11008_v2  ;;  %v10428_v31 = vld [vmem:[%s11268_s26 + $0x1b8] sm:$0xff]  }
  0xe6   : > { %2193 = vmatprep.subr.bf16.mxu0 %v10393_v32  ;;  %8788 = vmatmul.mubr.msk.bf16.gmra.mrb[28].mxu1 %vm1331_vm0, %v10428_v31  ;;  %v10926_v32 = vld [vmem:[%s11268_s26 + $0xb8] sm:$0xff]  }
  0xe7   : > { %4231 = vmatprep.mubr.bf16.mxu1 %v11008_v2 }
  0xe9   : > { %2194 = vmatpush1.bf16.msra.mxu0 %v10391_v33  ;;  %v10927_v33 = vld [vmem:[%s11268_s26 + $0xd0] sm:$0xff]  }
  0xea   : > { %2661 = vmatprep.subr.bf16.mxu0 %v10409_v46  ;;  %v10455_v46 = vld [vmem:[%s13731_s3 + $0x160] ss:$8 sps:$4 sm:$0xff]  }
  0xec   : > { %8794 = vmatmul.mubr.msk.bf16.gmra.mrb[4].mxu0 %vm1331_vm0, %v10377_v34  ;;  %v10437_v34 = vld [vmem:[%s13731_s3 + $0x100] ss:$8 sps:$4 sm:$0xff]  }
  0xed   : > { %1885 = vmatprep.mubr.bf16.mxu0 %v11008_v2 }
  0xf4   : > { %8795 = vmatmul.mubr.msk.bf16.gmra.mrb[8].mxu0 %vm1331_vm0, %v11382_v35 }
  0xf5   : > { %1895 = vmatprep.mubr.bf16.mxu0 %v11008_v2 }
  0xfc   : > { %8796 = vmatmul.mubr.msk.bf16.gmra.mrb[12].mxu0 %vm1331_vm0, %v11388_v36 }
  0xfd   : > { %1905 = vmatprep.mubr.bf16.mxu0 %v11008_v2 }
 0x104   : > { %8797 = vmatmul.mubr.msk.bf16.gmra.mrb[16].mxu0 %vm1331_vm0, %v11394_v37 }
 0x105   : > { %1915 = vmatprep.mubr.bf16.mxu0 %v11008_v2 }
 0x10c   : > { %8798 = vmatmul.mubr.msk.bf16.gmra.mrb[20].mxu0 %vm1331_vm0, %v11400_v38 }
 0x10d   : > { %1925 = vmatprep.mubr.bf16.mxu0 %v11008_v2 }
 0x114   : > { %8799 = vmatmul.mubr.msk.bf16.gmra.mrb[24].mxu0 %vm1331_vm0, %v11406_v39 }
 0x115   : > { %1935 = vmatprep.mubr.bf16.mxu0 %v11008_v2 }
 0x11c   : > { %8800 = vmatmul.mubr.msk.bf16.gmra.mrb[28].mxu0 %vm1331_vm0, %v11412_v40 }
 0x11d   : > { %1945 = vmatprep.mubr.bf16.mxu0 %v11008_v2 }
 0x124   : > { %8801 = vmatmul.mubr.msk.bf16.gmra.mrb[32].mxu0 %vm1331_vm0, %v11418_v41 }
 0x125   : > { %1955 = vmatprep.mubr.bf16.mxu0 %v11008_v2 }
 0x12c   : > { %8802 = vmatmul.mubr.msk.bf16.gmra.mrb[36].mxu0 %vm1331_vm0, %v11424_v42 }
 0x12d   : > { %1965 = vmatprep.mubr.bf16.mxu0 %v11008_v2 }
 0x134   : > { %8803 = vmatmul.mubr.msk.bf16.gmra.mrb[40].mxu0 %vm1331_vm0, %v11430_v43 }
 0x135   : > { %1975 = vmatprep.mubr.bf16.mxu0 %v11008_v2 }
 0x13c   : > { %8804 = vmatmul.mubr.msk.bf16.gmra.mrb[44].mxu0 %vm1331_vm0, %v11436_v44 }
 0x13d   : > { %1985 = vmatprep.mubr.bf16.mxu0 %v11008_v2 }
 0x144   : > { %8805 = vmatmul.mubr.msk.bf16.gmra.mrb[48].mxu0 %vm1331_vm0, %v11442_v45 }
 0x145   : > { %1995 = vmatprep.mubr.bf16.mxu0 %v11008_v2 }
 0x14c   : > { %8806 = vmatmul.mubr.msk.bf16.gmra.mrb[52].mxu0 %vm1331_vm0, %v11451_v47 }
 0x14d   : > { %2005 = vmatprep.mubr.bf16.mxu0 %v11008_v2 }
 0x154   : > { %8807 = vmatmul.mubr.msk.bf16.gmra.mrb[56].mxu0 %vm1331_vm0, %v11457_v48 }
 0x155   : > { %2015 = vmatprep.mubr.bf16.mxu0 %v11008_v2 }
 0x15c   : > { %8808 = vmatmul.mubr.msk.bf16.gmra.mrb[60].mxu0 %vm1331_vm0, %v11463_v49 }
 0x15d   : > { %2025 = vmatprep.mubr.bf16.mxu0 %v11008_v2 }
 0x164   : > { %8809 = vmatmul.mubr.msk.bf16.gmra.mrb[64].mxu0 %vm1331_vm0, %v11469_v50 }
 0x165   : > { %2035 = vmatprep.mubr.bf16.mxu0 %v11008_v2 }
 0x16c   : > { %8810 = vmatmul.mubr.msk.bf16.gmra.mrb[68].mxu0 %vm1331_vm0, %v11475_v51 }
 0x16d   : > { %2045 = vmatprep.mubr.bf16.mxu0 %v11008_v2 }
 0x174   : > { %8811 = vmatmul.mubr.msk.bf16.gmra.mrb[72].mxu0 %vm1331_vm0, %v11481_v52 }
 0x175   : > { %2055 = vmatprep.mubr.bf16.mxu0 %v11008_v2 }
 0x17c   : > { %8812 = vmatmul.mubr.msk.bf16.gmra.mrb[76].mxu0 %vm1331_vm0, %v11487_v53 }
 0x17d   : > { %2065 = vmatprep.mubr.bf16.mxu0 %v11008_v2 }
 0x184   : > { %8813 = vmatmul.mubr.msk.bf16.gmra.mrb[80].mxu0 %vm1331_vm0, %v11493_v54 }
 0x185   : > { %2075 = vmatprep.mubr.bf16.mxu0 %v11008_v2 }
 0x18c   : > { %8814 = vmatmul.mubr.msk.bf16.gmra.mrb[84].mxu0 %vm1331_vm0, %v11499_v55 }
 0x18d   : > { %2085 = vmatprep.mubr.bf16.mxu0 %v11008_v2 }
 0x194   : > { %8815 = vmatmul.mubr.msk.bf16.gmra.mrb[88].mxu0 %vm1331_vm0, %v11505_v56 }
 0x195   : > { %2095 = vmatprep.mubr.bf16.mxu0 %v11008_v2 }
 0x19c   : > { %8816 = vmatmul.mubr.msk.bf16.gmra.mrb[92].mxu0 %vm1331_vm0, %v11511_v57 }
 0x19d   : > { %2105 = vmatprep.mubr.bf16.mxu0 %v11008_v2 }
 0x1a4   : > { %8817 = vmatmul.mubr.msk.bf16.gmra.mrb[96].mxu0 %vm1331_vm0, %v11517_v58 }
 0x1a5   : > { %2115 = vmatprep.mubr.bf16.mxu0 %v11008_v2 }
 0x1ac   : > { %8818 = vmatmul.mubr.msk.bf16.gmra.mrb[100].mxu0 %vm1331_vm0, %v11523_v59 }
 0x1ad   : > { %2125 = vmatprep.mubr.bf16.mxu0 %v11008_v2 }
 0x1b4   : > { %8819 = vmatmul.mubr.msk.bf16.gmra.mrb[104].mxu0 %vm1331_vm0, %v11529_v60 }
 0x1b5   : > { %2135 = vmatprep.mubr.bf16.mxu0 %v11008_v2 }
 0x1bc   : > { %8820 = vmatmul.mubr.msk.bf16.gmra.mrb[108].mxu0 %vm1331_vm0, %v11535_v61 }
 0x1bd   : > { %2223 = vmatprep.mubr.bf16.mxu0 %v11008_v2 }
 0x1c4   : > { %8831 = vmatmul.mubr.msk.bf16.vlgmr.msra.gmra.mrb[0].mxu0 %vm1331_vm0, %v11382_v35  ;;  %v10440_v35 = vld [vmem:[%s13731_s3 + $0x110] ss:$8 sps:$4 sm:$0xff]  }
 0x1c5   : > { %2662 = vmatpush1.bf16.msra.mxu0 %v10407_v62  ;;  %2233 = vmatprep.mubr.bf16.mxu0 %v11008_v2  ;;  %v10461_v62 = vld [vmem:[%s13731_s3 + $0x174] ss:$8 sps:$4 sm:$0xff]  }
 0x1c6   : > { %2663 = vmatprep.subr.bf16.mxu0 %v10412_v63  ;;  %v10464_v63 = vld [vmem:[%s13731_s3 + $0x184] ss:$8 sps:$4 sm:$0xff]  }
 0x1c9   : > { %2664 = vmatpush1.bf16.msra.mxu0 %v10410_v0  ;;  %v10468_v0 = vld [vmem:[%s13731_s3 + $0x194] ss:$8 sps:$4 sm:$0xff]  }
 0x1ca   : > { %3131 = vmatprep.subr.bf16.mxu0 %v10417_v1  ;;  %v10466_v1 = vld [vmem:[%s13731_s3 + $0x190] ss:$8 sps:$4 sm:$0xff]  }
 0x1cc   : > { %8832 = vmatmul.mubr.msk.bf16.gmra.mrb[4].mxu0 %vm1331_vm0, %v11388_v36  ;;  %v10442_v36 = vld [vmem:[%s13731_s3 + $0x114] ss:$8 sps:$4 sm:$0xff]  }
 0x1cd   : > { %2243 = vmatprep.mubr.bf16.mxu0 %v11008_v2 }
 0x1d4   : > { %8833 = vmatmul.mubr.msk.bf16.gmra.mrb[8].mxu0 %vm1331_vm0, %v11394_v37 }
 0x1d5   : > { %2253 = vmatprep.mubr.bf16.mxu0 %v11008_v2 }
 0x1dc   : > { %8834 = vmatmul.mubr.msk.bf16.gmra.mrb[12].mxu0 %vm1331_vm0, %v11400_v38 }
 0x1dd   : > { %2263 = vmatprep.mubr.bf16.mxu0 %v11008_v2 }
 0x1e4   : > { %8835 = vmatmul.mubr.msk.bf16.gmra.mrb[16].mxu0 %vm1331_vm0, %v11406_v39 }
 0x1e5   : > { %2273 = vmatprep.mubr.bf16.mxu0 %v11008_v2 }
 0x1ec   : > { %8836 = vmatmul.mubr.msk.bf16.gmra.mrb[20].mxu0 %vm1331_vm0, %v11412_v40 }
 0x1ed   : > { %2283 = vmatprep.mubr.bf16.mxu0 %v11008_v2 }
 0x1f4   : > { %8837 = vmatmul.mubr.msk.bf16.gmra.mrb[24].mxu0 %vm1331_vm0, %v11418_v41 }
 0x1f5   : > { %2293 = vmatprep.mubr.bf16.mxu0 %v11008_v2 }
 0x1fc   : > { %8838 = vmatmul.mubr.msk.bf16.gmra.mrb[28].mxu0 %vm1331_vm0, %v11424_v42 }
 0x1fd   : > { %2303 = vmatprep.mubr.bf16.mxu0 %v11008_v2 }
 0x204   : > { %8839 = vmatmul.mubr.msk.bf16.gmra.mrb[32].mxu0 %vm1331_vm0, %v11430_v43 }
 0x205   : > { %2313 = vmatprep.mubr.bf16.mxu0 %v11008_v2 }
 0x20c   : > { %8840 = vmatmul.mubr.msk.bf16.gmra.mrb[36].mxu0 %vm1331_vm0, %v11436_v44 }
 0x20d   : > { %2323 = vmatprep.mubr.bf16.mxu0 %v11008_v2 }
 0x214   : > { %8841 = vmatmul.mubr.msk.bf16.gmra.mrb[40].mxu0 %vm1331_vm0, %v11442_v45 }
 0x215   : > { %2333 = vmatprep.mubr.bf16.mxu0 %v11008_v2 }
 0x21c   : > { %8842 = vmatmul.mubr.msk.bf16.gmra.mrb[44].mxu0 %vm1331_vm0, %v11451_v47 }
 0x21d   : > { %2343 = vmatprep.mubr.bf16.mxu0 %v11008_v2 }
 0x224   : > { %8843 = vmatmul.mubr.msk.bf16.gmra.mrb[48].mxu0 %vm1331_vm0, %v11457_v48 }
 0x225   : > { %2353 = vmatprep.mubr.bf16.mxu0 %v11008_v2 }
 0x22c   : > { %8844 = vmatmul.mubr.msk.bf16.gmra.mrb[52].mxu0 %vm1331_vm0, %v11463_v49 }
 0x22d   : > { %2363 = vmatprep.mubr.bf16.mxu0 %v11008_v2 }
 0x234   : > { %8845 = vmatmul.mubr.msk.bf16.gmra.mrb[56].mxu0 %vm1331_vm0, %v11469_v50 }
 0x235   : > { %2373 = vmatprep.mubr.bf16.mxu0 %v11008_v2 }
 0x23c   : > { %8846 = vmatmul.mubr.msk.bf16.gmra.mrb[60].mxu0 %vm1331_vm0, %v11475_v51 }
 0x23d   : > { %2383 = vmatprep.mubr.bf16.mxu0 %v11008_v2 }
 0x244   : > { %8847 = vmatmul.mubr.msk.bf16.gmra.mrb[64].mxu0 %vm1331_vm0, %v11481_v52 }
 0x245   : > { %2393 = vmatprep.mubr.bf16.mxu0 %v11008_v2 }
 0x24c   : > { %8848 = vmatmul.mubr.msk.bf16.gmra.mrb[68].mxu0 %vm1331_vm0, %v11487_v53 }
 0x24d   : > { %2403 = vmatprep.mubr.bf16.mxu0 %v11008_v2 }
 0x254   : > { %8849 = vmatmul.mubr.msk.bf16.gmra.mrb[72].mxu0 %vm1331_vm0, %v11493_v54 }
 0x255   : > { %2413 = vmatprep.mubr.bf16.mxu0 %v11008_v2 }
 0x25c   : > { %8850 = vmatmul.mubr.msk.bf16.gmra.mrb[76].mxu0 %vm1331_vm0, %v11499_v55 }
 0x25d   : > { %2423 = vmatprep.mubr.bf16.mxu0 %v11008_v2 }
 0x264   : > { %8851 = vmatmul.mubr.msk.bf16.gmra.mrb[80].mxu0 %vm1331_vm0, %v11505_v56 }
 0x265   : > { %2433 = vmatprep.mubr.bf16.mxu0 %v11008_v2 }
 0x26c   : > { %8852 = vmatmul.mubr.msk.bf16.gmra.mrb[84].mxu0 %vm1331_vm0, %v11511_v57 }
 0x26d   : > { %2443 = vmatprep.mubr.bf16.mxu0 %v11008_v2 }
 0x274   : > { %8853 = vmatmul.mubr.msk.bf16.gmra.mrb[88].mxu0 %vm1331_vm0, %v11517_v58 }
 0x275   : > { %2453 = vmatprep.mubr.bf16.mxu0 %v11008_v2 }
 0x27c   : > { %8854 = vmatmul.mubr.msk.bf16.gmra.mrb[92].mxu0 %vm1331_vm0, %v11523_v59 }
 0x27d   : > { %2463 = vmatprep.mubr.bf16.mxu0 %v11008_v2 }
 0x284   : > { %8855 = vmatmul.mubr.msk.bf16.gmra.mrb[96].mxu0 %vm1331_vm0, %v11529_v60 }
 0x285   : > { %2473 = vmatprep.mubr.bf16.mxu0 %v11008_v2 }
 0x28c   : > { %8856 = vmatmul.mubr.msk.bf16.gmra.mrb[100].mxu0 %vm1331_vm0, %v11535_v61 }
 0x28d   : > { %2483 = vmatprep.mubr.bf16.mxu0 %v11008_v2 }
 0x294   : > { %8857 = vmatmul.mubr.msk.bf16.gmra.mrb[104].mxu0 %vm1331_vm0, %v11631_v3 }
 0x295   : > { %2493 = vmatprep.mubr.bf16.mxu0 %v11008_v2 }
 0x29c   : > { %8858 = vmatmul.mubr.msk.bf16.gmra.mrb[108].mxu0 %vm1331_vm0, %v11637_v4 }
 0x29d   : > { %2693 = vmatprep.mubr.bf16.mxu0 %v11008_v2 }
 0x2a4   : > { %8869 = vmatmul.mubr.msk.bf16.vlgmr.msra.gmra.mrb[0].mxu0 %vm1331_vm0, %v10917_v7  ;;  %v10472_v7 = vld [vmem:[%s13731_s3 + $0x1b0] ss:$8 sps:$4 sm:$0xff]  }
 0x2a5   : > { %3132 = vmatpush1.bf16.msra.mxu0 %v10415_v5  ;;  %2703 = vmatprep.mubr.bf16.mxu0 %v11008_v2  ;;  %v10471_v5 = vld [vmem:[%s13731_s3 + $0x1a4] ss:$8 sps:$4 sm:$0xff]  }
 0x2a6   : > { %3133 = vmatprep.subr.bf16.mxu0 %v10420_v6  ;;  %v10474_v6 = vld [vmem:[%s13731_s3 + $0x1b4] ss:$8 sps:$4 sm:$0xff]  }
 0x2a9   : > { %3134 = vmatpush1.bf16.msra.mxu0 %v10418_v8 }
 0x2ac   : > { %8870 = vmatmul.mubr.msk.bf16.gmra.mrb[4].mxu0 %vm1331_vm0, %v10918_v9 }
 0x2ad   : > { %2713 = vmatprep.mubr.bf16.mxu0 %v11008_v2 }
 0x2b4   : > { %8871 = vmatmul.mubr.msk.bf16.gmra.mrb[8].mxu0 %vm1331_vm0, %v10919_v11  ;;  %v10465_v11 = vld [vmem:[%s11268_s26 + $0x1e8] sm:$0xff]  }
 0x2b5   : > { %2723 = vmatprep.mubr.bf16.mxu0 %v11008_v2 }
 0x2bc   : > { %8872 = vmatmul.mubr.msk.bf16.gmra.mrb[12].mxu0 %vm1331_vm0, %v10920_v13 }
 0x2bd   : > { %2733 = vmatprep.mubr.bf16.mxu0 %v11008_v2 }
 0x2c4   : > { %8873 = vmatmul.mubr.msk.bf16.gmra.mrb[16].mxu0 %vm1331_vm0, %v10921_v15  ;;  %v10486_v15 = vld [vmem:[%s13731_s3 + $0x34] ss:$8 sps:$4 sm:$0xff]  }
 0x2c5   : > { %2743 = vmatprep.mubr.bf16.mxu0 %v11008_v2 }
 0x2cc   : > { %8874 = vmatmul.mubr.msk.bf16.gmra.mrb[20].mxu0 %vm1331_vm0, %v10922_v17 }
 0x2cd   : > { %2753 = vmatprep.mubr.bf16.mxu0 %v11008_v2 }
 0x2d4   : > { %8875 = vmatmul.mubr.msk.bf16.gmra.mrb[24].mxu0 %vm1331_vm0, %v10923_v19 }
 0x2d5   : > { %2763 = vmatprep.mubr.bf16.mxu0 %v11008_v2 }
 0x2dc   : > { %8876 = vmatmul.mubr.msk.bf16.gmra.mrb[28].mxu0 %vm1331_vm0, %v10924_v21 }
 0x2dd   : > { %2773 = vmatprep.mubr.bf16.mxu0 %v11008_v2 }
 0x2e4   : > { %8877 = vmatmul.mubr.msk.bf16.gmra.mrb[32].mxu0 %vm1331_vm0, %v10925_v30 }
 0x2e5   : > { %2783 = vmatprep.mubr.bf16.mxu0 %v11008_v2 }
 0x2ec   : > { %8878 = vmatmul.mubr.msk.bf16.gmra.mrb[36].mxu0 %vm1331_vm0, %v10926_v32 }
 0x2ed   : > { %2793 = vmatprep.mubr.bf16.mxu0 %v11008_v2 }
 0x2f4   : > { %8879 = vmatmul.mubr.msk.bf16.gmra.mrb[40].mxu0 %vm1331_vm0, %v10927_v33 }
 0x2f5   : > { %2803 = vmatprep.mubr.bf16.mxu0 %v11008_v2 }
 0x2fc   : > { %8880 = vmatmul.mubr.msk.bf16.gmra.mrb[44].mxu0 %vm1331_vm0, %v11325_v23  ;;  %v10429_v23 = vld [vmem:[%s11268_s26 + $0x1d0] sm:$0xff]  }
 0x2fd   : > { %2813 = vmatprep.mubr.bf16.mxu0 %v11008_v2 }
 0x304   : > { %8881 = vmatmul.mubr.msk.bf16.gmra.mrb[48].mxu0 %vm1331_vm0, %v11331_v24  ;;  %v10430_v24 = vld [vmem:[%s11268_s26 + $0x1d8] sm:$0xff]  }
 0x305   : > { %2823 = vmatprep.mubr.bf16.mxu0 %v11008_v2 }
 0x30c   : > { %8882 = vmatmul.mubr.msk.bf16.gmra.mrb[52].mxu0 %vm1331_vm0, %v11337_v25  ;;  %v10431_v25 = vld [vmem:[%s13731_s3 + $0xe0] ss:$8 sps:$4 sm:$0xff]  }
 0x30d   : > { %2833 = vmatprep.mubr.bf16.mxu0 %v11008_v2 }
 0x314   : > { %8883 = vmatmul.mubr.msk.bf16.gmra.mrb[56].mxu0 %vm1331_vm0, %v11343_v26  ;;  %v10433_v26 = vld [vmem:[%s13731_s3 + $0xe4] ss:$8 sps:$4 sm:$0xff]  }
 0x315   : > { %2843 = vmatprep.mubr.bf16.mxu0 %v11008_v2  ;;  %4199 = vmatprep.subr.bf16.mxu1 %v10433_v26  ;;  %v10487_v26 = vld [vmem:[%s13731_s3 + $0x40] ss:$8 sps:$4 sm:$0xff]  }
 0x316   : > { %4200 = vmatpush1.bf16.msra.mxu1 %v10431_v25 }
 0x31c   : > { %8884 = vmatmul.mubr.msk.bf16.gmra.mrb[60].mxu0 %vm1331_vm0, %v11349_v27  ;;  %v10434_v27 = vld [vmem:[%s13731_s3 + $0xf0] ss:$8 sps:$4 sm:$0xff]  }
 0x31d   : > { %2853 = vmatprep.mubr.bf16.mxu0 %v11008_v2 }
 0x324   : > { %8885 = vmatmul.mubr.msk.bf16.gmra.mrb[64].mxu0 %vm1331_vm0, %v11355_v28  ;;  %v10436_v28 = vld [vmem:[%s13731_s3 + $0xf4] ss:$8 sps:$4 sm:$0xff]  }
 0x325   : > { %2863 = vmatprep.mubr.bf16.mxu0 %v11008_v2  ;;  %4201 = vmatprep.subr.bf16.mxu1 %v10436_v28 }
 0x326   : > { %4202 = vmatpush1.bf16.msra.mxu1 %v10434_v27  ;;  %v10489_v27 = vld [vmem:[%s13731_s3 + $0x44] ss:$8 sps:$4 sm:$0xff]  }
 0x32c   : > { %8886 = vmatmul.mubr.msk.bf16.gmra.mrb[68].mxu0 %vm1331_vm0, %v11361_v29  ;;  %v10439_v29 = vld [vmem:[%s13731_s3 + $0x104] ss:$8 sps:$4 sm:$0xff]  }
 0x32d   : > { %2873 = vmatprep.mubr.bf16.mxu0 %v11008_v2  ;;  %4203 = vmatprep.subr.bf16.mxu1 %v10439_v29 }
 0x32e   : > { %4204 = vmatpush1.bf16.msra.mxu1 %v10437_v34 }
 0x32f   : > { %4205 = vmatprep.subr.bf16.mxu1 %v10442_v36 }
 0x332   : > { %4206 = vmatpush1.bf16.msra.mxu1 %v10440_v35 }
 0x334   : > { %8887 = vmatmul.mubr.msk.bf16.gmra.mrb[72].mxu0 %vm1331_vm0, %v11658_v10 }
 0x335   : > { %2883 = vmatprep.mubr.bf16.mxu0 %v11008_v2 }
 0x33c   : > { %8888 = vmatmul.mubr.msk.bf16.gmra.mrb[76].mxu0 %vm1331_vm0, %v10422_v12 }
 0x33d   : > { %2893 = vmatprep.mubr.bf16.mxu0 %v11008_v2 }
 0x344   : > { %8889 = vmatmul.mubr.msk.bf16.gmra.mrb[80].mxu0 %vm1331_vm0, %v10423_v14  ;;  %v10484_v14 = vld [vmem:[%s13731_s3 + $0x30] ss:$8 sps:$4 sm:$0xff]  }
 0x345   : > { %2903 = vmatprep.mubr.bf16.mxu0 %v11008_v2 }
 0x34c   : > { %8890 = vmatmul.mubr.msk.bf16.gmra.mrb[84].mxu0 %vm1331_vm0, %v10424_v16 }
 0x34d   : > { %2913 = vmatprep.mubr.bf16.mxu0 %v11008_v2 }
 0x354   : > { %8891 = vmatmul.mubr.msk.bf16.gmra.mrb[88].mxu0 %vm1331_vm0, %v10425_v18 }
 0x355   : > { %2923 = vmatprep.mubr.bf16.mxu0 %v11008_v2 }
 0x35c   : > { %8892 = vmatmul.mubr.msk.bf16.gmra.mrb[92].mxu0 %vm1331_vm0, %v10426_v20 }
 0x35d   : > { %2933 = vmatprep.mubr.bf16.mxu0 %v11008_v2 }
 0x364   : > { %8893 = vmatmul.mubr.msk.bf16.gmra.mrb[96].mxu0 %vm1331_vm0, %v10427_v22 }
 0x365   : > { %2943 = vmatprep.mubr.bf16.mxu0 %v11008_v2 }
 0x36c   : > { %8894 = vmatmul.mubr.msk.bf16.gmra.mrb[100].mxu0 %vm1331_vm0, %v10428_v31 }
 0x36d   : > { %2953 = vmatprep.mubr.bf16.mxu0 %v11008_v2 }
 0x374   : > { %8895 = vmatmul.mubr.msk.bf16.gmra.mrb[104].mxu0 %vm1331_vm0, %v10429_v23 }
 0x375   : > { %2963 = vmatprep.mubr.bf16.mxu0 %v11008_v2 }
 0x37c   : > { %8896 = vmatmul.mubr.msk.bf16.gmra.mrb[108].mxu0 %vm1331_vm0, %v10430_v24 }
 0x37d   : > { %3163 = vmatprep.mubr.bf16.mxu0 %v11008_v2 }
 0x384   : > { %8907 = vmatmul.mubr.msk.bf16.vlgmr.msra.gmra.mrb[0].mxu0 %vm1331_vm0, %v11394_v37  ;;  %v10445_v37 = vld [vmem:[%s13731_s3 + $0x124] ss:$8 sps:$4 sm:$0xff]  }
 0x385   : > { %3173 = vmatprep.mubr.bf16.mxu0 %v11008_v2  ;;  %4207 = vmatprep.subr.bf16.mxu1 %v10445_v37 }
 0x38c   : > { %8908 = vmatmul.mubr.msk.bf16.gmra.mrb[4].mxu0 %vm1331_vm0, %v11400_v38  ;;  %v10443_v38 = vld [vmem:[%s13731_s3 + $0x120] ss:$8 sps:$4 sm:$0xff]  }
 0x38d   : > { %3183 = vmatprep.mubr.bf16.mxu0 %v11008_v2  ;;  %4208 = vmatpush1.bf16.msra.mxu1 %v10443_v38 }
 0x394   : > { %8909 = vmatmul.mubr.msk.bf16.gmra.mrb[8].mxu0 %vm1331_vm0, %v11406_v39  ;;  %v10446_v39 = vld [vmem:[%s13731_s3 + $0x130] ss:$8 sps:$4 sm:$0xff]  }
 0x395   : > { %3193 = vmatprep.mubr.bf16.mxu0 %v11008_v2 }
 0x39c   : > { %8910 = vmatmul.mubr.msk.bf16.gmra.mrb[12].mxu0 %vm1331_vm0, %v11412_v40  ;;  %v10448_v40 = vld [vmem:[%s13731_s3 + $0x134] ss:$8 sps:$4 sm:$0xff]  }
 0x39d   : > { %3203 = vmatprep.mubr.bf16.mxu0 %v11008_v2  ;;  %4209 = vmatprep.subr.bf16.mxu1 %v10448_v40 }
 0x39e   : > { %4210 = vmatpush1.bf16.msra.mxu1 %v10446_v39 }
 0x3a4   : > { %8911 = vmatmul.mubr.msk.bf16.gmra.mrb[16].mxu0 %vm1331_vm0, %v11418_v41  ;;  %v10451_v41 = vld [vmem:[%s13731_s3 + $0x144] ss:$8 sps:$4 sm:$0xff]  }
 0x3a5   : > { %3213 = vmatprep.mubr.bf16.mxu0 %v11008_v2  ;;  %4211 = vmatprep.subr.bf16.mxu1 %v10451_v41 }
 0x3ac   : > { %8912 = vmatmul.mubr.msk.bf16.gmra.mrb[20].mxu0 %vm1331_vm0, %v11424_v42  ;;  %v10449_v42 = vld [vmem:[%s13731_s3 + $0x140] ss:$8 sps:$4 sm:$0xff]  }
 0x3ad   : > { %3223 = vmatprep.mubr.bf16.mxu0 %v11008_v2  ;;  %4212 = vmatpush1.bf16.msra.mxu1 %v10449_v42 }
 0x3b4   : > { %8913 = vmatmul.mubr.msk.bf16.gmra.mrb[24].mxu0 %vm1331_vm0, %v11430_v43  ;;  %v10452_v43 = vld [vmem:[%s13731_s3 + $0x150] ss:$8 sps:$4 sm:$0xff]  }
 0x3b5   : > { %3233 = vmatprep.mubr.bf16.mxu0 %v11008_v2 }
 0x3bc   : > { %8914 = vmatmul.mubr.msk.bf16.gmra.mrb[28].mxu0 %vm1331_vm0, %v11436_v44  ;;  %v10454_v44 = vld [vmem:[%s13731_s3 + $0x154] ss:$8 sps:$4 sm:$0xff]  }
 0x3bd   : > { %3243 = vmatprep.mubr.bf16.mxu0 %v11008_v2  ;;  %4213 = vmatprep.subr.bf16.mxu1 %v10454_v44 }
 0x3be   : > { %4214 = vmatpush1.bf16.msra.mxu1 %v10452_v43 }
 0x3c4   : > { %8915 = vmatmul.mubr.msk.bf16.gmra.mrb[32].mxu0 %vm1331_vm0, %v11442_v45  ;;  %v10457_v45 = vld [vmem:[%s13731_s3 + $0x164] ss:$8 sps:$4 sm:$0xff]  }
 0x3c5   : > { %3253 = vmatprep.mubr.bf16.mxu0 %v11008_v2  ;;  %4215 = vmatprep.subr.bf16.mxu1 %v10457_v45 }
 0x3c6   : > { %4216 = vmatpush1.bf16.msra.mxu1 %v10455_v46  ;;  %v10490_v46 = vld [vmem:[%s13731_s3 + $0x50] ss:$8 sps:$4 sm:$0xff]  }
 0x3c7   : > { %4217 = vmatprep.subr.bf16.mxu1 %v10461_v62 }
 0x3cc   : > { %8916 = vmatmul.mubr.msk.bf16.gmra.mrb[36].mxu0 %vm1331_vm0, %v11451_v47  ;;  %v10459_v47 = vld [vmem:[%s13731_s3 + $0x170] ss:$8 sps:$4 sm:$0xff]  }
 0x3cd   : > { %3263 = vmatprep.mubr.bf16.mxu0 %v11008_v2  ;;  %4218 = vmatpush1.bf16.msra.mxu1 %v10459_v47  ;;  %v10492_v47 = vld [vmem:[%s13731_s3 + $0x54] ss:$8 sps:$4 sm:$0xff]  }
 0x3ce   : > { %4219 = vmatprep.subr.bf16.mxu1 %v10464_v63 }
 0x3d4   : > { %8917 = vmatmul.mubr.msk.bf16.gmra.mrb[40].mxu0 %vm1331_vm0, %v11457_v48  ;;  %v10462_v48 = vld [vmem:[%s13731_s3 + $0x180] ss:$8 sps:$4 sm:$0xff]  }
 0x3d5   : > { %3273 = vmatprep.mubr.bf16.mxu0 %v11008_v2  ;;  %4220 = vmatpush1.bf16.msra.mxu1 %v10462_v48 }
 0x3d6   : > { %4221 = vmatprep.subr.bf16.mxu1 %v10468_v0 }
 0x3d9   : > { %4222 = vmatpush1.bf16.msra.mxu1 %v10466_v1 }
 0x3da   : > { %4223 = vmatprep.subr.bf16.mxu1 %v10471_v5 }
 0x3dc   : > { %8918 = vmatmul.mubr.msk.bf16.gmra.mrb[44].mxu0 %vm1331_vm0, %v11463_v49  ;;  %v10469_v49 = vld [vmem:[%s13731_s3 + $0x1a0] ss:$8 sps:$4 sm:$0xff]  }
 0x3dd   : > { %3283 = vmatprep.mubr.bf16.mxu0 %v11008_v2  ;;  %4224 = vmatpush1.bf16.msra.mxu1 %v10469_v49 }
 0x3de   : > { %4225 = vmatprep.subr.bf16.mxu1 %v10474_v6 }
 0x3e1   : > { %4226 = vmatpush1.bf16.msra.mxu1 %v10472_v7 }
 0x3e4   : > { %8919 = vmatmul.mubr.msk.bf16.gmra.mrb[48].mxu0 %vm1331_vm0, %v11469_v50  ;;  %4232 = vmatmul.mubr.bf16.vlgmr.msra.gmra.mrb[32].mxu1 %v11008_v2  ;;  %v10475_v50 = vld [vmem:[%s13731_s3] ss:$8 sps:$4 sm:$0xff]  }
 0x3e5   : > { %3293 = vmatprep.mubr.bf16.mxu0 %v11008_v2  ;;  %4241 = vmatprep.mubr.bf16.mxu1 %v11008_v2 }
 0x3ec   : > { %8920 = vmatmul.mubr.msk.bf16.gmra.mrb[52].mxu0 %vm1331_vm0, %v11475_v51  ;;  %4242 = vmatmul.mubr.bf16.gmra.mrb[36].mxu1 %v11008_v2  ;;  %v10477_v51 = vld [vmem:[%s13731_s3 + $0x4] ss:$8 sps:$4 sm:$0xff]  }
 0x3ed   : > { %3303 = vmatprep.mubr.bf16.mxu0 %v11008_v2  ;;  %4548 = vmatprep.subr.bf16.mxu1 %v10477_v51 }
 0x3ee   : > { %4549 = vmatpush1.bf16.msra.mxu1 %v10475_v50 }
 0x3f4   : > { %8921 = vmatmul.mubr.msk.bf16.gmra.mrb[56].mxu0 %vm1331_vm0, %v11481_v52  ;;  %v3558_v52 = vlaneseq }
 0x3f5   : > { %3313 = vmatprep.mubr.bf16.mxu0 %v11008_v2 }
 0x3fc   : > { %8922 = vmatmul.mubr.msk.bf16.gmra.mrb[60].mxu0 %vm1331_vm0, %v11487_v53  ;;  %v10478_v53 = vld [vmem:[%s13731_s3 + $0x10] ss:$8 sps:$4 sm:$0xff]  }
 0x3fd   : > { %3323 = vmatprep.mubr.bf16.mxu0 %v11008_v2 }
 0x404   : > { %8923 = vmatmul.mubr.msk.bf16.gmra.mrb[64].mxu0 %vm1331_vm0, %v11493_v54  ;;  %v10480_v54 = vld [vmem:[%s13731_s3 + $0x14] ss:$8 sps:$4 sm:$0xff]  }
 0x405   : > { %3333 = vmatprep.mubr.bf16.mxu0 %v11008_v2  ;;  %4550 = vmatprep.subr.bf16.mxu1 %v10480_v54 }
 0x406   : > { %4551 = vmatpush1.bf16.msra.mxu1 %v10478_v53 }
 0x40c   : > { %8924 = vmatmul.mubr.msk.bf16.gmra.mrb[68].mxu0 %vm1331_vm0, %v11499_v55  ;;  %v3559_v55 = vshrl.u32 %v3558_v52, 7 }
 0x40d   : > { %3343 = vmatprep.mubr.bf16.mxu0 %v11008_v2 }
 0x414   : > { %8925 = vmatmul.mubr.msk.bf16.gmra.mrb[72].mxu0 %vm1331_vm0, %v11505_v56  ;;  %v10458_v56 = vld [vmem:[%s11268_s26 + $0x1e0] sm:$0xff]  }
 0x415   : > { %3353 = vmatprep.mubr.bf16.mxu0 %v11008_v2 }
 0x41c   : > { %8926 = vmatmul.mubr.msk.bf16.gmra.mrb[76].mxu0 %vm1331_vm0, %v11511_v57  ;;  %v3556_v57 = vld [vmem:[%s13730_s2] sm:$0x3] }
 0x41d   : > { %3363 = vmatprep.mubr.bf16.mxu0 %v11008_v2 }
 0x424   : > { %8927 = vmatmul.mubr.msk.bf16.gmra.mrb[80].mxu0 %vm1331_vm0, %v11517_v58  ;;  %v11936_v58 = vsub.s32 0, %v3559_v55 }
 0x425   : > { %3373 = vmatprep.mubr.bf16.mxu0 %v11008_v2 }
 0x42c   : > { %8928 = vmatmul.mubr.msk.bf16.gmra.mrb[84].mxu0 %vm1331_vm0, %v11523_v59  ;;  %v11938_v59 = vsub.s32 1, %v3559_v55  ;;  %v10493_v55 = vld [vmem:[%s13731_s3 + $0x60] ss:$8 sps:$4 sm:$0xff]  }
 0x42d   : > { %3383 = vmatprep.mubr.bf16.mxu0 %v11008_v2 }
 0x434   : > { %8929 = vmatmul.mubr.msk.bf16.gmra.mrb[88].mxu0 %vm1331_vm0, %v11529_v60  ;;  %v10481_v60 = vld [vmem:[%s13731_s3 + $0x20] ss:$8 sps:$4 sm:$0xff]  }
 0x435   : > { %3393 = vmatprep.mubr.bf16.mxu0 %v11008_v2 }
 0x43c   : > { %8930 = vmatmul.mubr.msk.bf16.gmra.mrb[92].mxu0 %vm1331_vm0, %v11535_v61  ;;  %v10483_v61 = vld [vmem:[%s13731_s3 + $0x24] ss:$8 sps:$4 sm:$0xff]  }
 0x43d   : > { %3403 = vmatprep.mubr.bf16.mxu0 %v11008_v2  ;;  %4552 = vmatprep.subr.bf16.mxu1 %v10483_v61 }
 0x43e   : > { %4553 = vmatpush1.bf16.msra.mxu1 %v10481_v60 }
 0x43f   : > { %4554 = vmatprep.subr.bf16.mxu1 %v10486_v15 }
 0x442   : > { %4555 = vmatpush1.bf16.msra.mxu1 %v10484_v14 }
 0x443   : > { %4556 = vmatprep.subr.bf16.mxu1 %v10489_v27 }
 0x444   : > { %8931 = vmatmul.mubr.msk.bf16.gmra.mrb[96].mxu0 %vm1331_vm0, %v11631_v3  ;;  %v11948_v3 = vrot.slane %v3556_v57, %v11936_v58 }
 0x445   : > { %3413 = vmatprep.mubr.bf16.mxu0 %v11008_v2 }
 0x446   : > { %4557 = vmatpush1.bf16.msra.mxu1 %v10487_v26 }
 0x447   : > { %4558 = vmatprep.subr.bf16.mxu1 %v10492_v47 }
 0x44a   : > { %4559 = vmatpush1.bf16.msra.mxu1 %v10490_v46 }
 0x44c   : > { %8932 = vmatmul.mubr.msk.bf16.gmra.mrb[100].mxu0 %vm1331_vm0, %v11637_v4  ;;  %v11951_v4 = vrot.slane %v3556_v57, %v11938_v59 }
 0x44d   : > { %3423 = vmatprep.mubr.bf16.mxu0 %v11008_v2 }
 0x454   : > { %8933 = vmatmul.mubr.msk.bf16.gmra.mrb[104].mxu0 %vm1331_vm0, %v10458_v56  ;;  %v10495_v56 = vld [vmem:[%s13731_s3 + $0x64] ss:$8 sps:$4 sm:$0xff]  }
 0x455   : > { %3433 = vmatprep.mubr.bf16.mxu0 %v11008_v2  ;;  %4560 = vmatprep.subr.bf16.mxu1 %v10495_v56 }
 0x456   : > { %4561 = vmatpush1.bf16.msra.mxu1 %v10493_v55 }
 0x457   : > { %v3165_v8 = vpop.f32.mrb[0].mxu0 }
 0x458   : > { %v3568_v9 = vadd.f32 %v11948_v3, %v3165_v8  ;;  %v3167_v10 = vpop.f32.mrb[1].mxu0 }
 0x459   : > { %v3569_v12 = vadd.f32 %v11951_v4, %v3167_v10  ;;  %v3169_v13 = vpop.f32.mrb[2].mxu0  ;;  %v11999_v10 = vpop.f32.mrb[0].mxu1 }
 0x45a   : > { %v3570_v16 = vadd.f32 %v11948_v3, %v3169_v13  ;;  %v3171_v17 = vpop.f32.mrb[3].mxu0  ;;  %v3680_v19 = vmax.f32 %v3568_v9, 0.0  ;;  %v12001_v13 = vpop.f32.mrb[1].mxu1 }
 0x45b   : > { %v3571_v18 = vadd.f32 %v11951_v4, %v3171_v17  ;;  %v3681_v21 = vmax.f32 %v3569_v12, 0.0  ;;  %v12003_v15 = vpop.f32.mrb[2].mxu1 }
 0x45c   : > { %v3682_v20 = vmax.f32 %v3570_v16, 0.0  ;;  %8934 = vmatmul.mubr.msk.bf16.gmra.mrb[108].mxu0 %vm1331_vm0, %v10465_v11 }
 0x45d   : > { %v3683_v22 = vmax.f32 %v3571_v18, 0.0  ;;  %v12005_v18 = vpop.f32.mrb[3].mxu1 }
 0x45e   : > { %v3792_v30 = vpack.c.bf16 %v3682_v20, %v3680_v19  ;;  %v12019_v27 = vpop.f32.mrb[4].mxu1 }
 0x45f   : > { %v3793_v31 = vpack.c.bf16 %v3683_v22, %v3681_v21  ;;  %v3175_v32 = vpop.f32.mrb[4].mxu0 }
 0x460   : > { %3848 = vst [vmem:[#allocation2] sm:$0xff] %v3792_v30  ;;  %v3572_v33 = vadd.f32 %v11948_v3, %v3175_v32  ;;  %v3177_v23 = vpop.f32.mrb[5].mxu0  ;;  %v10498_v32 = vld [vmem:[%s13731_s3 + $0x74] ss:$8 sps:$4 sm:$0xff]  }
 0x461   : > { %3850 = vst.msk [vmem:[#allocation2 + $0x8] sm:$0xff] %vm3849_vm1, %v3793_v31  ;;  %v3573_v24 = vadd.f32 %v11951_v4, %v3177_v23  ;;  %v3179_v25 = vpop.f32.mrb[6].mxu0  ;;  %v10496_v31 = vld [vmem:[%s13731_s3 + $0x70] ss:$8 sps:$4 sm:$0xff]   ;;  %4562 = vmatprep.subr.bf16.mxu1 %v10498_v32 }
 0x462   : > { %v3574_v28 = vadd.f32 %v11948_v3, %v3179_v25  ;;  %v3181_v29 = vpop.f32.mrb[7].mxu0  ;;  %v3684_v35 = vmax.f32 %v3572_v33, 0.0  ;;  %4563 = vmatpush1.bf16.msra.mxu1 %v10496_v31 }
 0x463   : > { %v3575_v34 = vadd.f32 %v11951_v4, %v3181_v29  ;;  %v3685_v37 = vmax.f32 %v3573_v24, 0.0 }
 0x464   : > { %v3686_v36 = vmax.f32 %v3574_v28, 0.0 }
 0x465   : > { %v3687_v38 = vmax.f32 %v3575_v34, 0.0  ;;  %v12021_v34 = vpop.f32.mrb[5].mxu1 }
 0x466   : > { %v3794_v39 = vpack.c.bf16 %v3686_v36, %v3684_v35  ;;  %v12023_v36 = vpop.f32.mrb[6].mxu1 }
 0x467   : > { %v3795_v40 = vpack.c.bf16 %v3687_v38, %v3685_v37  ;;  %v3185_v41 = vpop.f32.mrb[8].mxu0 }
 0x468   : > { %3851 = vst [vmem:[#allocation2 + $0x10] sm:$0xff] %v3794_v39  ;;  %v3576_v42 = vadd.f32 %v11948_v3, %v3185_v41  ;;  %v3187_v43 = vpop.f32.mrb[9].mxu0  ;;  %v12025_v39 = vpop.f32.mrb[7].mxu1 }
 0x469   : > { %3852 = vst.msk [vmem:[#allocation2 + $0x18] sm:$0xff] %vm3849_vm1, %v3795_v40  ;;  %v3577_v44 = vadd.f32 %v11951_v4, %v3187_v43  ;;  %v3189_v45 = vpop.f32.mrb[10].mxu0 }
 0x46a   : > { %v3578_v62 = vadd.f32 %v11948_v3, %v3189_v45  ;;  %v3191_v63 = vpop.f32.mrb[11].mxu0  ;;  %v3688_v0 = vmax.f32 %v3576_v42, 0.0 }
 0x46b   : > { %v3579_v48 = vadd.f32 %v11951_v4, %v3191_v63  ;;  %v3689_v5 = vmax.f32 %v3577_v44, 0.0  ;;  %v10501_v63 = vld [vmem:[%s13731_s3 + $0x84] ss:$8 sps:$4 sm:$0xff]  }
 0x46c   : > { %v3690_v1 = vmax.f32 %v3578_v62, 0.0  ;;  %v10499_v62 = vld [vmem:[%s13731_s3 + $0x80] ss:$8 sps:$4 sm:$0xff]   ;;  %4564 = vmatprep.subr.bf16.mxu1 %v10501_v63 }
 0x46d   : > { %v3691_v49 = vmax.f32 %v3579_v48, 0.0  ;;  %4565 = vmatpush1.bf16.msra.mxu1 %v10499_v62 }
 0x46e   : > { %v3796_v6 = vpack.c.bf16 %v3690_v1, %v3688_v0  ;;  %v12039_v1 = vpop.f32.mrb[8].mxu1 }
 0x46f   : > { %v3797_v7 = vpack.c.bf16 %v3691_v49, %v3689_v5  ;;  %v3195_v50 = vpop.f32.mrb[12].mxu0 }
 0x470   : > { %3853 = vst [vmem:[#allocation2 + $0x20] sm:$0xff] %v3796_v6  ;;  %v3580_v51 = vadd.f32 %v11948_v3, %v3195_v50  ;;  %v3197_v52 = vpop.f32.mrb[13].mxu0 }
 0x471   : > { %3854 = vst.msk [vmem:[#allocation2 + $0x28] sm:$0xff] %vm3849_vm1, %v3797_v7  ;;  %v3581_v53 = vadd.f32 %v11951_v4, %v3197_v52  ;;  %v3199_v54 = vpop.f32.mrb[14].mxu0 }
 0x472   : > { %v3582_v57 = vadd.f32 %v11948_v3, %v3199_v54  ;;  %v3201_v60 = vpop.f32.mrb[15].mxu0  ;;  %v3692_v8 = vmax.f32 %v3580_v51, 0.0 }
 0x473   : > { %v3583_v61 = vadd.f32 %v11951_v4, %v3201_v60  ;;  %v3693_v11 = vmax.f32 %v3581_v53, 0.0 }
 0x474   : > { %v3694_v9 = vmax.f32 %v3582_v57, 0.0 }
 0x475   : > { %v3695_v12 = vmax.f32 %v3583_v61, 0.0 }
 0x476   : > { %v3798_v14 = vpack.c.bf16 %v3694_v9, %v3692_v8  ;;  %v10502_v9 = vld [vmem:[%s13731_s3 + $0x90] ss:$8 sps:$4 sm:$0xff]  }
 0x477   : > { %v3799_v16 = vpack.c.bf16 %v3695_v12, %v3693_v11  ;;  %v3205_v17 = vpop.f32.mrb[16].mxu0  ;;  %v10504_v11 = vld [vmem:[%s13731_s3 + $0x94] ss:$8 sps:$4 sm:$0xff]  }
 0x478   : > { %3855 = vst [vmem:[#allocation2 + $0x30] sm:$0xff] %v3798_v14  ;;  %v3584_v19 = vadd.f32 %v11948_v3, %v3205_v17  ;;  %v3207_v20 = vpop.f32.mrb[17].mxu0  ;;  %v3964_v21 = vld [vmem:[#allocation2 + $0x28] sm:$0xff]  ;;  %4566 = vmatprep.subr.bf16.mxu1 %v10504_v11 }
 0x479   : > { %3856 = vst.msk [vmem:[#allocation2 + $0x38] sm:$0xff] %vm3849_vm1, %v3799_v16  ;;  %v3585_v22 = vadd.f32 %v11951_v4, %v3207_v20  ;;  %v3209_v30 = vpop.f32.mrb[18].mxu0  ;;  %8963 = vmatprep.mubr.msk.bf16.mxu1 %vm3849_vm1, %v3964_v21  ;;  %4567 = vmatpush1.bf16.msra.mxu1 %v10502_v9 }
 0x47a   : > { %v3586_v33 = vadd.f32 %v11948_v3, %v3209_v30  ;;  %v3211_v23 = vpop.f32.mrb[19].mxu0  ;;  %4252 = vmatmul.mubr.bf16.gmra.mrb[40].mxu1 %v3796_v6  ;;  %v3696_v25 = vmax.f32 %v3584_v19, 0.0  ;;  %v12041_v6 = vpop.f32.mrb[9].mxu1 }
 0x47b   : > { %v3587_v24 = vadd.f32 %v11951_v4, %v3211_v23  ;;  %v3697_v28 = vmax.f32 %v3585_v22, 0.0  ;;  %v12043_v50 = vpop.f32.mrb[10].mxu1 }
 0x47c   : > { %v3698_v26 = vmax.f32 %v3586_v33, 0.0  ;;  %v12045_v53 = vpop.f32.mrb[11].mxu1 }
 0x47d   : > { %v3699_v29 = vmax.f32 %v3587_v24, 0.0  ;;  %v12058_v16 = vpop.f32.mrb[12].mxu1 }
 0x47e   : > { %v3800_v35 = vpack.c.bf16 %v3698_v26, %v3696_v25  ;;  %v12060_v20 = vpop.f32.mrb[13].mxu1 }
 0x47f   : > { %v3801_v37 = vpack.c.bf16 %v3699_v29, %v3697_v28  ;;  %v3215_v38 = vpop.f32.mrb[20].mxu0  ;;  %v12062_v22 = vpop.f32.mrb[14].mxu1 }
 0x480   : > { %3857 = vst [vmem:[#allocation2 + $0x40] sm:$0xff] %v3800_v35  ;;  %v3588_v40 = vadd.f32 %v11948_v3, %v3215_v38  ;;  %v3217_v41 = vpop.f32.mrb[21].mxu0  ;;  %v3966_v42 = vld [vmem:[#allocation2 + $0x38] sm:$0xff]  ;;  %v12064_v32 = vpop.f32.mrb[15].mxu1  ;;  %v10505_v35 = vld [vmem:[%s13731_s3 + $0xa0] ss:$8 sps:$4 sm:$0xff]  }
 0x481   : > { %3858 = vst.msk [vmem:[#allocation2 + $0x48] sm:$0xff] %vm3849_vm1, %v3801_v37  ;;  %v3589_v43 = vadd.f32 %v11951_v4, %v3217_v41  ;;  %v3219_v44 = vpop.f32.mrb[22].mxu0  ;;  %8964 = vmatprep.mubr.msk.bf16.mxu1 %vm3849_vm1, %v3966_v42  ;;  %v10507_v37 = vld [vmem:[%s13731_s3 + $0xa4] ss:$8 sps:$4 sm:$0xff]  }
 0x482   : > { %v3590_v45 = vadd.f32 %v11948_v3, %v3219_v44  ;;  %v3221_v46 = vpop.f32.mrb[23].mxu0  ;;  %4262 = vmatmul.mubr.bf16.gmra.mrb[44].mxu1 %v3798_v14  ;;  %v3700_v48 = vmax.f32 %v3588_v40, 0.0  ;;  %4568 = vmatprep.subr.bf16.mxu1 %v10507_v37 }
 0x483   : > { %v3591_v47 = vadd.f32 %v11951_v4, %v3221_v46  ;;  %v3701_v5 = vmax.f32 %v3589_v43, 0.0  ;;  %4569 = vmatpush1.bf16.msra.mxu1 %v10505_v35  ;;  %v12077_v46 = vpop.f32.mrb[16].mxu1  ;;  %v10511_v35 = vld [vmem:[%s13731_s3 + $0xc0] ss:$8 sps:$4 sm:$0xff]  }
 0x484   : > { %v3702_v0 = vmax.f32 %v3590_v45, 0.0 }
 0x485   : > { %v3703_v49 = vmax.f32 %v3591_v47, 0.0 }
 0x486   : > { %v3802_v7 = vpack.c.bf16 %v3702_v0, %v3700_v48  ;;  %v12080_v48 = vpop.f32.mrb[17].mxu1 }
 0x487   : > { %v3803_v51 = vpack.c.bf16 %v3703_v49, %v3701_v5  ;;  %v3225_v52 = vpop.f32.mrb[24].mxu0  ;;  %v12085_v49 = vpop.f32.mrb[18].mxu1 }
 0x488   : > { %3859 = vst [vmem:[#allocation2 + $0x50] sm:$0xff] %v3802_v7  ;;  %v3592_v54 = vadd.f32 %v11948_v3, %v3225_v52  ;;  %v3227_v55 = vpop.f32.mrb[25].mxu0  ;;  %v12088_v52 = vpop.f32.mrb[19].mxu1 }
 0x489   : > { %3860 = vst.msk [vmem:[#allocation2 + $0x58] sm:$0xff] %vm3849_vm1, %v3803_v51  ;;  %v3593_v56 = vadd.f32 %v11951_v4, %v3227_v55  ;;  %v3229_v57 = vpop.f32.mrb[26].mxu0  ;;  %v10508_v55 = vld [vmem:[%s13731_s3 + $0xb0] ss:$8 sps:$4 sm:$0xff]  }
 0x48a   : > { %v3594_v60 = vadd.f32 %v11948_v3, %v3229_v57  ;;  %v3231_v61 = vpop.f32.mrb[27].mxu0  ;;  %v3704_v12 = vmax.f32 %v3592_v54, 0.0 }
 0x48b   : > { %v3595_v8 = vadd.f32 %v11951_v4, %v3231_v61  ;;  %v3705_v17 = vmax.f32 %v3593_v56, 0.0  ;;  %v10510_v56 = vld [vmem:[%s13731_s3 + $0xb4] ss:$8 sps:$4 sm:$0xff]  }
 0x48c   : > { %v3706_v14 = vmax.f32 %v3594_v60, 0.0  ;;  %4570 = vmatprep.subr.bf16.mxu1 %v10510_v56 }
 0x48d   : > { %v3707_v19 = vmax.f32 %v3595_v8, 0.0  ;;  %4571 = vmatpush1.bf16.msra.mxu1 %v10508_v55 }
 0x48e   : > { %v3804_v21 = vpack.c.bf16 %v3706_v14, %v3704_v12  ;;  %v12097_v14 = vpop.f32.mrb[20].mxu1 }
 0x48f   : > { %v3805_v30 = vpack.c.bf16 %v3707_v19, %v3705_v17  ;;  %v3235_v31 = vpop.f32.mrb[28].mxu0 }
 0x490   : > { %3861 = vst [vmem:[#allocation2 + $0x60] sm:$0xff] %v3804_v21  ;;  %v3596_v33 = vadd.f32 %v11948_v3, %v3235_v31  ;;  %v3237_v23 = vpop.f32.mrb[29].mxu0 }
 0x491   : > { %3862 = vst.msk [vmem:[#allocation2 + $0x68] sm:$0xff] %vm3849_vm1, %v3805_v30  ;;  %v3597_v24 = vadd.f32 %v11951_v4, %v3237_v23  ;;  %v3239_v25 = vpop.f32.mrb[30].mxu0  ;;  %v12100_v30 = vpop.f32.mrb[21].mxu1 }
 0x492   : > { %v3598_v26 = vadd.f32 %v11948_v3, %v3239_v25  ;;  %v3241_v28 = vpop.f32.mrb[31].mxu0  ;;  %v3708_v38 = vmax.f32 %v3596_v33, 0.0  ;;  %v12105_v23 = vpop.f32.mrb[22].mxu1 }
 0x493   : > { %v3599_v29 = vadd.f32 %v11951_v4, %v3241_v28  ;;  %v3709_v41 = vmax.f32 %v3597_v24, 0.0  ;;  %v12111_v28 = vpop.f32.mrb[23].mxu1 }
 0x494   : > { %v3710_v40 = vmax.f32 %v3598_v26, 0.0  ;;  %v10513_v26 = vld [vmem:[%s13731_s3 + $0xc4] ss:$8 sps:$4 sm:$0xff]  }
 0x495   : > { %v3711_v42 = vmax.f32 %v3599_v29, 0.0  ;;  %4572 = vmatprep.subr.bf16.mxu1 %v10513_v26 }
 0x496   : > { %v3806_v43 = vpack.c.bf16 %v3710_v40, %v3708_v38  ;;  %4573 = vmatpush1.bf16.msra.mxu1 %v10511_v35 }
 0x497   : > { %v3807_v44 = vpack.c.bf16 %v3711_v42, %v3709_v41  ;;  %v3245_v45 = vpop.f32.mrb[32].mxu0 }
 0x498   : > { %3863 = vst [vmem:[#allocation2 + $0x70] sm:$0xff] %v3806_v43  ;;  %v3600_v47 = vadd.f32 %v11948_v3, %v3245_v45  ;;  %v3247_v62 = vpop.f32.mrb[33].mxu0  ;;  %v3969_v63 = vld [vmem:[#allocation2 + $0x68] sm:$0xff] }
 0x499   : > { %3864 = vst.msk [vmem:[#allocation2 + $0x78] sm:$0xff] %vm3849_vm1, %v3807_v44  ;;  %v3601_v0 = vadd.f32 %v11951_v4, %v3247_v62  ;;  %v3249_v5 = vpop.f32.mrb[34].mxu0  ;;  %8965 = vmatprep.mubr.msk.bf16.mxu1 %vm3849_vm1, %v3969_v63  ;;  %v12123_v62 = vpop.f32.mrb[24].mxu1 }
 0x49a   : > { %v3602_v7 = vadd.f32 %v11948_v3, %v3249_v5  ;;  %v3251_v51 = vpop.f32.mrb[35].mxu0  ;;  %4272 = vmatmul.mubr.bf16.gmra.mrb[48].mxu1 %v3804_v21  ;;  %v3712_v57 = vmax.f32 %v3600_v47, 0.0  ;;  %v10514_v47 = vld [vmem:[%s13731_s3 + $0xd0] ss:$8 sps:$4 sm:$0xff]   ;;  %v12126_v5 = vpop.f32.mrb[25].mxu1 }
 0x49b   : > { %v3603_v54 = vadd.f32 %v11951_v4, %v3251_v51  ;;  %v3713_v61 = vmax.f32 %v3601_v0, 0.0 }
 0x49c   : > { %v3714_v60 = vmax.f32 %v3602_v7, 0.0 }
 0x49d   : > { %v3715_v8 = vmax.f32 %v3603_v54, 0.0  ;;  %v12130_v54 = vpop.f32.mrb[26].mxu1 }
 0x49e   : > { %v3808_v9 = vpack.c.bf16 %v3714_v60, %v3712_v57  ;;  %v12133_v57 = vpop.f32.mrb[27].mxu1 }
 0x49f   : > { %v3809_v11 = vpack.c.bf16 %v3715_v8, %v3713_v61  ;;  %v3255_v12 = vpop.f32.mrb[36].mxu0 }
 0x4a0   : > { %3865 = vst [vmem:[#allocation2 + $0x80] sm:$0xff] %v3808_v9  ;;  %v3604_v17 = vadd.f32 %v11948_v3, %v3255_v12  ;;  %v3257_v19 = vpop.f32.mrb[37].mxu0  ;;  %v3971_v21 = vld [vmem:[#allocation2 + $0x78] sm:$0xff] }
 0x4a1   : > { %3866 = vst.msk [vmem:[#allocation2 + $0x88] sm:$0xff] %vm3849_vm1, %v3809_v11  ;;  %v3605_v31 = vadd.f32 %v11951_v4, %v3257_v19  ;;  %v3259_v33 = vpop.f32.mrb[38].mxu0  ;;  %8966 = vmatprep.mubr.msk.bf16.mxu1 %vm3849_vm1, %v3971_v21  ;;  %v12136_v21 = vpop.f32.mrb[28].mxu1 }
 0x4a2   : > { %v3606_v24 = vadd.f32 %v11948_v3, %v3259_v33  ;;  %v3261_v25 = vpop.f32.mrb[39].mxu0  ;;  %4282 = vmatmul.mubr.bf16.gmra.mrb[52].mxu1 %v3806_v43  ;;  %v3716_v37 = vmax.f32 %v3604_v17, 0.0  ;;  %v10516_v43 = vld [vmem:[%s13731_s3 + $0xd4] ss:$8 sps:$4 sm:$0xff]  }
 0x4a3   : > { %v3607_v29 = vadd.f32 %v11951_v4, %v3261_v25  ;;  %v3717_v40 = vmax.f32 %v3605_v31, 0.0  ;;  %4574 = vmatprep.subr.bf16.mxu1 %v10516_v43 }
 0x4a4   : > { %v3718_v38 = vmax.f32 %v3606_v24, 0.0  ;;  %4575 = vmatpush1.bf16.msra.mxu1 %v10514_v47  ;;  %v12139_v24 = vpop.f32.mrb[29].mxu1 }
 0x4a5   : > { %v3719_v41 = vmax.f32 %v3607_v29, 0.0  ;;  %v12143_v29 = vpop.f32.mrb[30].mxu1 }
 0x4a6   : > { %v3810_v42 = vpack.c.bf16 %v3718_v38, %v3716_v37  ;;  %v12146_v38 = vpop.f32.mrb[31].mxu1 }
 0x4a7   : > { %v3811_v44 = vpack.c.bf16 %v3719_v41, %v3717_v40  ;;  %v3265_v45 = vpop.f32.mrb[40].mxu0  ;;  %v10519_v41 = vld [vmem:[%s13731_s3 + $0x1c4] ss:$8 sps:$4 sm:$0xff]  }
 0x4a8   : > { %3867 = vst [vmem:[#allocation2 + $0x90] sm:$0xff] %v3810_v42  ;;  %v3608_v63 = vadd.f32 %v11948_v3, %v3265_v45  ;;  %v3267_v0 = vpop.f32.mrb[41].mxu0  ;;  %4900 = vmatprep.subr.bf16.mxu1 %v10519_v41 }
 0x4a9   : > { %3868 = vst.msk [vmem:[#allocation2 + $0x98] sm:$0xff] %vm3849_vm1, %v3811_v44  ;;  %v3609_v7 = vadd.f32 %v11951_v4, %v3267_v0  ;;  %v3269_v51 = vpop.f32.mrb[42].mxu0 }
 0x4aa   : > { %v3610_v55 = vadd.f32 %v11948_v3, %v3269_v51  ;;  %v3271_v56 = vpop.f32.mrb[43].mxu0  ;;  %v3720_v61 = vmax.f32 %v3608_v63, 0.0 }
 0x4ab   : > { %v3611_v60 = vadd.f32 %v11951_v4, %v3271_v56  ;;  %v3721_v9 = vmax.f32 %v3609_v7, 0.0 }
 0x4ac   : > { %v3722_v8 = vmax.f32 %v3610_v55, 0.0 }
 0x4ad   : > { %v3723_v11 = vmax.f32 %v3611_v60, 0.0 }
 0x4ae   : > { %v3812_v12 = vpack.c.bf16 %v3722_v8, %v3720_v61 }
 0x4af   : > { %v3813_v17 = vpack.c.bf16 %v3723_v11, %v3721_v9  ;;  %v3275_v19 = vpop.f32.mrb[44].mxu0 }
 0x4b0   : > { %3869 = vst [vmem:[#allocation2 + $0xa0] sm:$0xff] %v3812_v12  ;;  %v3612_v31 = vadd.f32 %v11948_v3, %v3275_v19  ;;  %v3277_v33 = vpop.f32.mrb[45].mxu0 }
 0x4b1   : > { %3870 = vst.msk [vmem:[#allocation2 + $0xa8] sm:$0xff] %vm3849_vm1, %v3813_v17  ;;  %v3613_v25 = vadd.f32 %v11951_v4, %v3277_v33  ;;  %v3279_v26 = vpop.f32.mrb[46].mxu0 }
 0x4b2   : > { %v3614_v35 = vadd.f32 %v11948_v3, %v3279_v26  ;;  %v3281_v37 = vpop.f32.mrb[47].mxu0  ;;  %v3724_v42 = vmax.f32 %v3612_v31, 0.0 }
 0x4b3   : > { %v3615_v40 = vadd.f32 %v11951_v4, %v3281_v37  ;;  %v3725_v44 = vmax.f32 %v3613_v25, 0.0 }
 0x4b4   : > { %v3726_v43 = vmax.f32 %v3614_v35, 0.0 }
 0x4b5   : > { %v3727_v45 = vmax.f32 %v3615_v40, 0.0 }
 0x4b6   : > { %v3814_v47 = vpack.c.bf16 %v3726_v43, %v3724_v42 }
 0x4b7   : > { %v3815_v63 = vpack.c.bf16 %v3727_v45, %v3725_v44  ;;  %v3285_v0 = vpop.f32.mrb[48].mxu0 }
 0x4b8   : > { %3871 = vst [vmem:[#allocation2 + $0xb0] sm:$0xff] %v3814_v47  ;;  %v3616_v7 = vadd.f32 %v11948_v3, %v3285_v0  ;;  %v3287_v51 = vpop.f32.mrb[49].mxu0  ;;  %v3974_v55 = vld [vmem:[#allocation2 + $0xa8] sm:$0xff] }
 0x4b9   : > { %3872 = vst.msk [vmem:[#allocation2 + $0xb8] sm:$0xff] %vm3849_vm1, %v3815_v63  ;;  %v3617_v56 = vadd.f32 %v11951_v4, %v3287_v51  ;;  %v3289_v60 = vpop.f32.mrb[50].mxu0  ;;  %8967 = vmatprep.mubr.msk.bf16.mxu1 %vm3849_vm1, %v3974_v55 }
 0x4ba   : > { %v3618_v61 = vadd.f32 %v11948_v3, %v3289_v60  ;;  %v3291_v8 = vpop.f32.mrb[51].mxu0  ;;  %4292 = vmatmul.mubr.bf16.gmra.mrb[56].mxu1 %v3812_v12  ;;  %v3728_v11 = vmax.f32 %v3616_v7, 0.0 }
 0x4bb   : > { %v3619_v9 = vadd.f32 %v11951_v4, %v3291_v8  ;;  %v3729_v19 = vmax.f32 %v3617_v56, 0.0 }
 0x4bc   : > { %v3730_v17 = vmax.f32 %v3618_v61, 0.0 }
 0x4bd   : > { %v3731_v31 = vmax.f32 %v3619_v9, 0.0 }
 0x4be   : > { %v12158_v33 = vpack.c.bf16 %v3730_v17, %v3728_v11 }
 0x4bf   : > { %v3817_v25 = vpack.c.bf16 %v3731_v31, %v3729_v19  ;;  %v3295_v26 = vpop.f32.mrb[52].mxu0 }
 0x4c0   : > { %3873 = vst [vmem:[#allocation2 + $0xc0] sm:$0xff] %v12158_v33  ;;  %v3620_v35 = vadd.f32 %v11948_v3, %v3295_v26  ;;  %v3297_v37 = vpop.f32.mrb[53].mxu0  ;;  %v3976_v40 = vld [vmem:[#allocation2 + $0xb8] sm:$0xff] }
 0x4c1   : > { %3874 = vst.msk [vmem:[#allocation2 + $0xc8] sm:$0xff] %vm3849_vm1, %v3817_v25  ;;  %v3621_v12 = vadd.f32 %v11951_v4, %v3297_v37  ;;  %v3299_v41 = vpop.f32.mrb[54].mxu0  ;;  %8968 = vmatprep.mubr.msk.bf16.mxu1 %vm3849_vm1, %v3976_v40 }
 0x4c2   : > { %v3622_v42 = vadd.f32 %v11948_v3, %v3299_v41  ;;  %v3301_v43 = vpop.f32.mrb[55].mxu0  ;;  %4302 = vmatmul.mubr.bf16.gmra.mrb[60].mxu1 %v3814_v47  ;;  %v3732_v45 = vmax.f32 %v3620_v35, 0.0 }
 0x4c3   : > { %v3623_v44 = vadd.f32 %v11951_v4, %v3301_v43  ;;  %v3733_v0 = vmax.f32 %v3621_v12, 0.0 }
 0x4c4   : > { %v3734_v63 = vmax.f32 %v3622_v42, 0.0 }
 0x4c5   : > { %v3735_v7 = vmax.f32 %v3623_v44, 0.0 }
 0x4c6   : > { %v12167_v51 = vpack.c.bf16 %v3734_v63, %v3732_v45 }
 0x4c7   : > { %v3819_v55 = vpack.c.bf16 %v3735_v7, %v3733_v0  ;;  %v3305_v56 = vpop.f32.mrb[56].mxu0 }
 0x4c8   : > { %3875 = vst [vmem:[#allocation2 + $0xd0] sm:$0xff] %v12167_v51  ;;  %v3624_v60 = vadd.f32 %v11948_v3, %v3305_v56  ;;  %v3307_v61 = vpop.f32.mrb[57].mxu0 }
 0x4c9   : > { %3876 = vst.msk [vmem:[#allocation2 + $0xd8] sm:$0xff] %vm3849_vm1, %v3819_v55  ;;  %v3625_v8 = vadd.f32 %v11951_v4, %v3307_v61  ;;  %v3309_v47 = vpop.f32.mrb[58].mxu0 }
 0x4ca   : > { %v3626_v9 = vadd.f32 %v11948_v3, %v3309_v47  ;;  %v3311_v11 = vpop.f32.mrb[59].mxu0  ;;  %v3736_v19 = vmax.f32 %v3624_v60, 0.0 }
 0x4cb   : > { %v3627_v17 = vadd.f32 %v11951_v4, %v3311_v11  ;;  %v3737_v25 = vmax.f32 %v3625_v8, 0.0 }
 0x4cc   : > { %v3738_v31 = vmax.f32 %v3626_v9, 0.0 }
 0x4cd   : > { %v3739_v26 = vmax.f32 %v3627_v17, 0.0 }
 0x4ce   : > { %v12175_v35 = vpack.c.bf16 %v3738_v31, %v3736_v19 }
 0x4cf   : > { %v3821_v37 = vpack.c.bf16 %v3739_v26, %v3737_v25  ;;  %v3315_v40 = vpop.f32.mrb[60].mxu0 }
 0x4d0   : > { %v3628_v12 = vadd.f32 %v11948_v3, %v3315_v40  ;;  %v3317_v41 = vpop.f32.mrb[61].mxu0 }
 0x4d1   : > { %3878 = vst.msk [vmem:[#allocation2 + $0xe8] sm:$0xff] %vm3849_vm1, %v3821_v37  ;;  %v3629_v42 = vadd.f32 %v11951_v4, %v3317_v41  ;;  %v3319_v43 = vpop.f32.mrb[62].mxu0 }
 0x4d2   : > { %v3630_v44 = vadd.f32 %v11948_v3, %v3319_v43  ;;  %v3321_v45 = vpop.f32.mrb[63].mxu0  ;;  %v3740_v0 = vmax.f32 %v3628_v12, 0.0 }
 0x4d3   : > { %v3631_v63 = vadd.f32 %v11951_v4, %v3321_v45  ;;  %v3741_v55 = vmax.f32 %v3629_v42, 0.0 }
 0x4d4   : > { %v3742_v7 = vmax.f32 %v3630_v44, 0.0 }
 0x4d5   : > { %v3743_v56 = vmax.f32 %v3631_v63, 0.0 }
 0x4d6   : > { %v12182_v60 = vpack.c.bf16 %v3742_v7, %v3740_v0 }
 0x4d7   : > { %v3823_v61 = vpack.c.bf16 %v3743_v56, %v3741_v55  ;;  %v3325_v8 = vpop.f32.mrb[64].mxu0 }
 0x4d8   : > { %v3632_v47 = vadd.f32 %v11948_v3, %v3325_v8  ;;  %v3327_v9 = vpop.f32.mrb[65].mxu0  ;;  %v12185_v11 = vld [vmem:[#allocation2 + $0xe8] sm:$0xff] }
 0x4d9   : > { %3880 = vst.msk [vmem:[#allocation2 + $0xf8] sm:$0xff] %vm3849_vm1, %v3823_v61  ;;  %v3633_v17 = vadd.f32 %v11951_v4, %v3327_v9  ;;  %v3329_v19 = vpop.f32.mrb[66].mxu0  ;;  %8969 = vmatprep.mubr.msk.bf16.mxu1 %vm3849_vm1, %v12185_v11 }
 0x4da   : > { %v3634_v31 = vadd.f32 %v11948_v3, %v3329_v19  ;;  %v3331_v25 = vpop.f32.mrb[67].mxu0  ;;  %4312 = vmatmul.mubr.bf16.gmra.mrb[64].mxu1 %v12175_v35  ;;  %v3744_v37 = vmax.f32 %v3632_v47, 0.0 }
 0x4db   : > { %v3635_v26 = vadd.f32 %v11951_v4, %v3331_v25  ;;  %v3745_v12 = vmax.f32 %v3633_v17, 0.0 }
 0x4dc   : > { %v3746_v40 = vmax.f32 %v3634_v31, 0.0 }
 0x4dd   : > { %v3747_v41 = vmax.f32 %v3635_v26, 0.0 }
 0x4de   : > { %v12194_v42 = vpack.c.bf16 %v3746_v40, %v3744_v37 }
 0x4df   : > { %v3825_v43 = vpack.c.bf16 %v3747_v41, %v3745_v12  ;;  %v3335_v44 = vpop.f32.mrb[68].mxu0 }
 0x4e0   : > { %3881 = vst [vmem:[#allocation2 + $0x100] sm:$0xff] %v12194_v42  ;;  %v3636_v45 = vadd.f32 %v11948_v3, %v3335_v44  ;;  %v3337_v63 = vpop.f32.mrb[69].mxu0  ;;  %v12198_v0 = vld [vmem:[#allocation2 + $0xf8] sm:$0xff] }
 0x4e1   : > { %3882 = vst.msk [vmem:[#allocation2 + $0x108] sm:$0xff] %vm3849_vm1, %v3825_v43  ;;  %v3637_v7 = vadd.f32 %v11951_v4, %v3337_v63  ;;  %v3339_v55 = vpop.f32.mrb[70].mxu0  ;;  %8970 = vmatprep.mubr.msk.bf16.mxu1 %vm3849_vm1, %v12198_v0 }
 0x4e2   : > { %v3638_v56 = vadd.f32 %v11948_v3, %v3339_v55  ;;  %v3341_v61 = vpop.f32.mrb[71].mxu0  ;;  %4322 = vmatmul.mubr.bf16.gmra.mrb[68].mxu1 %v12182_v60  ;;  %v3748_v47 = vmax.f32 %v3636_v45, 0.0 }
 0x4e3   : > { %v3639_v8 = vadd.f32 %v11951_v4, %v3341_v61  ;;  %v3749_v17 = vmax.f32 %v3637_v7, 0.0 }
 0x4e4   : > { %v3750_v9 = vmax.f32 %v3638_v56, 0.0 }
 0x4e5   : > { %v3751_v19 = vmax.f32 %v3639_v8, 0.0 }
 0x4e6   : > { %v12207_v31 = vpack.c.bf16 %v3750_v9, %v3748_v47 }
 0x4e7   : > { %v3827_v25 = vpack.c.bf16 %v3751_v19, %v3749_v17  ;;  %v3345_v26 = vpop.f32.mrb[72].mxu0 }
 0x4e8   : > { %3883 = vst [vmem:[#allocation2 + $0x110] sm:$0xff] %v12207_v31  ;;  %v3640_v37 = vadd.f32 %v11948_v3, %v3345_v26  ;;  %v3347_v40 = vpop.f32.mrb[73].mxu0 }
 0x4e9   : > { %3884 = vst.msk [vmem:[#allocation2 + $0x118] sm:$0xff] %vm3849_vm1, %v3827_v25  ;;  %v3641_v12 = vadd.f32 %v11951_v4, %v3347_v40  ;;  %v3349_v41 = vpop.f32.mrb[74].mxu0 }
 0x4ea   : > { %v3642_v43 = vadd.f32 %v11948_v3, %v3349_v41  ;;  %v3351_v44 = vpop.f32.mrb[75].mxu0  ;;  %v3752_v63 = vmax.f32 %v3640_v37, 0.0 }
 0x4eb   : > { %v3643_v45 = vadd.f32 %v11951_v4, %v3351_v44  ;;  %v3753_v55 = vmax.f32 %v3641_v12, 0.0 }
 0x4ec   : > { %v3754_v7 = vmax.f32 %v3642_v43, 0.0 }
 0x4ed   : > { %v3755_v56 = vmax.f32 %v3643_v45, 0.0 }
 0x4ee   : > { %v12215_v61 = vpack.c.bf16 %v3754_v7, %v3752_v63 }
 0x4ef   : > { %v3829_v8 = vpack.c.bf16 %v3755_v56, %v3753_v55  ;;  %v3355_v47 = vpop.f32.mrb[76].mxu0 }
 0x4f0   : > { %v3644_v9 = vadd.f32 %v11948_v3, %v3355_v47  ;;  %v3357_v17 = vpop.f32.mrb[77].mxu0 }
 0x4f1   : > { %3886 = vst.msk [vmem:[#allocation2 + $0x128] sm:$0xff] %vm3849_vm1, %v3829_v8  ;;  %v3645_v19 = vadd.f32 %v11951_v4, %v3357_v17  ;;  %v3359_v25 = vpop.f32.mrb[78].mxu0 }
 0x4f2   : > { %v3646_v26 = vadd.f32 %v11948_v3, %v3359_v25  ;;  %v3361_v40 = vpop.f32.mrb[79].mxu0  ;;  %v3756_v41 = vmax.f32 %v3644_v9, 0.0 }
 0x4f3   : > { %v3647_v37 = vadd.f32 %v11951_v4, %v3361_v40  ;;  %v3757_v43 = vmax.f32 %v3645_v19, 0.0 }
 0x4f4   : > { %v3758_v12 = vmax.f32 %v3646_v26, 0.0 }
 0x4f5   : > { %v3759_v44 = vmax.f32 %v3647_v37, 0.0 }
 0x4f6   : > { %v12222_v45 = vpack.c.bf16 %v3758_v12, %v3756_v41 }
 0x4f7   : > { %v3831_v63 = vpack.c.bf16 %v3759_v44, %v3757_v43  ;;  %v3365_v7 = vpop.f32.mrb[80].mxu0 }
 0x4f8   : > { %v9499_v55 = vadd.f32 %v3365_v7, %v11999_v10  ;;  %v3367_v56 = vpop.f32.mrb[81].mxu0  ;;  %v12225_v8 = vld [vmem:[#allocation2 + $0x128] sm:$0xff] }
 0x4f9   : > { %3888 = vst.msk [vmem:[#allocation2 + $0x138] sm:$0xff] %vm3849_vm1, %v3831_v63  ;;  %v9500_v47 = vadd.f32 %v3367_v56, %v12001_v13  ;;  %v3369_v17 = vpop.f32.mrb[82].mxu0  ;;  %8971 = vmatprep.mubr.msk.bf16.mxu1 %vm3849_vm1, %v12225_v8 }
 0x4fa   : > { %v3648_v9 = vadd.f32 %v9499_v55, %v11948_v3  ;;  %v9501_v19 = vadd.f32 %v3369_v17, %v12003_v15  ;;  %v3371_v25 = vpop.f32.mrb[83].mxu0  ;;  %4332 = vmatmul.mubr.bf16.gmra.mrb[72].mxu1 %v12215_v61 }
 0x4fb   : > { %v3649_v10 = vadd.f32 %v9500_v47, %v11951_v4  ;;  %v9502_v26 = vadd.f32 %v3371_v25, %v12005_v18 }
 0x4fc   : > { %v3650_v40 = vadd.f32 %v9501_v19, %v11948_v3  ;;  %v3760_v13 = vmax.f32 %v3648_v9, 0.0 }
 0x4fd   : > { %v3651_v37 = vadd.f32 %v9502_v26, %v11951_v4  ;;  %v3761_v12 = vmax.f32 %v3649_v10, 0.0 }
 0x4fe   : > { %v3762_v41 = vmax.f32 %v3650_v40, 0.0 }
 0x4ff   : > { %v3763_v43 = vmax.f32 %v3651_v37, 0.0  ;;  %v3375_v44 = vpop.f32.mrb[84].mxu0 }
 0x500   : > { %v12238_v63 = vpack.c.bf16 %v3762_v41, %v3760_v13  ;;  %v9503_v15 = vadd.f32 %v3375_v44, %v12019_v27  ;;  %v3377_v7 = vpop.f32.mrb[85].mxu0  ;;  %v12241_v55 = vld [vmem:[#allocation2 + $0x138] sm:$0xff] }
 0x501   : > { %v3833_v56 = vpack.c.bf16 %v3763_v43, %v3761_v12  ;;  %v9504_v47 = vadd.f32 %v3377_v7, %v12021_v34  ;;  %v3379_v18 = vpop.f32.mrb[86].mxu0  ;;  %8972 = vmatprep.mubr.msk.bf16.mxu1 %vm3849_vm1, %v12241_v55 }
 0x502   : > { %v3652_v17 = vadd.f32 %v9503_v15, %v11948_v3  ;;  %v9505_v9 = vadd.f32 %v3379_v18, %v12023_v36  ;;  %v3381_v19 = vpop.f32.mrb[87].mxu0  ;;  %4342 = vmatmul.mubr.bf16.gmra.mrb[76].mxu1 %v12222_v45 }
 0x503   : > { %3890 = vst.msk [vmem:[#allocation2 + $0x148] sm:$0xff] %vm3849_vm1, %v3833_v56  ;;  %v3653_v27 = vadd.f32 %v9504_v47, %v11951_v4  ;;  %v9506_v25 = vadd.f32 %v3381_v19, %v12025_v39 }
 0x504   : > { %v3654_v10 = vadd.f32 %v9505_v9, %v11948_v3  ;;  %v3764_v26 = vmax.f32 %v3652_v17, 0.0 }
 0x505   : > { %v3655_v34 = vadd.f32 %v9506_v25, %v11951_v4  ;;  %v3765_v37 = vmax.f32 %v3653_v27, 0.0 }
 0x506   : > { %v3766_v40 = vmax.f32 %v3654_v10, 0.0 }
 0x507   : > { %v3767_v13 = vmax.f32 %v3655_v34, 0.0  ;;  %v3385_v41 = vpop.f32.mrb[88].mxu0 }
 0x508   : > { %v12254_v12 = vpack.c.bf16 %v3766_v40, %v3764_v26  ;;  %v9507_v36 = vadd.f32 %v3385_v41, %v12039_v1  ;;  %v3387_v43 = vpop.f32.mrb[89].mxu0 }
 0x509   : > { %v3835_v44 = vpack.c.bf16 %v3767_v13, %v3765_v37  ;;  %v9508_v15 = vadd.f32 %v3387_v43, %v12041_v6  ;;  %v3389_v7 = vpop.f32.mrb[90].mxu0 }
 0x50a   : > { %v3656_v39 = vadd.f32 %v9507_v36, %v11948_v3  ;;  %v9509_v56 = vadd.f32 %v3389_v7, %v12043_v50  ;;  %v3391_v47 = vpop.f32.mrb[91].mxu0 }
 0x50b   : > { %3892 = vst.msk [vmem:[#allocation2 + $0x158] sm:$0xff] %vm3849_vm1, %v3835_v44  ;;  %v3657_v18 = vadd.f32 %v9508_v15, %v11951_v4  ;;  %v9510_v17 = vadd.f32 %v3391_v47, %v12045_v53 }
 0x50c   : > { %v3658_v9 = vadd.f32 %v9509_v56, %v11948_v3  ;;  %v3768_v19 = vmax.f32 %v3656_v39, 0.0 }
 0x50d   : > { %v3659_v1 = vadd.f32 %v9510_v17, %v11951_v4  ;;  %v3769_v25 = vmax.f32 %v3657_v18, 0.0 }
 0x50e   : > { %v3770_v27 = vmax.f32 %v3658_v9, 0.0 }
 0x50f   : > { %v3771_v6 = vmax.f32 %v3659_v1, 0.0  ;;  %v3395_v10 = vpop.f32.mrb[92].mxu0 }
 0x510   : > { %v12265_v34 = vpack.c.bf16 %v3770_v27, %v3768_v19  ;;  %v9511_v50 = vadd.f32 %v3395_v10, %v12058_v16  ;;  %v3397_v26 = vpop.f32.mrb[93].mxu0 }
 0x511   : > { %v3837_v40 = vpack.c.bf16 %v3771_v6, %v3769_v25  ;;  %v9512_v37 = vadd.f32 %v3397_v26, %v12060_v20  ;;  %v3399_v13 = vpop.f32.mrb[94].mxu0 }
 0x512   : > { %v3660_v53 = vadd.f32 %v9511_v50, %v11948_v3  ;;  %v9513_v41 = vadd.f32 %v3399_v13, %v12062_v22  ;;  %v3401_v36 = vpop.f32.mrb[95].mxu0 }
 0x513   : > { %3894 = vst.msk [vmem:[#allocation2 + $0x168] sm:$0xff] %vm3849_vm1, %v3837_v40  ;;  %v3661_v43 = vadd.f32 %v9512_v37, %v11951_v4  ;;  %v9514_v44 = vadd.f32 %v3401_v36, %v12064_v32 }
 0x514   : > { %v3662_v15 = vadd.f32 %v9513_v41, %v11948_v3  ;;  %v3772_v7 = vmax.f32 %v3660_v53, 0.0 }
 0x515   : > { %v3663_v16 = vadd.f32 %v9514_v44, %v11951_v4  ;;  %v3773_v56 = vmax.f32 %v3661_v43, 0.0 }
 0x516   : > { %v3774_v39 = vmax.f32 %v3662_v15, 0.0 }
 0x517   : > { %v3775_v20 = vmax.f32 %v3663_v16, 0.0  ;;  %v3405_v47 = vpop.f32.mrb[96].mxu0 }
 0x518   : > { %v12276_v18 = vpack.c.bf16 %v3774_v39, %v3772_v7  ;;  %v9515_v22 = vadd.f32 %v3405_v47, %v12077_v46  ;;  %v3407_v17 = vpop.f32.mrb[97].mxu0 }
 0x519   : > { %v3839_v9 = vpack.c.bf16 %v3775_v20, %v3773_v56  ;;  %v9516_v1 = vadd.f32 %v3407_v17, %v12080_v48  ;;  %v3409_v19 = vpop.f32.mrb[98].mxu0 }
 0x51a   : > { %v3664_v32 = vadd.f32 %v9515_v22, %v11948_v3  ;;  %v9517_v27 = vadd.f32 %v3409_v19, %v12085_v49  ;;  %v3411_v25 = vpop.f32.mrb[99].mxu0  ;;  %v12282_v6 = vld [vmem:[#allocation2 + $0x168] sm:$0xff] }
 0x51b   : > { %3896 = vst.msk [vmem:[#allocation2 + $0x178] sm:$0xff] %vm3849_vm1, %v3839_v9  ;;  %v3665_v10 = vadd.f32 %v9516_v1, %v11951_v4  ;;  %v9518_v50 = vadd.f32 %v3411_v25, %v12088_v52  ;;  %8973 = vmatprep.mubr.msk.bf16.mxu1 %vm3849_vm1, %v12282_v6 }
 0x51c   : > { %v3666_v46 = vadd.f32 %v9517_v27, %v11948_v3  ;;  %4352 = vmatmul.mubr.bf16.gmra.mrb[80].mxu1 %v12265_v34  ;;  %v3776_v26 = vmax.f32 %v3664_v32, 0.0 }
 0x51d   : > { %v3667_v48 = vadd.f32 %v9518_v50, %v11951_v4  ;;  %v3777_v40 = vmax.f32 %v3665_v10, 0.0  ;;  %v10517_v10 = vld [vmem:[%s13731_s3 + $0x1c0] ss:$8 sps:$4 sm:$0xff]  }
 0x51e   : > { %v3778_v49 = vmax.f32 %v3666_v46, 0.0 }
 0x51f   : > { %v3779_v37 = vmax.f32 %v3667_v48, 0.0  ;;  %v3415_v13 = vpop.f32.mrb[100].mxu0 }
 0x520   : > { %v12292_v53 = vpack.c.bf16 %v3778_v49, %v3776_v26  ;;  %v9519_v41 = vadd.f32 %v3415_v13, %v12097_v14  ;;  %v3417_v36 = vpop.f32.mrb[101].mxu0  ;;  %v10522_v26 = vld [vmem:[%s13731_s3 + $0x1d4] ss:$8 sps:$4 sm:$0xff]  }
 0x521   : > { %v3841_v52 = vpack.c.bf16 %v3779_v37, %v3777_v40  ;;  %v9520_v43 = vadd.f32 %v3417_v36, %v12100_v30  ;;  %v3419_v44 = vpop.f32.mrb[102].mxu0 }
 0x522   : > { %v3668_v15 = vadd.f32 %v9519_v41, %v11948_v3  ;;  %v9521_v16 = vadd.f32 %v3419_v44, %v12105_v23  ;;  %v3421_v7 = vpop.f32.mrb[103].mxu0  ;;  %v12298_v39 = vld [vmem:[#allocation2 + $0x178] sm:$0xff] }
 0x523   : > { %3898 = vst.msk [vmem:[#allocation2 + $0x188] sm:$0xff] %vm3849_vm1, %v3841_v52  ;;  %v3669_v56 = vadd.f32 %v9520_v43, %v11951_v4  ;;  %v9522_v20 = vadd.f32 %v3421_v7, %v12111_v28  ;;  %8974 = vmatprep.mubr.msk.bf16.mxu1 %vm3849_vm1, %v12298_v39 }
 0x524   : > { %v3670_v14 = vadd.f32 %v9521_v16, %v11948_v3  ;;  %4362 = vmatmul.mubr.bf16.gmra.mrb[84].mxu1 %v12276_v18  ;;  %v3780_v23 = vmax.f32 %v3668_v15, 0.0 }
 0x525   : > { %v3671_v30 = vadd.f32 %v9522_v20, %v11951_v4  ;;  %4580 = vmatprep.mubr.bf16.mxu1 %v11008_v2  ;;  %v3781_v22 = vmax.f32 %v3669_v56, 0.0  ;;  %v10523_v20 = vld [vmem:[%s13731_s3 + $0x1e0] ss:$8 sps:$4 sm:$0xff]  }
 0x526   : > { %v3782_v47 = vmax.f32 %v3670_v14, 0.0 }
 0x527   : > { %v3783_v17 = vmax.f32 %v3671_v30, 0.0  ;;  %v3425_v9 = vpop.f32.mrb[104].mxu0 }
 0x528   : > { %v12309_v1 = vpack.c.bf16 %v3782_v47, %v3780_v23  ;;  %v9523_v28 = vadd.f32 %v3425_v9, %v12123_v62  ;;  %v3427_v19 = vpop.f32.mrb[105].mxu0  ;;  %v10526_v9 = vld [vmem:[%s13731_s3 + $0x1f0] ss:$8 sps:$4 sm:$0xff]  }
 0x529   : > { %v3843_v32 = vpack.c.bf16 %v3783_v17, %v3781_v22  ;;  %v9524_v27 = vadd.f32 %v3427_v19, %v12126_v5  ;;  %v3429_v25 = vpop.f32.mrb[106].mxu0  ;;  %v12351_v17 = vld [vmem:[#allocation2 + $0x8] sm:$0xff] }
 0x52a   : > { %v3672_v50 = vadd.f32 %v9523_v28, %v11948_v3  ;;  %v9525_v46 = vadd.f32 %v3429_v25, %v12130_v54  ;;  %v3431_v48 = vpop.f32.mrb[107].mxu0  ;;  %v10520_v54 = vld [vmem:[%s13731_s3 + $0x1d0] ss:$8 sps:$4 sm:$0xff]   ;;  %v10529_v25 = vld [vmem:[%s13731_s3 + $0x200] ss:$8 sps:$4 sm:$0xff]  }
 0x52b   : > { %3900 = vst.msk [vmem:[#allocation2 + $0x198] sm:$0xff] %vm3849_vm1, %v3843_v32  ;;  %v3673_v62 = vadd.f32 %v9524_v27, %v11951_v4  ;;  %v9526_v5 = vadd.f32 %v3431_v48, %v12133_v57  ;;  %v10525_v57 = vld [vmem:[%s13731_s3 + $0x1e4] ss:$8 sps:$4 sm:$0xff]   ;;  %v10532_v48 = vld [vmem:[%s13731_s3 + $0x210] ss:$8 sps:$4 sm:$0xff]  }
 0x52c   : > { %v3674_v49 = vadd.f32 %v9525_v46, %v11948_v3  ;;  %4581 = vmatmul.mubr.bf16.vlgmr.msra.gmra.mrb[32].mxu1 %v11008_v2  ;;  %v3784_v37 = vmax.f32 %v3672_v50, 0.0  ;;  %v12371_v50 = vld [vmem:[#allocation2] sm:$0xff]  ;;  %v12374_v46 = vld [vmem:[#allocation2 + $0x18] sm:$0xff] }
 0x52d   : > { %v3675_v40 = vadd.f32 %v9526_v5, %v11951_v4  ;;  %4901 = vmatpush1.bf16.msra.mxu1 %v10517_v10  ;;  %4590 = vmatprep.mubr.bf16.mxu1 %v11008_v2  ;;  %v3785_v41 = vmax.f32 %v3673_v62, 0.0  ;;  %v10534_v10 = vld [vmem:[%s13731_s3 + $0x214] ss:$8 sps:$4 sm:$0xff]   ;;  %v10535_v62 = vld [vmem:[%s13731_s3 + $0x220] ss:$8 sps:$4 sm:$0xff]  }
 0x52e   : > { %v3786_v13 = vmax.f32 %v3674_v49, 0.0  ;;  %4902 = vmatprep.subr.bf16.mxu1 %v10522_v26  ;;  %v10537_v26 = vld [vmem:[%s13731_s3 + $0x224] ss:$8 sps:$4 sm:$0xff]   ;;  %v10540_v5 = vld [vmem:[%s13731_s3 + $0x234] ss:$8 sps:$4 sm:$0xff]  }
 0x52f   : > { %v3787_v36 = vmax.f32 %v3675_v40, 0.0  ;;  %v3435_v52 = vpop.f32.mrb[108].mxu0  ;;  %v12390_v49 = vld [vmem:[#allocation2 + $0x10] sm:$0xff]  ;;  %v12393_v40 = vld [vmem:[#allocation2 + $0x48] sm:$0xff] }
 0x530   : > { %v12334_v43 = vpack.c.bf16 %v3786_v13, %v3784_v37  ;;  %v9527_v44 = vadd.f32 %v3435_v52, %v12136_v21  ;;  %v3437_v15 = vpop.f32.mrb[109].mxu0  ;;  %v10528_v21 = vld [vmem:[%s13731_s3 + $0x1f4] ss:$8 sps:$4 sm:$0xff]   ;;  %v10543_v37 = vld [vmem:[%s13731_s3 + $0x244] ss:$8 sps:$4 sm:$0xff]  }
 0x531   : > { %v3845_v16 = vpack.c.bf16 %v3787_v36, %v3785_v41  ;;  %v9528_v7 = vadd.f32 %v3437_v15, %v12139_v24  ;;  %v3439_v56 = vpop.f32.mrb[110].mxu0  ;;  %4903 = vmatpush1.bf16.msra.mxu1 %v10520_v54  ;;  %v10538_v54 = vld [vmem:[%s13731_s3 + $0x230] ss:$8 sps:$4 sm:$0xff]   ;;  %v10541_v13 = vld [vmem:[%s13731_s3 + $0x240] ss:$8 sps:$4 sm:$0xff]  }
 0x532   : > { %v3676_v14 = vadd.f32 %v9527_v44, %v11948_v3  ;;  %v9529_v30 = vadd.f32 %v3439_v56, %v12143_v29  ;;  %v3441_v23 = vpop.f32.mrb[111].mxu0  ;;  %4904 = vmatprep.subr.bf16.mxu1 %v10525_v57  ;;  %v10546_v57 = vld [vmem:[%s13731_s3 + $0x254] ss:$8 sps:$4 sm:$0xff]   ;;  %v12409_v41 = vld [vmem:[#allocation2 + $0x40] sm:$0xff]  ;;  %v10544_v52 = vld [vmem:[%s13731_s3 + $0x250] ss:$8 sps:$4 sm:$0xff]  }
 0x533   : > { %3902 = vst.msk [vmem:[#allocation2 + $0x1a8] sm:$0xff] %vm3849_vm1, %v3845_v16  ;;  %v3677_v24 = vadd.f32 %v9528_v7, %v11951_v4  ;;  %v9530_v47 = vadd.f32 %v3441_v23, %v12146_v38  ;;  %v12412_v36 = vld [vmem:[#allocation2 + $0x58] sm:$0xff]  ;;  %v10549_v44 = vld [vmem:[%s13731_s3 + $0x264] ss:$8 sps:$4 sm:$0xff]   ;;  %v10547_v15 = vld [vmem:[%s13731_s3 + $0x260] ss:$8 sps:$4 sm:$0xff]  }
 0x534   : > { %v3678_v22 = vadd.f32 %v9529_v30, %v11948_v3  ;;  %4591 = vmatmul.mubr.bf16.gmra.mrb[36].mxu1 %v11008_v2  ;;  %v3788_v28 = vmax.f32 %v3676_v14, 0.0  ;;  %v10531_v3 = vld [vmem:[%s13731_s3 + $0x204] ss:$8 sps:$4 sm:$0xff]   ;;  %v10552_v16 = vld [vmem:[%s13731_s3 + $0x274] ss:$8 sps:$4 sm:$0xff]  }
 0x535   : > { %v3679_v29 = vadd.f32 %v9530_v47, %v11951_v4  ;;  %9003 = vmatprep.mubr.msk.bf16.mxu1 %vm3849_vm1, %v12351_v17  ;;  %4905 = vmatpush1.bf16.msra.mxu1 %v10523_v20  ;;  %v3789_v38 = vmax.f32 %v3677_v24, 0.0  ;;  %v12428_v7 = vld [vmem:[#allocation2 + $0x50] sm:$0xff]  ;;  %v12431_v56 = vld [vmem:[#allocation2 + $0x88] sm:$0xff]  ;;  %v12450_v24 = vld [vmem:[#allocation2 + $0x98] sm:$0xff] }
 0x536   : > { %v3790_v19 = vmax.f32 %v3678_v22, 0.0  ;;  %4906 = vmatprep.subr.bf16.mxu1 %v10528_v21  ;;  %v10550_v20 = vld [vmem:[%s13731_s3 + $0x270] ss:$8 sps:$4 sm:$0xff]   ;;  %v10555_v14 = vld [vmem:[%s13731_s3 + $0x284] ss:$8 sps:$4 sm:$0xff]  }
 0x537   : > { %v3791_v32 = vmax.f32 %v3679_v29, 0.0  ;;  %v10553_v30 = vld [vmem:[%s13731_s3 + $0x280] ss:$8 sps:$4 sm:$0xff]   ;;  %v10558_v23 = vld [vmem:[%s13731_s3 + $0x294] ss:$8 sps:$4 sm:$0xff]  }
 0x538   : > { %v12362_v27 = vpack.c.bf16 %v3790_v19, %v3788_v28  ;;  %v12447_v21 = vld [vmem:[#allocation2 + $0x80] sm:$0xff]  ;;  %v10556_v47 = vld [vmem:[%s13731_s3 + $0x290] ss:$8 sps:$4 sm:$0xff]   ;;  %v12473_v19 = vld [vmem:[#allocation2 + $0x108] sm:$0xff] }
 0x539   : > { %v3847_v4 = vpack.c.bf16 %v3791_v32, %v3789_v38  ;;  %4907 = vmatpush1.bf16.msra.mxu1 %v10526_v9  ;;  %v10561_v22 = vld [vmem:[%s13731_s3 + $0x2a4] ss:$8 sps:$4 sm:$0xff]   ;;  %v12460_v29 = vld [vmem:[#allocation2 + $0x90] sm:$0xff]  ;;  %v12468_v28 = vld [vmem:[#allocation2 + $0xd8] sm:$0xff] }
 0x53a   : > { %4908 = vmatprep.subr.bf16.mxu1 %v10531_v3  ;;  %v12463_v9 = vld [vmem:[#allocation2 + $0xc8] sm:$0xff]  ;;  %v12478_v3 = vld [vmem:[#allocation2 + $0x118] sm:$0xff] }
 0x53b   : > { %3904 = vst.msk [vmem:[#allocation2 + $0x1b8] sm:$0xff] %vm3849_vm1, %v3847_v4  ;;  %v12483_v38 = vld [vmem:[#allocation2 + $0x148] sm:$0xff]  ;;  %v12488_v32 = vld [vmem:[#allocation2 + $0x158] sm:$0xff] }
 0x53c   : > { %4601 = vmatmul.mubr.bf16.gmra.mrb[40].mxu1 %v12371_v50  ;;  %v10559_v4 = vld [vmem:[%s13731_s3 + $0x2a0] ss:$8 sps:$4 sm:$0xff]  }
 0x53d   : > { %9004 = vmatprep.mubr.msk.bf16.mxu1 %vm3849_vm1, %v12374_v46  ;;  %4909 = vmatpush1.bf16.msra.mxu1 %v10529_v25  ;;  %v10564_v25 = vld [vmem:[%s13731_s3 + $0x2b4] ss:$8 sps:$4 sm:$0xff]  }
 0x53e   : > { %4910 = vmatprep.subr.bf16.mxu1 %v10534_v10  ;;  %v10562_v10 = vld [vmem:[%s13731_s3 + $0x2b0] ss:$8 sps:$4 sm:$0xff]  }
 0x541   : > { %4911 = vmatpush1.bf16.msra.mxu1 %v10532_v48  ;;  %v10565_v48 = vld [vmem:[%s13731_s3 + $0x2c0] ss:$8 sps:$4 sm:$0xff]  }
 0x542   : > { %4912 = vmatprep.subr.bf16.mxu1 %v10537_v26  ;;  %v10573_v26 = vld [vmem:[%s13731_s3 + $0x2e4] ss:$8 sps:$4 sm:$0xff]  }
 0x544   : > { %4611 = vmatmul.mubr.bf16.gmra.mrb[44].mxu1 %v12390_v49 }
 0x545   : > { %9005 = vmatprep.mubr.msk.bf16.mxu1 %vm3849_vm1, %v12393_v40  ;;  %4913 = vmatpush1.bf16.msra.mxu1 %v10535_v62  ;;  %v10571_v62 = vld [vmem:[%s13731_s3 + $0x2e0] ss:$8 sps:$4 sm:$0xff]  }
 0x546   : > { %4914 = vmatprep.subr.bf16.mxu1 %v10540_v5  ;;  %v10576_v5 = vld [vmem:[%s13731_s3 + $0x2f4] ss:$8 sps:$4 sm:$0xff]  }
 0x549   : > { %4915 = vmatpush1.bf16.msra.mxu1 %v10538_v54  ;;  %v10579_v54 = vld [vmem:[%s13731_s3 + $0x304] ss:$8 sps:$4 sm:$0xff]  }
 0x54a   : > { %4916 = vmatprep.subr.bf16.mxu1 %v10543_v37  ;;  %v10577_v37 = vld [vmem:[%s13731_s3 + $0x300] ss:$8 sps:$4 sm:$0xff]  }
 0x54c   : > { %4621 = vmatmul.mubr.bf16.gmra.mrb[48].mxu1 %v12409_v41 }
 0x54d   : > { %9006 = vmatprep.mubr.msk.bf16.mxu1 %vm3849_vm1, %v12412_v36  ;;  %4917 = vmatpush1.bf16.msra.mxu1 %v10541_v13  ;;  %v10582_v13 = vld [vmem:[%s13731_s3 + $0x314] ss:$8 sps:$4 sm:$0xff]  }
 0x54e   : > { %4918 = vmatprep.subr.bf16.mxu1 %v10546_v57  ;;  %v10580_v57 = vld [vmem:[%s13731_s3 + $0x310] ss:$8 sps:$4 sm:$0xff]  }
 0x551   : > { %4919 = vmatpush1.bf16.msra.mxu1 %v10544_v52  ;;  %v10585_v52 = vld [vmem:[%s13731_s3 + $0x324] ss:$8 sps:$4 sm:$0xff]  }
 0x552   : > { %4920 = vmatprep.subr.bf16.mxu1 %v10549_v44  ;;  %v10583_v44 = vld [vmem:[%s13731_s3 + $0x320] ss:$8 sps:$4 sm:$0xff]  }
 0x554   : > { %4631 = vmatmul.mubr.bf16.gmra.mrb[52].mxu1 %v12428_v7 }
 0x555   : > { %9007 = vmatprep.mubr.msk.bf16.mxu1 %vm3849_vm1, %v12431_v56  ;;  %4921 = vmatpush1.bf16.msra.mxu1 %v10547_v15  ;;  %v10588_v15 = vld [vmem:[%s13731_s3 + $0x334] ss:$8 sps:$4 sm:$0xff]  }
 0x556   : > { %4922 = vmatprep.subr.bf16.mxu1 %v10552_v16  ;;  %v10586_v16 = vld [vmem:[%s13731_s3 + $0x330] ss:$8 sps:$4 sm:$0xff]  }
 0x559   : > { %4923 = vmatpush1.bf16.msra.mxu1 %v10550_v20  ;;  %v10591_v20 = vld [vmem:[%s13731_s3 + $0x344] ss:$8 sps:$4 sm:$0xff]  }
 0x55a   : > { %4924 = vmatprep.subr.bf16.mxu1 %v10555_v14  ;;  %v10589_v14 = vld [vmem:[%s13731_s3 + $0x340] ss:$8 sps:$4 sm:$0xff]  }
 0x55c   : > { %4641 = vmatmul.mubr.bf16.gmra.mrb[56].mxu1 %v12447_v21 }
 0x55d   : > { %9008 = vmatprep.mubr.msk.bf16.mxu1 %vm3849_vm1, %v12450_v24  ;;  %4925 = vmatpush1.bf16.msra.mxu1 %v10553_v30  ;;  %v10594_v30 = vld [vmem:[%s13731_s3 + $0x354] ss:$8 sps:$4 sm:$0xff]  }
 0x55e   : > { %4926 = vmatprep.subr.bf16.mxu1 %v10558_v23  ;;  %v10592_v23 = vld [vmem:[%s13731_s3 + $0x350] ss:$8 sps:$4 sm:$0xff]  }
 0x561   : > { %4927 = vmatpush1.bf16.msra.mxu1 %v10556_v47  ;;  %v10597_v47 = vld [vmem:[%s13731_s3 + $0x364] ss:$8 sps:$4 sm:$0xff]  }
 0x562   : > { %5308 = vmatprep.subr.bf16.mxu1 %v10561_v22  ;;  %v10595_v22 = vld [vmem:[%s13731_s3 + $0x360] ss:$8 sps:$4 sm:$0xff]  }
 0x564   : > { %4651 = vmatmul.mubr.bf16.gmra.mrb[60].mxu1 %v12460_v29 }
 0x565   : > { %9009 = vmatprep.mubr.msk.bf16.mxu1 %vm3849_vm1, %v12463_v9 }
 0x56c   : > { %4661 = vmatmul.mubr.bf16.gmra.mrb[64].mxu1 %v12158_v33 }
 0x56d   : > { %9010 = vmatprep.mubr.msk.bf16.mxu1 %vm3849_vm1, %v12468_v28 }
 0x574   : > { %4671 = vmatmul.mubr.bf16.gmra.mrb[68].mxu1 %v12167_v51 }
 0x575   : > { %9011 = vmatprep.mubr.msk.bf16.mxu1 %vm3849_vm1, %v12473_v19 }
 0x57c   : > { %4681 = vmatmul.mubr.bf16.gmra.mrb[72].mxu1 %v12194_v42 }
 0x57d   : > { %9012 = vmatprep.mubr.msk.bf16.mxu1 %vm3849_vm1, %v12478_v3 }
 0x584   : > { %4691 = vmatmul.mubr.bf16.gmra.mrb[76].mxu1 %v12207_v31 }
 0x585   : > { %9013 = vmatprep.mubr.msk.bf16.mxu1 %vm3849_vm1, %v12483_v38 }
 0x58c   : > { %4701 = vmatmul.mubr.bf16.gmra.mrb[80].mxu1 %v12238_v63 }
 0x58d   : > { %9014 = vmatprep.mubr.msk.bf16.mxu1 %vm3849_vm1, %v12488_v32 }
 0x594   : > { %4711 = vmatmul.mubr.bf16.gmra.mrb[84].mxu1 %v12254_v12 }
 0x595   : > { %9043 = vmatprep.mubr.msk.bf16.mxu1 %vm3849_vm1, %v12351_v17  ;;  %v10567_v17 = vld [vmem:[%s13731_s3 + $0x2c4] ss:$8 sps:$4 sm:$0xff]  }
 0x59c   : > { %4933 = vmatmul.mubr.bf16.vlgmr.msra.gmra.mrb[32].mxu1 %v12371_v50  ;;  %v10570_v50 = vld [vmem:[%s13731_s3 + $0x2d4] ss:$8 sps:$4 sm:$0xff]  }
 0x59d   : > { %9044 = vmatprep.mubr.msk.bf16.mxu1 %vm3849_vm1, %v12374_v46  ;;  %5309 = vmatpush1.bf16.msra.mxu1 %v10559_v4  ;;  %v10568_v46 = vld [vmem:[%s13731_s3 + $0x2d0] ss:$8 sps:$4 sm:$0xff]   ;;  %v10600_v4 = vld [vmem:[%s13731_s3 + $0x374] ss:$8 sps:$4 sm:$0xff]  }
 0x59e   : > { %5310 = vmatprep.subr.bf16.mxu1 %v10564_v25  ;;  %v10598_v25 = vld [vmem:[%s13731_s3 + $0x370] ss:$8 sps:$4 sm:$0xff]  }
 0x5a1   : > { %5311 = vmatpush1.bf16.msra.mxu1 %v10562_v10  ;;  %v10603_v10 = vld [vmem:[%s13731_s3 + $0x384] ss:$8 sps:$4 sm:$0xff]  }
 0x5a2   : > { %5312 = vmatprep.subr.bf16.mxu1 %v10567_v17  ;;  %v10606_v17 = vld [vmem:[%s13731_s3 + $0x394] ss:$8 sps:$4 sm:$0xff]  }
 0x5a4   : > { %4943 = vmatmul.mubr.bf16.gmra.mrb[36].mxu1 %v12390_v49  ;;  %v10574_v49 = vld [vmem:[%s13731_s3 + $0x2f0] ss:$8 sps:$4 sm:$0xff]  }
 0x5a5   : > { %9045 = vmatprep.mubr.msk.bf16.mxu1 %vm3849_vm1, %v12393_v40  ;;  %5313 = vmatpush1.bf16.msra.mxu1 %v10565_v48  ;;  %v10929_v48 = vld [vmem:[#allocation2 + $0x20] sm:$0xff] }
 0x5a6   : > { %5314 = vmatprep.subr.bf16.mxu1 %v10570_v50  ;;  %v10930_v50 = vld [vmem:[#allocation2 + $0x38] sm:$0xff] }
 0x5a9   : > { %5315 = vmatpush1.bf16.msra.mxu1 %v10568_v46  ;;  %v10604_v46 = vld [vmem:[%s13731_s3 + $0x390] ss:$8 sps:$4 sm:$0xff]  }
 0x5aa   : > { %5316 = vmatprep.subr.bf16.mxu1 %v10573_v26  ;;  %v10609_v26 = vld [vmem:[%s13731_s3 + $0x3a4] ss:$8 sps:$4 sm:$0xff]  }
 0x5ac   : > { %4953 = vmatmul.mubr.bf16.gmra.mrb[40].mxu1 %v12409_v41 }
 0x5ad   : > { %9046 = vmatprep.mubr.msk.bf16.mxu1 %vm3849_vm1, %v12412_v36  ;;  %5317 = vmatpush1.bf16.msra.mxu1 %v10571_v62  ;;  %v10607_v62 = vld [vmem:[%s13731_s3 + $0x3a0] ss:$8 sps:$4 sm:$0xff]  }
 0x5ae   : > { %5318 = vmatprep.subr.bf16.mxu1 %v10576_v5  ;;  %v10612_v5 = vld [vmem:[%s13731_s3 + $0x3b4] ss:$8 sps:$4 sm:$0xff]  }
 0x5b1   : > { %5319 = vmatpush1.bf16.msra.mxu1 %v10574_v49  ;;  %v10931_v49 = vld [vmem:[#allocation2 + $0x30] sm:$0xff] }
 0x5b2   : > { %5320 = vmatprep.subr.bf16.mxu1 %v10579_v54  ;;  %v10932_v54 = vld [vmem:[#allocation2 + $0x68] sm:$0xff] }
 0x5b4   : > { %4963 = vmatmul.mubr.bf16.gmra.mrb[44].mxu1 %v12428_v7 }
 0x5b5   : > { %9047 = vmatprep.mubr.msk.bf16.mxu1 %vm3849_vm1, %v12431_v56  ;;  %5321 = vmatpush1.bf16.msra.mxu1 %v10577_v37  ;;  %v10610_v37 = vld [vmem:[%s13731_s3 + $0x3b0] ss:$8 sps:$4 sm:$0xff]  }
 0x5b6   : > { %5322 = vmatprep.subr.bf16.mxu1 %v10582_v13  ;;  %v10615_v13 = vld [vmem:[%s13731_s3 + $0x3c4] ss:$8 sps:$4 sm:$0xff]  }
 0x5b9   : > { %5323 = vmatpush1.bf16.msra.mxu1 %v10580_v57  ;;  %v10613_v57 = vld [vmem:[%s13731_s3 + $0x3c0] ss:$8 sps:$4 sm:$0xff]  }
 0x5ba   : > { %5324 = vmatprep.subr.bf16.mxu1 %v10585_v52  ;;  %v10618_v52 = vld [vmem:[%s13731_s3 + $0x3d4] ss:$8 sps:$4 sm:$0xff]  }
 0x5bc   : > { %4973 = vmatmul.mubr.bf16.gmra.mrb[48].mxu1 %v12447_v21 }
 0x5bd   : > { %9048 = vmatprep.mubr.msk.bf16.mxu1 %vm3849_vm1, %v12450_v24  ;;  %5325 = vmatpush1.bf16.msra.mxu1 %v10583_v44  ;;  %v10933_v44 = vld [vmem:[#allocation2 + $0x60] sm:$0xff] }
 0x5be   : > { %5326 = vmatprep.subr.bf16.mxu1 %v10588_v15  ;;  %v10934_v15 = vld [vmem:[#allocation2 + $0x78] sm:$0xff] }
 0x5c1   : > { %5327 = vmatpush1.bf16.msra.mxu1 %v10586_v16  ;;  %v10616_v16 = vld [vmem:[%s13731_s3 + $0x3d0] ss:$8 sps:$4 sm:$0xff]  }
 0x5c2   : > { %5328 = vmatprep.subr.bf16.mxu1 %v10591_v20  ;;  %v10621_v20 = vld [vmem:[%s13731_s3 + $0x3e4] ss:$8 sps:$4 sm:$0xff]  }
 0x5c4   : > { %4983 = vmatmul.mubr.bf16.gmra.mrb[52].mxu1 %v12460_v29 }
 0x5c5   : > { %9049 = vmatprep.mubr.msk.bf16.mxu1 %vm3849_vm1, %v12463_v9  ;;  %5329 = vmatpush1.bf16.msra.mxu1 %v10589_v14  ;;  %v10619_v14 = vld [vmem:[%s13731_s3 + $0x3e0] ss:$8 sps:$4 sm:$0xff]  }
 0x5c6   : > { %5330 = vmatprep.subr.bf16.mxu1 %v10594_v30  ;;  %v10624_v30 = vld [vmem:[%s13731_s3 + $0x3f4] ss:$8 sps:$4 sm:$0xff]  }
 0x5c9   : > { %5331 = vmatpush1.bf16.msra.mxu1 %v10592_v23  ;;  %v10935_v23 = vld [vmem:[#allocation2 + $0x70] sm:$0xff] }
 0x5ca   : > { %5332 = vmatprep.subr.bf16.mxu1 %v10597_v47  ;;  %v10936_v47 = vld [vmem:[#allocation2 + $0xa8] sm:$0xff] }
 0x5cc   : > { %4993 = vmatmul.mubr.bf16.gmra.mrb[56].mxu1 %v12158_v33  ;;  %v12613_v33 = vld [vmem:[#allocation2 + $0x188] sm:$0xff] }
 0x5cd   : > { %9050 = vmatprep.mubr.msk.bf16.mxu1 %vm3849_vm1, %v12468_v28  ;;  %5333 = vmatpush1.bf16.msra.mxu1 %v10595_v22  ;;  %v10622_v22 = vld [vmem:[%s13731_s3 + $0x3f0] ss:$8 sps:$4 sm:$0xff]  }
 0x5ce   : > { %5334 = vmatprep.subr.bf16.mxu1 %v10600_v4  ;;  %v10627_v4 = vld [vmem:[%s13731_s3 + $0x404] ss:$8 sps:$4 sm:$0xff]  }
 0x5d1   : > { %5335 = vmatpush1.bf16.msra.mxu1 %v10598_v25  ;;  %v10625_v25 = vld [vmem:[%s13731_s3 + $0x400] ss:$8 sps:$4 sm:$0xff]  }
 0x5d2   : > { %5705 = vmatprep.subr.bf16.mxu1 %v10603_v10  ;;  %v10630_v10 = vld [vmem:[%s13731_s3 + $0x414] ss:$8 sps:$4 sm:$0xff]  }
 0x5d4   : > { %5003 = vmatmul.mubr.bf16.gmra.mrb[60].mxu1 %v12167_v51  ;;  %v12618_v51 = vld [vmem:[#allocation2 + $0x198] sm:$0xff] }
 0x5d5   : > { %9051 = vmatprep.mubr.msk.bf16.mxu1 %vm3849_vm1, %v12473_v19 }
 0x5dc   : > { %5013 = vmatmul.mubr.bf16.gmra.mrb[64].mxu1 %v12194_v42  ;;  %v10928_v42 = vld [vmem:[#allocation2 + $0x28] sm:$0xff] }
 0x5dd   : > { %9052 = vmatprep.mubr.msk.bf16.mxu1 %vm3849_vm1, %v12478_v3 }
 0x5e4   : > { %5023 = vmatmul.mubr.bf16.gmra.mrb[68].mxu1 %v12207_v31  ;;  %v10601_v31 = vld [vmem:[%s13731_s3 + $0x380] ss:$8 sps:$4 sm:$0xff]  }
 0x5e5   : > { %9053 = vmatprep.mubr.msk.bf16.mxu1 %vm3849_vm1, %v12483_v38 }
 0x5ec   : > { %5033 = vmatmul.mubr.bf16.gmra.mrb[72].mxu1 %v12238_v63 }
 0x5ed   : > { %9054 = vmatprep.mubr.msk.bf16.mxu1 %vm3849_vm1, %v12488_v32 }
 0x5f4   : > { %5043 = vmatmul.mubr.bf16.gmra.mrb[76].mxu1 %v12254_v12 }
 0x5f5   : > { %9055 = vmatprep.mubr.msk.bf16.mxu1 %vm3849_vm1, %v12613_v33 }
 0x5fc   : > { %5053 = vmatmul.mubr.bf16.gmra.mrb[80].mxu1 %v12292_v53 }
 0x5fd   : > { %9056 = vmatprep.mubr.msk.bf16.mxu1 %vm3849_vm1, %v12618_v51 }
 0x604   : > { %5063 = vmatmul.mubr.bf16.gmra.mrb[84].mxu1 %v12309_v1 }
 0x605   : > { %9085 = vmatprep.mubr.msk.bf16.mxu1 %vm3849_vm1, %v10928_v42  ;;  %v10937_v42 = vld [vmem:[#allocation2 + $0xa0] sm:$0xff] }
 0x60c   : > { %5341 = vmatmul.mubr.bf16.vlgmr.msra.gmra.mrb[32].mxu1 %v10929_v48  ;;  %v10633_v48 = vld [vmem:[%s13731_s3 + $0x424] ss:$8 sps:$4 sm:$0xff]  }
 0x60d   : > { %9086 = vmatprep.mubr.msk.bf16.mxu1 %vm3849_vm1, %v10930_v50  ;;  %5706 = vmatpush1.bf16.msra.mxu1 %v10601_v31  ;;  %v10938_v31 = vld [vmem:[#allocation2 + $0xb8] sm:$0xff]  ;;  %v10631_v50 = vld [vmem:[%s13731_s3 + $0x420] ss:$8 sps:$4 sm:$0xff]  }
 0x60e   : > { %5707 = vmatprep.subr.bf16.mxu1 %v10606_v17  ;;  %v10628_v17 = vld [vmem:[%s13731_s3 + $0x410] ss:$8 sps:$4 sm:$0xff]  }
 0x611   : > { %5708 = vmatpush1.bf16.msra.mxu1 %v10604_v46  ;;  %v10636_v46 = vld [vmem:[%s13731_s3 + $0x434] ss:$8 sps:$4 sm:$0xff]  }
 0x612   : > { %5709 = vmatprep.subr.bf16.mxu1 %v10609_v26  ;;  %v10939_v26 = vld [vmem:[#allocation2 + $0xb0] sm:$0xff] }
 0x614   : > { %5351 = vmatmul.mubr.bf16.gmra.mrb[36].mxu1 %v10931_v49  ;;  %v10637_v49 = vld [vmem:[%s13731_s3 + $0x440] ss:$8 sps:$4 sm:$0xff]  }
 0x615   : > { %9087 = vmatprep.mubr.msk.bf16.mxu1 %vm3849_vm1, %v10932_v54  ;;  %5710 = vmatpush1.bf16.msra.mxu1 %v10607_v62  ;;  %v10634_v62 = vld [vmem:[%s13731_s3 + $0x430] ss:$8 sps:$4 sm:$0xff]  }
 0x616   : > { %5711 = vmatprep.subr.bf16.mxu1 %v10612_v5  ;;  %v10639_v5 = vld [vmem:[%s13731_s3 + $0x444] ss:$8 sps:$4 sm:$0xff]   ;;  %v10640_v54 = vld [vmem:[%s13731_s3 + $0x450] ss:$8 sps:$4 sm:$0xff]  }
 0x619   : > { %5712 = vmatpush1.bf16.msra.mxu1 %v10610_v37  ;;  %v10670_v37 = vld [vmem:[%s13733_s5 + $0x170] ss:$8 sps:$4 sm:$0xff]  }
 0x61a   : > { %5713 = vmatprep.subr.bf16.mxu1 %v10615_v13  ;;  %v10941_v13 = vld [vmem:[#allocation2 + $0xd0] sm:$0xff] }
 0x61c   : > { %5361 = vmatmul.mubr.bf16.gmra.mrb[40].mxu1 %v10933_v44  ;;  %v10688_v44 = vld [vmem:[%s13733_s5 + $0x10] ss:$8 sps:$4 sm:$0xff]  }
 0x61d   : > { %9088 = vmatprep.mubr.msk.bf16.mxu1 %vm3849_vm1, %v10934_v15  ;;  %5714 = vmatpush1.bf16.msra.mxu1 %v10613_v57  ;;  %v10942_v57 = vld [vmem:[#allocation2 + $0x100] sm:$0xff] }
 0x61e   : > { %5715 = vmatprep.subr.bf16.mxu1 %v10618_v52  ;;  %v10943_v52 = vld [vmem:[#allocation2 + $0x110] sm:$0xff]  ;;  %v10693_v15 = vld [vmem:[%s13733_s5 + $0x24] ss:$8 sps:$4 sm:$0xff]  }
 0x621   : > { %5716 = vmatpush1.bf16.msra.mxu1 %v10616_v16  ;;  %v10691_v16 = vld [vmem:[%s13733_s5 + $0x20] ss:$8 sps:$4 sm:$0xff]  }
 0x622   : > { %5717 = vmatprep.subr.bf16.mxu1 %v10621_v20  ;;  %v10694_v20 = vld [vmem:[%s13733_s5 + $0x30] ss:$8 sps:$4 sm:$0xff]  }
 0x624   : > { %5371 = vmatmul.mubr.bf16.gmra.mrb[44].mxu1 %v10935_v23  ;;  %v10697_v23 = vld [vmem:[%s13733_s5 + $0x40] ss:$8 sps:$4 sm:$0xff]  }
 0x625   : > { %9089 = vmatprep.mubr.msk.bf16.mxu1 %vm3849_vm1, %v10936_v47  ;;  %5718 = vmatpush1.bf16.msra.mxu1 %v10619_v14  ;;  %v10696_v14 = vld [vmem:[%s13733_s5 + $0x34] ss:$8 sps:$4 sm:$0xff]  }
 0x626   : > { %5719 = vmatprep.subr.bf16.mxu1 %v10624_v30  ;;  %v10699_v30 = vld [vmem:[%s13733_s5 + $0x44] ss:$8 sps:$4 sm:$0xff]   ;;  %v10702_v47 = vld [vmem:[%s13733_s5 + $0x54] ss:$8 sps:$4 sm:$0xff]  }
 0x629   : > { %5720 = vmatpush1.bf16.msra.mxu1 %v10622_v22  ;;  %v10700_v22 = vld [vmem:[%s13733_s5 + $0x50] ss:$8 sps:$4 sm:$0xff]  }
 0x62a   : > { %5721 = vmatprep.subr.bf16.mxu1 %v10627_v4  ;;  %v10705_v4 = vld [vmem:[%s13733_s5 + $0x64] ss:$8 sps:$4 sm:$0xff]  }
 0x62c   : > { %5381 = vmatmul.mubr.bf16.gmra.mrb[48].mxu1 %v10937_v42  ;;  %v10706_v42 = vld [vmem:[%s13733_s5 + $0x70] ss:$8 sps:$4 sm:$0xff]  }
 0x62d   : > { %9090 = vmatprep.mubr.msk.bf16.mxu1 %vm3849_vm1, %v10938_v31  ;;  %5722 = vmatpush1.bf16.msra.mxu1 %v10625_v25  ;;  %v10703_v25 = vld [vmem:[%s13733_s5 + $0x60] ss:$8 sps:$4 sm:$0xff]   ;;  %v10711_v31 = vld [vmem:[%s13733_s5 + $0x84] ss:$8 sps:$4 sm:$0xff]  }
 0x62e   : > { %5723 = vmatprep.subr.bf16.mxu1 %v10630_v10  ;;  %v10708_v10 = vld [vmem:[%s13733_s5 + $0x74] ss:$8 sps:$4 sm:$0xff]  }
 0x631   : > { %5724 = vmatpush1.bf16.msra.mxu1 %v10628_v17  ;;  %v10709_v17 = vld [vmem:[%s13733_s5 + $0x80] ss:$8 sps:$4 sm:$0xff]  }
 0x632   : > { %5725 = vmatprep.subr.bf16.mxu1 %v10633_v48  ;;  %v10714_v48 = vld [vmem:[%s13733_s5 + $0x94] ss:$8 sps:$4 sm:$0xff]  }
 0x634   : > { %5391 = vmatmul.mubr.bf16.gmra.mrb[52].mxu1 %v10939_v26  ;;  %v10715_v26 = vld [vmem:[%s13733_s5 + $0xa0] ss:$8 sps:$4 sm:$0xff]  }
 0x635   : > { %9091 = vmatprep.mubr.msk.bf16.mxu1 %vm3849_vm1, %v12185_v11  ;;  %5726 = vmatpush1.bf16.msra.mxu1 %v10631_v50  ;;  %v10642_v11 = vld [vmem:[%s13731_s3 + $0x454] ss:$8 sps:$4 sm:$0xff]   ;;  %v10712_v50 = vld [vmem:[%s13733_s5 + $0x90] ss:$8 sps:$4 sm:$0xff]  }
 0x636   : > { %5727 = vmatprep.subr.bf16.mxu1 %v10636_v46  ;;  %v10717_v46 = vld [vmem:[%s13733_s5 + $0xa4] ss:$8 sps:$4 sm:$0xff]  }
 0x639   : > { %5728 = vmatpush1.bf16.msra.mxu1 %v10634_v62  ;;  %v10720_v62 = vld [vmem:[%s13733_s5 + $0xb4] ss:$8 sps:$4 sm:$0xff]  }
 0x63a   : > { %5729 = vmatprep.subr.bf16.mxu1 %v10639_v5  ;;  %v10718_v5 = vld [vmem:[%s13733_s5 + $0xb0] ss:$8 sps:$4 sm:$0xff]  }
 0x63c   : > { %5401 = vmatmul.mubr.bf16.gmra.mrb[56].mxu1 %v12175_v35  ;;  %v5131_v35 = vld [vmem:[#allocation2 + $0x1a8] sm:$0xff] }
 0x63d   : > { %9092 = vmatprep.mubr.msk.bf16.mxu1 %vm3849_vm1, %v12198_v0  ;;  %5730 = vmatpush1.bf16.msra.mxu1 %v10637_v49  ;;  %v5133_v0 = vld [vmem:[#allocation2 + $0x1b8] sm:$0xff]  ;;  %v10723_v49 = vld [vmem:[%s13733_s5 + $0xc4] ss:$8 sps:$4 sm:$0xff]  }
 0x63e   : > { %5731 = vmatprep.subr.bf16.mxu1 %v10642_v11  ;;  %v10721_v11 = vld [vmem:[%s13733_s5 + $0xc0] ss:$8 sps:$4 sm:$0xff]  }
 0x641   : > { %5732 = vmatpush1.bf16.msra.mxu1 %v10640_v54  ;;  %v10726_v54 = vld [vmem:[%s13733_s5 + $0xd4] ss:$8 sps:$4 sm:$0xff]  }
 0x644   : > { %5411 = vmatmul.mubr.bf16.gmra.mrb[60].mxu1 %v12182_v60  ;;  %v10645_v60 = vld [vmem:[%s13733_s5 + $0xe4] ss:$8 sps:$4 sm:$0xff]  }
 0x645   : > { %9093 = vmatprep.mubr.msk.bf16.mxu1 %vm3849_vm1, %v12225_v8  ;;  %6357 = vmatprep.subr.bf16.mxu1 %v10645_v60  ;;  %v10646_v8 = vld [vmem:[%s13733_s5 + $0xf0] ss:$8 sps:$4 sm:$0xff]   ;;  %v10729_v60 = vld [vmem:[%s13733_s5 + $0x1c4] ss:$8 sps:$4 sm:$0xff]  }
 0x64c   : > { %5421 = vmatmul.mubr.bf16.gmra.mrb[64].mxu1 %v12215_v61  ;;  %v10643_v61 = vld [vmem:[%s13733_s5 + $0xe0] ss:$8 sps:$4 sm:$0xff]  }
 0x64d   : > { %9094 = vmatprep.mubr.msk.bf16.mxu1 %vm3849_vm1, %v12241_v55  ;;  %v10651_v55 = vld [vmem:[%s13733_s5 + $0x104] ss:$8 sps:$4 sm:$0xff]  }
 0x654   : > { %5431 = vmatmul.mubr.bf16.gmra.mrb[68].mxu1 %v12222_v45  ;;  %v10648_v45 = vld [vmem:[%s13733_s5 + $0xf4] ss:$8 sps:$4 sm:$0xff]  }
 0x655   : > { %9095 = vmatprep.mubr.msk.bf16.mxu1 %vm3849_vm1, %v12282_v6  ;;  %v10652_v6 = vld [vmem:[%s13733_s5 + $0x110] ss:$8 sps:$4 sm:$0xff]  }
 0x65c   : > { %5441 = vmatmul.mubr.bf16.gmra.mrb[72].mxu1 %v12265_v34  ;;  %v10649_v34 = vld [vmem:[%s13733_s5 + $0x100] ss:$8 sps:$4 sm:$0xff]  }
 0x65d   : > { %9096 = vmatprep.mubr.msk.bf16.mxu1 %vm3849_vm1, %v12298_v39  ;;  %v10657_v39 = vld [vmem:[%s13733_s5 + $0x124] ss:$8 sps:$4 sm:$0xff]  }
 0x664   : > { %5451 = vmatmul.mubr.bf16.gmra.mrb[76].mxu1 %v12276_v18  ;;  %v10654_v18 = vld [vmem:[%s13733_s5 + $0x114] ss:$8 sps:$4 sm:$0xff]  }
 0x665   : > { %9097 = vmatprep.mubr.msk.bf16.mxu1 %vm3849_vm1, %v5131_v35  ;;  %v10724_v35 = vld [vmem:[%s13733_s5 + $0xd0] ss:$8 sps:$4 sm:$0xff]  }
 0x66c   : > { %5461 = vmatmul.mubr.bf16.gmra.mrb[80].mxu1 %v12334_v43  ;;  %v10655_v43 = vld [vmem:[%s13733_s5 + $0x120] ss:$8 sps:$4 sm:$0xff]  }
 0x66d   : > { %9098 = vmatprep.mubr.msk.bf16.mxu1 %vm3849_vm1, %v5133_v0  ;;  %v5934_v0 = vld [vmem:[%s13732_s4] sm:$0x3] }
 0x674   : > { %5471 = vmatmul.mubr.bf16.gmra.mrb[84].mxu1 %v12362_v27  ;;  %v10660_v27 = vld [vmem:[%s13733_s5 + $0x134] ss:$8 sps:$4 sm:$0xff]  }
 0x675   : > { %9127 = vmatprep.mubr.msk.bf16.mxu1 %vm3849_vm1, %v12393_v40  ;;  %v10658_v40 = vld [vmem:[%s13733_s5 + $0x130] ss:$8 sps:$4 sm:$0xff]  }
 0x67c   : > { %5738 = vmatmul.mubr.bf16.vlgmr.msra.gmra.mrb[32].mxu1 %v12409_v41  ;;  %v10663_v41 = vld [vmem:[%s13733_s5 + $0x144] ss:$8 sps:$4 sm:$0xff]  }
 0x67d   : > { %9128 = vmatprep.mubr.msk.bf16.mxu1 %vm3849_vm1, %v12412_v36  ;;  %6358 = vmatpush1.bf16.msra.mxu1 %v10643_v61  ;;  %v10661_v36 = vld [vmem:[%s13733_s5 + $0x140] ss:$8 sps:$4 sm:$0xff]   ;;  %v12947_v61 = vrot.slane %v5934_v0, %v11936_v58 }
 0x67e   : > { %6359 = vmatprep.subr.bf16.mxu1 %v10648_v45  ;;  %v12950_v45 = vrot.slane %v5934_v0, %v11938_v59 }
 0x681   : > { %6360 = vmatpush1.bf16.msra.mxu1 %v10646_v8 }
 0x682   : > { %6361 = vmatprep.subr.bf16.mxu1 %v10651_v55 }
 0x684   : > { %5748 = vmatmul.mubr.bf16.gmra.mrb[36].mxu1 %v12428_v7  ;;  %v10666_v7 = vld [vmem:[%s13733_s5 + $0x154] ss:$8 sps:$4 sm:$0xff]  }
 0x685   : > { %9129 = vmatprep.mubr.msk.bf16.mxu1 %vm3849_vm1, %v12431_v56  ;;  %6362 = vmatpush1.bf16.msra.mxu1 %v10649_v34  ;;  %v10664_v56 = vld [vmem:[%s13733_s5 + $0x150] ss:$8 sps:$4 sm:$0xff]  }
 0x686   : > { %6363 = vmatprep.subr.bf16.mxu1 %v10654_v18 }
 0x689   : > { %6364 = vmatpush1.bf16.msra.mxu1 %v10652_v6 }
 0x68a   : > { %6365 = vmatprep.subr.bf16.mxu1 %v10657_v39 }
 0x68c   : > { %5758 = vmatmul.mubr.bf16.gmra.mrb[40].mxu1 %v12447_v21  ;;  %v10669_v21 = vld [vmem:[%s13733_s5 + $0x164] ss:$8 sps:$4 sm:$0xff]  }
 0x68d   : > { %9130 = vmatprep.mubr.msk.bf16.mxu1 %vm3849_vm1, %v12450_v24  ;;  %6366 = vmatpush1.bf16.msra.mxu1 %v10655_v43  ;;  %v10667_v24 = vld [vmem:[%s13733_s5 + $0x160] ss:$8 sps:$4 sm:$0xff]  }
 0x68e   : > { %6367 = vmatprep.subr.bf16.mxu1 %v10660_v27 }
 0x691   : > { %6368 = vmatpush1.bf16.msra.mxu1 %v10658_v40 }
 0x692   : > { %6369 = vmatprep.subr.bf16.mxu1 %v10663_v41 }
 0x694   : > { %5768 = vmatmul.mubr.bf16.gmra.mrb[44].mxu1 %v12460_v29  ;;  %v10672_v29 = vld [vmem:[%s13733_s5 + $0x174] ss:$8 sps:$4 sm:$0xff]  }
 0x695   : > { %9131 = vmatprep.mubr.msk.bf16.mxu1 %vm3849_vm1, %v12463_v9  ;;  %6370 = vmatpush1.bf16.msra.mxu1 %v10661_v36  ;;  %v10940_v9 = vld [vmem:[#allocation2 + $0xc0] sm:$0xff] }
 0x696   : > { %6371 = vmatprep.subr.bf16.mxu1 %v10666_v7 }
 0x699   : > { %6372 = vmatpush1.bf16.msra.mxu1 %v10664_v56 }
 0x69a   : > { %6373 = vmatprep.subr.bf16.mxu1 %v10669_v21 }
 0x69c   : > { %5778 = vmatmul.mubr.bf16.gmra.mrb[48].mxu1 %v10940_v9 }
 0x69d   : > { %9132 = vmatprep.mubr.msk.bf16.mxu1 %vm3849_vm1, %v12468_v28  ;;  %6374 = vmatpush1.bf16.msra.mxu1 %v10667_v24  ;;  %v10675_v28 = vld [vmem:[%s13733_s5 + $0x184] ss:$8 sps:$4 sm:$0xff]  }
 0x69e   : > { %6375 = vmatprep.subr.bf16.mxu1 %v10672_v29 }
 0x6a1   : > { %6376 = vmatpush1.bf16.msra.mxu1 %v10670_v37 }
 0x6a2   : > { %6377 = vmatprep.subr.bf16.mxu1 %v10675_v28 }
 0x6a4   : > { %5788 = vmatmul.mubr.bf16.gmra.mrb[52].mxu1 %v10941_v13 }
 0x6a5   : > { %9133 = vmatprep.mubr.msk.bf16.mxu1 %vm3849_vm1, %v12473_v19  ;;  %v10681_v19 = vld [vmem:[%s13733_s5 + $0x1a4] ss:$8 sps:$4 sm:$0xff]  }
 0x6ac   : > { %5798 = vmatmul.mubr.bf16.gmra.mrb[56].mxu1 %v10942_v57 }
 0x6ad   : > { %9134 = vmatprep.mubr.msk.bf16.mxu1 %vm3849_vm1, %v12478_v3  ;;  %v10684_v3 = vld [vmem:[%s13733_s5 + $0x1b4] ss:$8 sps:$4 sm:$0xff]  }
 0x6b4   : > { %5808 = vmatmul.mubr.bf16.gmra.mrb[60].mxu1 %v10943_v52 }
 0x6b5   : > { %9135 = vmatprep.mubr.msk.bf16.mxu1 %vm3849_vm1, %v12483_v38  ;;  %v10682_v38 = vld [vmem:[%s13733_s5 + $0x1b0] ss:$8 sps:$4 sm:$0xff]  }
 0x6bc   : > { %5818 = vmatmul.mubr.bf16.gmra.mrb[64].mxu1 %v12238_v63  ;;  %v10673_v63 = vld [vmem:[%s13733_s5 + $0x180] ss:$8 sps:$4 sm:$0xff]  }
 0x6bd   : > { %9136 = vmatprep.mubr.msk.bf16.mxu1 %vm3849_vm1, %v12488_v32  ;;  %6378 = vmatpush1.bf16.msra.mxu1 %v10673_v63  ;;  %v10687_v32 = vld [vmem:[%s13733_s5 + $0x4] ss:$8 sps:$4 sm:$0xff]  }
 0x6c4   : > { %5828 = vmatmul.mubr.bf16.gmra.mrb[68].mxu1 %v12254_v12  ;;  %v10678_v12 = vld [vmem:[%s13733_s5 + $0x194] ss:$8 sps:$4 sm:$0xff]  }
 0x6c5   : > { %9137 = vmatprep.mubr.msk.bf16.mxu1 %vm3849_vm1, %v12613_v33  ;;  %6379 = vmatprep.subr.bf16.mxu1 %v10678_v12  ;;  %v10685_v33 = vld [vmem:[%s13733_s5] ss:$8 sps:$4 sm:$0xff]  }
 0x6cc   : > { %5838 = vmatmul.mubr.bf16.gmra.mrb[72].mxu1 %v12292_v53  ;;  %v10676_v53 = vld [vmem:[%s13733_s5 + $0x190] ss:$8 sps:$4 sm:$0xff]  }
 0x6cd   : > { %9138 = vmatprep.mubr.msk.bf16.mxu1 %vm3849_vm1, %v12618_v51  ;;  %6380 = vmatpush1.bf16.msra.mxu1 %v10676_v53  ;;  %v10690_v51 = vld [vmem:[%s13733_s5 + $0x14] ss:$8 sps:$4 sm:$0xff]  }
 0x6ce   : > { %6381 = vmatprep.subr.bf16.mxu1 %v10681_v19 }
 0x6d4   : > { %5848 = vmatmul.mubr.bf16.gmra.mrb[76].mxu1 %v12309_v1  ;;  %v10679_v1 = vld [vmem:[%s13733_s5 + $0x1a0] ss:$8 sps:$4 sm:$0xff]  }
 0x6d5   : > { %5857 = vmatprep.mubr.bf16.mxu1 %v11008_v2  ;;  %6382 = vmatpush1.bf16.msra.mxu1 %v10679_v1 }
 0x6d6   : > { %6383 = vmatprep.subr.bf16.mxu1 %v10684_v3 }
 0x6d9   : > { %6384 = vmatpush1.bf16.msra.mxu1 %v10682_v38 }
 0x6da   : > { %6628 = vmatprep.subr.bf16.mxu1 %v10687_v32 }
 0x6dc   : > { %5858 = vmatmul.mubr.bf16.gmra.mrb[80].mxu1 %v11008_v2 }
 0x6dd   : > { %5867 = vmatprep.mubr.bf16.mxu1 %v11008_v2 }
 0x6e4   : > { %5868 = vmatmul.mubr.bf16.gmra.mrb[84].mxu1 %v11008_v2 }
 0x6e5   : > { %6389 = vmatprep.mubr.bf16.mxu1 %v11008_v2 }
 0x6ec   : > { %6390 = vmatmul.mubr.bf16.vlgmr.msra.gmra.mrb[88].mxu1 %v11008_v2 }
 0x6ed   : > { %6399 = vmatprep.mubr.bf16.mxu1 %v11008_v2  ;;  %6629 = vmatpush1.bf16.msra.mxu1 %v10685_v33 }
 0x6ee   : > { %6630 = vmatprep.subr.bf16.mxu1 %v10690_v51 }
 0x6f1   : > { %6631 = vmatpush1.bf16.msra.mxu1 %v10688_v44 }
 0x6f2   : > { %6632 = vmatprep.subr.bf16.mxu1 %v10693_v15 }
 0x6f4   : > { %6400 = vmatmul.mubr.bf16.gmra.mrb[92].mxu1 %v11008_v2 }
 0x6f5   : > { %6633 = vmatpush1.bf16.msra.mxu1 %v10691_v16 }
 0x6f6   : > { %6634 = vmatprep.subr.bf16.mxu1 %v10696_v14 }
 0x6f9   : > { %6635 = vmatpush1.bf16.msra.mxu1 %v10694_v20 }
 0x6fa   : > { %6636 = vmatprep.subr.bf16.mxu1 %v10699_v30 }
 0x6fd   : > { %6637 = vmatpush1.bf16.msra.mxu1 %v10697_v23 }
 0x6fe   : > { %6638 = vmatprep.subr.bf16.mxu1 %v10702_v47 }
 0x701   : > { %6639 = vmatpush1.bf16.msra.mxu1 %v10700_v22 }
 0x702   : > { %6640 = vmatprep.subr.bf16.mxu1 %v10705_v4 }
 0x705   : > { %6641 = vmatpush1.bf16.msra.mxu1 %v10703_v25 }
 0x706   : > { %6642 = vmatprep.subr.bf16.mxu1 %v10708_v10 }
 0x709   : > { %6643 = vmatpush1.bf16.msra.mxu1 %v10706_v42 }
 0x70a   : > { %6644 = vmatprep.subr.bf16.mxu1 %v10711_v31 }
 0x70d   : > { %6645 = vmatpush1.bf16.msra.mxu1 %v10709_v17 }
 0x70e   : > { %6646 = vmatprep.subr.bf16.mxu1 %v10714_v48 }
 0x711   : > { %6647 = vmatpush1.bf16.msra.mxu1 %v10712_v50 }
 0x712   : > { %6648 = vmatprep.subr.bf16.mxu1 %v10717_v46 }
 0x715   : > { %6649 = vmatpush1.bf16.msra.mxu1 %v10715_v26 }
 0x716   : > { %6650 = vmatprep.subr.bf16.mxu1 %v10720_v62 }
 0x719   : > { %6651 = vmatpush1.bf16.msra.mxu1 %v10718_v5 }
 0x71a   : > { %6652 = vmatprep.subr.bf16.mxu1 %v10723_v49 }
 0x71d   : > { %6653 = vmatpush1.bf16.msra.mxu1 %v10721_v11 }
 0x71e   : > { %6654 = vmatprep.subr.bf16.mxu1 %v10726_v54 }
 0x721   : > { %6655 = vmatpush1.bf16.msra.mxu1 %v10724_v35 }
 0x722   : > { %6920 = vmatprep.subr.bf16.mxu1 %v10729_v60 }
 0x74f   : > { %v5739_v8 = vpop.f32.mrb[32].mxu1 }
 0x750   : > { %v5946_v55 = vadd.f32 %v12947_v61, %v5739_v8  ;;  %v5741_v34 = vpop.f32.mrb[33].mxu1 }
 0x751   : > { %v5947_v18 = vadd.f32 %v12950_v45, %v5741_v34  ;;  %v5743_v6 = vpop.f32.mrb[34].mxu1 }
 0x752   : > { %v5948_v39 = vadd.f32 %v12947_v61, %v5743_v6  ;;  %v5745_v43 = vpop.f32.mrb[35].mxu1  ;;  %v6002_v40 = vmax.f32 %v5946_v55, 0.0 }
 0x753   : > { %v5949_v27 = vadd.f32 %v12950_v45, %v5745_v43  ;;  %v6003_v36 = vmax.f32 %v5947_v18, 0.0 }
 0x754   : > { %v6004_v41 = vmax.f32 %v5948_v39, 0.0 }
 0x755   : > { %v6005_v7 = vmax.f32 %v5949_v27, 0.0 }
 0x756   : > { %v12956_v56 = vpack.c.bf16 %v6004_v41, %v6002_v40 }
 0x757   : > { %v6059_v21 = vpack.c.bf16 %v6005_v7, %v6003_v36  ;;  %v5749_v24 = vpop.f32.mrb[36].mxu1 }
 0x758   : > { %v5950_v29 = vadd.f32 %v12947_v61, %v5749_v24  ;;  %v5751_v9 = vpop.f32.mrb[37].mxu1 }
 0x759   : > { %6087 = vst.msk [vmem:[#allocation3 + $0x8] sm:$0xff] %vm3849_vm1, %v6059_v21  ;;  %v5951_v37 = vadd.f32 %v12950_v45, %v5751_v9  ;;  %v5753_v13 = vpop.f32.mrb[38].mxu1 }
 0x75a   : > { %v5952_v57 = vadd.f32 %v12947_v61, %v5753_v13  ;;  %v5755_v52 = vpop.f32.mrb[39].mxu1  ;;  %v6006_v63 = vmax.f32 %v5950_v29, 0.0 }
 0x75b   : > { %v5953_v28 = vadd.f32 %v12950_v45, %v5755_v52  ;;  %v6007_v53 = vmax.f32 %v5951_v37, 0.0 }
 0x75c   : > { %v6008_v12 = vmax.f32 %v5952_v57, 0.0 }
 0x75d   : > { %v6009_v19 = vmax.f32 %v5953_v28, 0.0 }
 0x75e   : > { %v12963_v1 = vpack.c.bf16 %v6008_v12, %v6006_v63 }
 0x75f   : > { %v6061_v3 = vpack.c.bf16 %v6009_v19, %v6007_v53  ;;  %v5759_v38 = vpop.f32.mrb[40].mxu1 }
 0x760   : > { %v5954_v32 = vadd.f32 %v12947_v61, %v5759_v38  ;;  %v5761_v33 = vpop.f32.mrb[41].mxu1 }
 0x761   : > { %6089 = vst.msk [vmem:[#allocation3 + $0x18] sm:$0xff] %vm3849_vm1, %v6061_v3  ;;  %v5955_v51 = vadd.f32 %v12950_v45, %v5761_v33  ;;  %v5763_v44 = vpop.f32.mrb[42].mxu1 }
 0x762   : > { %v5956_v15 = vadd.f32 %v12947_v61, %v5763_v44  ;;  %v5765_v16 = vpop.f32.mrb[43].mxu1  ;;  %v6010_v14 = vmax.f32 %v5954_v32, 0.0 }
 0x763   : > { %v5957_v20 = vadd.f32 %v12950_v45, %v5765_v16  ;;  %v6011_v23 = vmax.f32 %v5955_v51, 0.0 }
 0x764   : > { %v6012_v30 = vmax.f32 %v5956_v15, 0.0 }
 0x765   : > { %v6013_v47 = vmax.f32 %v5957_v20, 0.0 }
 0x766   : > { %v12970_v22 = vpack.c.bf16 %v6012_v30, %v6010_v14 }
 0x767   : > { %v6063_v4 = vpack.c.bf16 %v6013_v47, %v6011_v23  ;;  %v5769_v25 = vpop.f32.mrb[44].mxu1 }
 0x768   : > { %v5958_v10 = vadd.f32 %v12947_v61, %v5769_v25  ;;  %v5771_v42 = vpop.f32.mrb[45].mxu1 }
 0x769   : > { %6091 = vst.msk [vmem:[#allocation3 + $0x28] sm:$0xff] %vm3849_vm1, %v6063_v4  ;;  %v5959_v31 = vadd.f32 %v12950_v45, %v5771_v42  ;;  %v5773_v17 = vpop.f32.mrb[46].mxu1 }
 0x76a   : > { %v5960_v48 = vadd.f32 %v12947_v61, %v5773_v17  ;;  %v5775_v50 = vpop.f32.mrb[47].mxu1  ;;  %v6014_v26 = vmax.f32 %v5958_v10, 0.0 }
 0x76b   : > { %v5961_v46 = vadd.f32 %v12950_v45, %v5775_v50  ;;  %v6015_v5 = vmax.f32 %v5959_v31, 0.0 }
 0x76c   : > { %v6016_v62 = vmax.f32 %v5960_v48, 0.0 }
 0x76d   : > { %v6017_v49 = vmax.f32 %v5961_v46, 0.0 }
 0x76e   : > { %v12977_v11 = vpack.c.bf16 %v6016_v62, %v6014_v26 }
 0x76f   : > { %v6065_v54 = vpack.c.bf16 %v6017_v49, %v6015_v5  ;;  %v5779_v35 = vpop.f32.mrb[48].mxu1 }
 0x770   : > { %v5962_v60 = vadd.f32 %v12947_v61, %v5779_v35  ;;  %v5781_v0 = vpop.f32.mrb[49].mxu1  ;;  %v12980_v8 = vld [vmem:[#allocation3 + $0x28] sm:$0xff] }
 0x771   : > { %6093 = vst.msk [vmem:[#allocation3 + $0x38] sm:$0xff] %vm3849_vm1, %v6065_v54  ;;  %v5963_v55 = vadd.f32 %v12950_v45, %v5781_v0  ;;  %v5783_v34 = vpop.f32.mrb[50].mxu1  ;;  %9167 = vmatprep.mubr.msk.bf16.mxu1 %vm3849_vm1, %v12980_v8 }
 0x772   : > { %v5964_v18 = vadd.f32 %v12947_v61, %v5783_v34  ;;  %v5785_v6 = vpop.f32.mrb[51].mxu1  ;;  %6410 = vmatmul.mubr.bf16.gmra.mrb[96].mxu1 %v12970_v22  ;;  %v6018_v43 = vmax.f32 %v5962_v60, 0.0 }
 0x773   : > { %v5965_v39 = vadd.f32 %v12950_v45, %v5785_v6  ;;  %v6019_v40 = vmax.f32 %v5963_v55, 0.0 }
 0x774   : > { %v6020_v27 = vmax.f32 %v5964_v18, 0.0 }
 0x775   : > { %v6021_v41 = vmax.f32 %v5965_v39, 0.0 }
 0x776   : > { %v12989_v36 = vpack.c.bf16 %v6020_v27, %v6018_v43 }
 0x777   : > { %v6067_v7 = vpack.c.bf16 %v6021_v41, %v6019_v40  ;;  %v5789_v21 = vpop.f32.mrb[52].mxu1 }
 0x778   : > { %v5966_v24 = vadd.f32 %v12947_v61, %v5789_v21  ;;  %v5791_v29 = vpop.f32.mrb[53].mxu1  ;;  %v12992_v9 = vld [vmem:[#allocation3 + $0x38] sm:$0xff] }
 0x779   : > { %6095 = vst.msk [vmem:[#allocation3 + $0x48] sm:$0xff] %vm3849_vm1, %v6067_v7  ;;  %v5967_v37 = vadd.f32 %v12950_v45, %v5791_v29  ;;  %v5793_v13 = vpop.f32.mrb[54].mxu1  ;;  %9168 = vmatprep.mubr.msk.bf16.mxu1 %vm3849_vm1, %v12992_v9 }
 0x77a   : > { %v5968_v57 = vadd.f32 %v12947_v61, %v5793_v13  ;;  %v5795_v52 = vpop.f32.mrb[55].mxu1  ;;  %6420 = vmatmul.mubr.bf16.gmra.mrb[100].mxu1 %v12977_v11  ;;  %v6022_v63 = vmax.f32 %v5966_v24, 0.0 }
 0x77b   : > { %v5969_v28 = vadd.f32 %v12950_v45, %v5795_v52  ;;  %v6023_v53 = vmax.f32 %v5967_v37, 0.0 }
 0x77c   : > { %v6024_v12 = vmax.f32 %v5968_v57, 0.0 }
 0x77d   : > { %v6025_v19 = vmax.f32 %v5969_v28, 0.0 }
 0x77e   : > { %v13001_v3 = vpack.c.bf16 %v6024_v12, %v6022_v63 }
 0x77f   : > { %v6069_v38 = vpack.c.bf16 %v6025_v19, %v6023_v53  ;;  %v5799_v32 = vpop.f32.mrb[56].mxu1 }
 0x780   : > { %v5970_v33 = vadd.f32 %v12947_v61, %v5799_v32  ;;  %v5801_v51 = vpop.f32.mrb[57].mxu1 }
 0x781   : > { %6097 = vst.msk [vmem:[#allocation3 + $0x58] sm:$0xff] %vm3849_vm1, %v6069_v38  ;;  %v5971_v44 = vadd.f32 %v12950_v45, %v5801_v51  ;;  %v5803_v15 = vpop.f32.mrb[58].mxu1 }
 0x782   : > { %v5972_v16 = vadd.f32 %v12947_v61, %v5803_v15  ;;  %v5805_v20 = vpop.f32.mrb[59].mxu1  ;;  %v6026_v30 = vmax.f32 %v5970_v33, 0.0 }
 0x783   : > { %v5973_v14 = vadd.f32 %v12950_v45, %v5805_v20  ;;  %v6027_v47 = vmax.f32 %v5971_v44, 0.0 }
 0x784   : > { %v6028_v23 = vmax.f32 %v5972_v16, 0.0 }
 0x785   : > { %v6029_v4 = vmax.f32 %v5973_v14, 0.0 }
 0x786   : > { %v13008_v25 = vpack.c.bf16 %v6028_v23, %v6026_v30 }
 0x787   : > { %v6071_v10 = vpack.c.bf16 %v6029_v4, %v6027_v47  ;;  %v5809_v42 = vpop.f32.mrb[60].mxu1 }
 0x788   : > { %v5974_v31 = vadd.f32 %v12947_v61, %v5809_v42  ;;  %v5811_v17 = vpop.f32.mrb[61].mxu1 }
 0x789   : > { %6099 = vst.msk [vmem:[#allocation3 + $0x68] sm:$0xff] %vm3849_vm1, %v6071_v10  ;;  %v5975_v48 = vadd.f32 %v12950_v45, %v5811_v17  ;;  %v5813_v50 = vpop.f32.mrb[62].mxu1 }
 0x78a   : > { %v5976_v46 = vadd.f32 %v12947_v61, %v5813_v50  ;;  %v5815_v26 = vpop.f32.mrb[63].mxu1  ;;  %v6030_v5 = vmax.f32 %v5974_v31, 0.0 }
 0x78b   : > { %v5977_v62 = vadd.f32 %v12950_v45, %v5815_v26  ;;  %v6031_v54 = vmax.f32 %v5975_v48, 0.0 }
 0x78c   : > { %v6032_v49 = vmax.f32 %v5976_v46, 0.0 }
 0x78d   : > { %v6033_v35 = vmax.f32 %v5977_v62, 0.0 }
 0x78e   : > { %v13015_v60 = vpack.c.bf16 %v6032_v49, %v6030_v5 }
 0x78f   : > { %v6073_v0 = vpack.c.bf16 %v6033_v35, %v6031_v54  ;;  %v5819_v55 = vpop.f32.mrb[64].mxu1 }
 0x790   : > { %v5978_v34 = vadd.f32 %v12947_v61, %v5819_v55  ;;  %v5821_v18 = vpop.f32.mrb[65].mxu1  ;;  %v13018_v6 = vld [vmem:[#allocation3 + $0x68] sm:$0xff] }
 0x791   : > { %6101 = vst.msk [vmem:[#allocation3 + $0x78] sm:$0xff] %vm3849_vm1, %v6073_v0  ;;  %v5979_v39 = vadd.f32 %v12950_v45, %v5821_v18  ;;  %v5823_v43 = vpop.f32.mrb[66].mxu1  ;;  %9169 = vmatprep.mubr.msk.bf16.mxu1 %vm3849_vm1, %v13018_v6 }
 0x792   : > { %v5980_v27 = vadd.f32 %v12947_v61, %v5823_v43  ;;  %v5825_v40 = vpop.f32.mrb[67].mxu1  ;;  %6430 = vmatmul.mubr.bf16.gmra.mrb[104].mxu1 %v13008_v25  ;;  %v6034_v7 = vmax.f32 %v5978_v34, 0.0 }
 0x793   : > { %v5981_v41 = vadd.f32 %v12950_v45, %v5825_v40  ;;  %v6035_v24 = vmax.f32 %v5979_v39, 0.0 }
 0x794   : > { %v6036_v21 = vmax.f32 %v5980_v27, 0.0 }
 0x795   : > { %v6037_v29 = vmax.f32 %v5981_v41, 0.0 }
 0x796   : > { %v13027_v37 = vpack.c.bf16 %v6036_v21, %v6034_v7 }
 0x797   : > { %v6075_v13 = vpack.c.bf16 %v6037_v29, %v6035_v24  ;;  %v5829_v57 = vpop.f32.mrb[68].mxu1 }
 0x798   : > { %v5982_v52 = vadd.f32 %v12947_v61, %v5829_v57  ;;  %v5831_v28 = vpop.f32.mrb[69].mxu1  ;;  %v13030_v63 = vld [vmem:[#allocation3 + $0x78] sm:$0xff] }
 0x799   : > { %6103 = vst.msk [vmem:[#allocation3 + $0x88] sm:$0xff] %vm3849_vm1, %v6075_v13  ;;  %v5983_v12 = vadd.f32 %v12950_v45, %v5831_v28  ;;  %v5833_v53 = vpop.f32.mrb[70].mxu1  ;;  %9170 = vmatprep.mubr.msk.bf16.mxu1 %vm3849_vm1, %v13030_v63 }
 0x79a   : > { %v5984_v19 = vadd.f32 %v12947_v61, %v5833_v53  ;;  %v5835_v38 = vpop.f32.mrb[71].mxu1  ;;  %6440 = vmatmul.mubr.bf16.gmra.mrb[108].mxu1 %v13015_v60  ;;  %v6038_v33 = vmax.f32 %v5982_v52, 0.0 }
 0x79b   : > { %v5985_v32 = vadd.f32 %v12950_v45, %v5835_v38  ;;  %v6039_v44 = vmax.f32 %v5983_v12, 0.0 }
 0x79c   : > { %v6040_v51 = vmax.f32 %v5984_v19, 0.0 }
 0x79d   : > { %v6041_v15 = vmax.f32 %v5985_v32, 0.0 }
 0x79e   : > { %v13039_v16 = vpack.c.bf16 %v6040_v51, %v6038_v33 }
 0x79f   : > { %v6077_v20 = vpack.c.bf16 %v6041_v15, %v6039_v44  ;;  %v5839_v14 = vpop.f32.mrb[72].mxu1 }
 0x7a0   : > { %v5986_v30 = vadd.f32 %v12947_v61, %v5839_v14  ;;  %v5841_v23 = vpop.f32.mrb[73].mxu1 }
 0x7a1   : > { %6105 = vst.msk [vmem:[#allocation3 + $0x98] sm:$0xff] %vm3849_vm1, %v6077_v20  ;;  %v5987_v47 = vadd.f32 %v12950_v45, %v5841_v23  ;;  %v5843_v4 = vpop.f32.mrb[74].mxu1 }
 0x7a2   : > { %v5988_v10 = vadd.f32 %v12947_v61, %v5843_v4  ;;  %v5845_v42 = vpop.f32.mrb[75].mxu1  ;;  %v6042_v17 = vmax.f32 %v5986_v30, 0.0 }
 0x7a3   : > { %v5989_v31 = vadd.f32 %v12950_v45, %v5845_v42  ;;  %v6043_v50 = vmax.f32 %v5987_v47, 0.0 }
 0x7a4   : > { %v6044_v48 = vmax.f32 %v5988_v10, 0.0 }
 0x7a5   : > { %v6045_v46 = vmax.f32 %v5989_v31, 0.0 }
 0x7a6   : > { %v13046_v26 = vpack.c.bf16 %v6044_v48, %v6042_v17 }
 0x7a7   : > { %v6079_v62 = vpack.c.bf16 %v6045_v46, %v6043_v50  ;;  %v5849_v5 = vpop.f32.mrb[76].mxu1 }
 0x7a8   : > { %v5990_v49 = vadd.f32 %v12947_v61, %v5849_v5  ;;  %v5851_v54 = vpop.f32.mrb[77].mxu1  ;;  %v10727_v5 = vld [vmem:[%s13733_s5 + $0x1c0] ss:$8 sps:$4 sm:$0xff]  }
 0x7a9   : > { %6107 = vst.msk [vmem:[#allocation3 + $0xa8] sm:$0xff] %vm3849_vm1, %v6079_v62  ;;  %v5991_v35 = vadd.f32 %v12950_v45, %v5851_v54  ;;  %v5853_v0 = vpop.f32.mrb[78].mxu1  ;;  %v10733_v54 = vld [vmem:[%s13733_s5 + $0x1e0] ss:$8 sps:$4 sm:$0xff]  }
 0x7aa   : > { %v5992_v55 = vadd.f32 %v12947_v61, %v5853_v0  ;;  %v5855_v34 = vpop.f32.mrb[79].mxu1  ;;  %v6046_v39 = vmax.f32 %v5990_v49, 0.0  ;;  %v10735_v49 = vld [vmem:[%s13733_s5 + $0x1e4] ss:$8 sps:$4 sm:$0xff]  }
 0x7ab   : > { %v5993_v18 = vadd.f32 %v12950_v45, %v5855_v34  ;;  %v6047_v27 = vmax.f32 %v5991_v35, 0.0  ;;  %v10738_v35 = vld [vmem:[%s13733_s5 + $0x1f4] ss:$8 sps:$4 sm:$0xff]   ;;  %v13102_v0 = vld [vmem:[#allocation3 + $0x8] sm:$0xff] }
 0x7ac   : > { %v6048_v43 = vmax.f32 %v5992_v55, 0.0  ;;  %v10736_v55 = vld [vmem:[%s13733_s5 + $0x1f0] ss:$8 sps:$4 sm:$0xff]   ;;  %v10741_v34 = vld [vmem:[%s13733_s5 + $0x204] ss:$8 sps:$4 sm:$0xff]  }
 0x7ad   : > { %v6049_v40 = vmax.f32 %v5993_v18, 0.0  ;;  %v10739_v18 = vld [vmem:[%s13733_s5 + $0x200] ss:$8 sps:$4 sm:$0xff]  }
 0x7ae   : > { %v13053_v41 = vpack.c.bf16 %v6048_v43, %v6046_v39  ;;  %v10744_v39 = vld [vmem:[%s13733_s5 + $0x214] ss:$8 sps:$4 sm:$0xff]  }
 0x7af   : > { %v6081_v7 = vpack.c.bf16 %v6049_v40, %v6047_v27  ;;  %v5859_v21 = vpop.f32.mrb[80].mxu1  ;;  %v6117_v43 = vld [vmem:[#allocation3 + $0x18] sm:$0xff]  ;;  %v10747_v40 = vld [vmem:[%s13733_s5 + $0x224] ss:$8 sps:$4 sm:$0xff]  }
 0x7b0   : > { %v5994_v24 = vadd.f32 %v12947_v61, %v5859_v21  ;;  %v5861_v29 = vpop.f32.mrb[81].mxu1  ;;  %v13056_v13 = vld [vmem:[#allocation3 + $0xa8] sm:$0xff]  ;;  %v10742_v27 = vld [vmem:[%s13733_s5 + $0x210] ss:$8 sps:$4 sm:$0xff]   ;;  %v10750_v21 = vld [vmem:[%s13733_s5 + $0x234] ss:$8 sps:$4 sm:$0xff]  }
 0x7b1   : > { %6109 = vst.msk [vmem:[#allocation3 + $0xb8] sm:$0xff] %vm3849_vm1, %v6081_v7  ;;  %v5995_v57 = vadd.f32 %v12950_v45, %v5861_v29  ;;  %v5863_v52 = vpop.f32.mrb[82].mxu1  ;;  %9171 = vmatprep.mubr.msk.bf16.mxu1 %vm3849_vm1, %v13056_v13  ;;  %v10745_v7 = vld [vmem:[%s13733_s5 + $0x220] ss:$8 sps:$4 sm:$0xff]   ;;  %v10748_v29 = vld [vmem:[%s13733_s5 + $0x230] ss:$8 sps:$4 sm:$0xff]  }
 0x7b2   : > { %v5996_v28 = vadd.f32 %v12947_v61, %v5863_v52  ;;  %v5865_v12 = vpop.f32.mrb[83].mxu1  ;;  %6450 = vmatmul.mubr.bf16.gmra.mrb[112].mxu1 %v13046_v26  ;;  %v6050_v19 = vmax.f32 %v5994_v24, 0.0  ;;  %v13133_v24 = vld [vmem:[#allocation3 + $0x48] sm:$0xff] }
 0x7b3   : > { %v5997_v53 = vadd.f32 %v12950_v45, %v5865_v12  ;;  %v6051_v32 = vmax.f32 %v5995_v57, 0.0  ;;  %v10753_v57 = vld [vmem:[%s13733_s5 + $0x244] ss:$8 sps:$4 sm:$0xff]   ;;  %v10751_v52 = vld [vmem:[%s13733_s5 + $0x240] ss:$8 sps:$4 sm:$0xff]   ;;  %v13150_v12 = vld [vmem:[#allocation3 + $0x58] sm:$0xff] }
 0x7b4   : > { %v6052_v38 = vmax.f32 %v5996_v28, 0.0  ;;  %v10756_v28 = vld [vmem:[%s13733_s5 + $0x254] ss:$8 sps:$4 sm:$0xff]  }
 0x7b5   : > { %v6053_v33 = vmax.f32 %v5997_v53, 0.0  ;;  %v10754_v53 = vld [vmem:[%s13733_s5 + $0x250] ss:$8 sps:$4 sm:$0xff]  }
 0x7b6   : > { %v13065_v51 = vpack.c.bf16 %v6052_v38, %v6050_v19  ;;  %v10759_v19 = vld [vmem:[%s13733_s5 + $0x264] ss:$8 sps:$4 sm:$0xff]   ;;  %v10757_v38 = vld [vmem:[%s13733_s5 + $0x260] ss:$8 sps:$4 sm:$0xff]  }
 0x7b7   : > { %v6083_v44 = vpack.c.bf16 %v6053_v33, %v6051_v32  ;;  %v5869_v15 = vpop.f32.mrb[84].mxu1  ;;  %v10762_v32 = vld [vmem:[%s13733_s5 + $0x274] ss:$8 sps:$4 sm:$0xff]   ;;  %v13167_v33 = vld [vmem:[#allocation3 + $0x88] sm:$0xff] }
 0x7b8   : > { %v5998_v20 = vadd.f32 %v12947_v61, %v5869_v15  ;;  %v5871_v14 = vpop.f32.mrb[85].mxu1  ;;  %v13068_v30 = vld [vmem:[#allocation3 + $0xb8] sm:$0xff]  ;;  %v10765_v15 = vld [vmem:[%s13733_s5 + $0x284] ss:$8 sps:$4 sm:$0xff]  }
 0x7b9   : > { %6111 = vst.msk [vmem:[#allocation3 + $0xc8] sm:$0xff] %vm3849_vm1, %v6083_v44  ;;  %v5999_v23 = vadd.f32 %v12950_v45, %v5871_v14  ;;  %v5873_v47 = vpop.f32.mrb[86].mxu1  ;;  %9172 = vmatprep.mubr.msk.bf16.mxu1 %vm3849_vm1, %v13068_v30  ;;  %v10760_v44 = vld [vmem:[%s13733_s5 + $0x270] ss:$8 sps:$4 sm:$0xff]   ;;  %v10768_v14 = vld [vmem:[%s13733_s5 + $0x294] ss:$8 sps:$4 sm:$0xff]  }
 0x7ba   : > { %v6000_v4 = vadd.f32 %v12947_v61, %v5873_v47  ;;  %v5875_v10 = vpop.f32.mrb[87].mxu1  ;;  %6460 = vmatmul.mubr.bf16.gmra.mrb[116].mxu1 %v13053_v41  ;;  %v6054_v31 = vmax.f32 %v5998_v20, 0.0  ;;  %v10732_v61 = vld [vmem:[%s13733_s5 + $0x1d4] ss:$8 sps:$4 sm:$0xff]   ;;  %v10763_v20 = vld [vmem:[%s13733_s5 + $0x280] ss:$8 sps:$4 sm:$0xff]  }
 0x7bb   : > { %v6001_v42 = vadd.f32 %v12950_v45, %v5875_v10  ;;  %6660 = vmatprep.mubr.bf16.mxu1 %v11008_v2  ;;  %v6055_v48 = vmax.f32 %v5999_v23, 0.0  ;;  %v10730_v45 = vld [vmem:[%s13733_s5 + $0x1d0] ss:$8 sps:$4 sm:$0xff]   ;;  %v10769_v10 = vld [vmem:[%s13733_s5 + $0x2a0] ss:$8 sps:$4 sm:$0xff]  }
 0x7bc   : > { %v6056_v17 = vmax.f32 %v6000_v4, 0.0  ;;  %v13184_v23 = vld [vmem:[#allocation3 + $0x98] sm:$0xff]  ;;  %v10771_v4 = vld [vmem:[%s13733_s5 + $0x2a4] ss:$8 sps:$4 sm:$0xff]  }
 0x7bd   : > { %v6057_v50 = vmax.f32 %v6001_v42, 0.0  ;;  %v10766_v47 = vld [vmem:[%s13733_s5 + $0x290] ss:$8 sps:$4 sm:$0xff]   ;;  %v10774_v42 = vld [vmem:[%s13733_s5 + $0x2b4] ss:$8 sps:$4 sm:$0xff]  }
 0x7be   : > { %v13078_v46 = vpack.c.bf16 %v6056_v17, %v6054_v31  ;;  %v10772_v31 = vld [vmem:[%s13733_s5 + $0x2b0] ss:$8 sps:$4 sm:$0xff]   ;;  %v10777_v17 = vld [vmem:[%s13733_s5 + $0x2c4] ss:$8 sps:$4 sm:$0xff]  }
 0x7bf   : > { %v6085_v62 = vpack.c.bf16 %v6057_v50, %v6055_v48  ;;  %v10775_v48 = vld [vmem:[%s13733_s5 + $0x2c0] ss:$8 sps:$4 sm:$0xff]   ;;  %v10778_v50 = vld [vmem:[%s13733_s5 + $0x2d0] ss:$8 sps:$4 sm:$0xff]  }
 0x7c1   : > { %6113 = vst.msk [vmem:[#allocation3 + $0xd8] sm:$0xff] %vm3849_vm1, %v6085_v62  ;;  %v10783_v62 = vld [vmem:[%s13733_s5 + $0x2e4] ss:$8 sps:$4 sm:$0xff]  }
 0x7c2   : > { %6661 = vmatmul.mubr.bf16.vlgmr.msra.gmra.mrb[88].mxu1 %v11008_v2 }
 0x7c3   : > { %6921 = vmatpush1.bf16.msra.mxu1 %v10727_v5  ;;  %6670 = vmatprep.mubr.bf16.mxu1 %v11008_v2  ;;  %v10781_v5 = vld [vmem:[%s13733_s5 + $0x2e0] ss:$8 sps:$4 sm:$0xff]  }
 0x7c4   : > { %6922 = vmatprep.subr.bf16.mxu1 %v10732_v61  ;;  %v10784_v61 = vld [vmem:[%s13733_s5 + $0x2f0] ss:$8 sps:$4 sm:$0xff]  }
 0x7c7   : > { %6923 = vmatpush1.bf16.msra.mxu1 %v10730_v45  ;;  %v10789_v45 = vld [vmem:[%s13733_s5 + $0x304] ss:$8 sps:$4 sm:$0xff]  }
 0x7c8   : > { %6924 = vmatprep.subr.bf16.mxu1 %v10735_v49  ;;  %v10787_v49 = vld [vmem:[%s13733_s5 + $0x300] ss:$8 sps:$4 sm:$0xff]  }
 0x7ca   : > { %6671 = vmatmul.mubr.bf16.gmra.mrb[92].mxu1 %v11008_v2 }
 0x7cb   : > { %9201 = vmatprep.mubr.msk.bf16.mxu1 %vm3849_vm1, %v13102_v0  ;;  %6925 = vmatpush1.bf16.msra.mxu1 %v10733_v54  ;;  %v10792_v54 = vld [vmem:[%s13733_s5 + $0x314] ss:$8 sps:$4 sm:$0xff]  }
 0x7cc   : > { %6926 = vmatprep.subr.bf16.mxu1 %v10738_v35  ;;  %v10790_v35 = vld [vmem:[%s13733_s5 + $0x310] ss:$8 sps:$4 sm:$0xff]  }
 0x7cf   : > { %6927 = vmatpush1.bf16.msra.mxu1 %v10736_v55  ;;  %v10793_v55 = vld [vmem:[%s13733_s5 + $0x320] ss:$8 sps:$4 sm:$0xff]  }
 0x7d0   : > { %6928 = vmatprep.subr.bf16.mxu1 %v10741_v34  ;;  %v10798_v34 = vld [vmem:[%s13733_s5 + $0x334] ss:$8 sps:$4 sm:$0xff]  }
 0x7d2   : > { %6681 = vmatmul.mubr.bf16.gmra.mrb[96].mxu1 %v12956_v56 }
 0x7d3   : > { %9202 = vmatprep.mubr.msk.bf16.mxu1 %vm3849_vm1, %v6117_v43  ;;  %6929 = vmatpush1.bf16.msra.mxu1 %v10739_v18  ;;  %v10796_v18 = vld [vmem:[%s13733_s5 + $0x330] ss:$8 sps:$4 sm:$0xff]  }
 0x7d4   : > { %6930 = vmatprep.subr.bf16.mxu1 %v10744_v39  ;;  %v10801_v39 = vld [vmem:[%s13733_s5 + $0x344] ss:$8 sps:$4 sm:$0xff]  }
 0x7d7   : > { %6931 = vmatpush1.bf16.msra.mxu1 %v10742_v27  ;;  %v10804_v27 = vld [vmem:[%s13733_s5 + $0x354] ss:$8 sps:$4 sm:$0xff]  }
 0x7d8   : > { %6932 = vmatprep.subr.bf16.mxu1 %v10747_v40  ;;  %v13278_v40 = vld [vmem:[#allocation3 + $0xc8] sm:$0xff] }
 0x7da   : > { %6691 = vmatmul.mubr.bf16.gmra.mrb[100].mxu1 %v12963_v1 }
 0x7db   : > { %9203 = vmatprep.mubr.msk.bf16.mxu1 %vm3849_vm1, %v13133_v24  ;;  %6933 = vmatpush1.bf16.msra.mxu1 %v10745_v7  ;;  %v10802_v7 = vld [vmem:[%s13733_s5 + $0x350] ss:$8 sps:$4 sm:$0xff]  }
 0x7dc   : > { %6934 = vmatprep.subr.bf16.mxu1 %v10750_v21  ;;  %v10807_v21 = vld [vmem:[%s13733_s5 + $0x364] ss:$8 sps:$4 sm:$0xff]  }
 0x7df   : > { %6935 = vmatpush1.bf16.msra.mxu1 %v10748_v29  ;;  %v10805_v29 = vld [vmem:[%s13733_s5 + $0x360] ss:$8 sps:$4 sm:$0xff]  }
 0x7e0   : > { %6936 = vmatprep.subr.bf16.mxu1 %v10753_v57  ;;  %v10810_v57 = vld [vmem:[%s13733_s5 + $0x374] ss:$8 sps:$4 sm:$0xff]  }
 0x7e2   : > { %6701 = vmatmul.mubr.bf16.gmra.mrb[104].mxu1 %v12989_v36 }
 0x7e3   : > { %9204 = vmatprep.mubr.msk.bf16.mxu1 %vm3849_vm1, %v13150_v12  ;;  %6937 = vmatpush1.bf16.msra.mxu1 %v10751_v52  ;;  %v13295_v52 = vld [vmem:[#allocation3 + $0xd8] sm:$0xff] }
 0x7e4   : > { %6938 = vmatprep.subr.bf16.mxu1 %v10756_v28  ;;  %v10808_v28 = vld [vmem:[%s13733_s5 + $0x370] ss:$8 sps:$4 sm:$0xff]  }
 0x7e7   : > { %6939 = vmatpush1.bf16.msra.mxu1 %v10754_v53  ;;  %v10813_v53 = vld [vmem:[%s13733_s5 + $0x384] ss:$8 sps:$4 sm:$0xff]  }
 0x7e8   : > { %6940 = vmatprep.subr.bf16.mxu1 %v10759_v19  ;;  %v10811_v19 = vld [vmem:[%s13733_s5 + $0x380] ss:$8 sps:$4 sm:$0xff]  }
 0x7ea   : > { %6711 = vmatmul.mubr.bf16.gmra.mrb[108].mxu1 %v13001_v3 }
 0x7eb   : > { %9205 = vmatprep.mubr.msk.bf16.mxu1 %vm3849_vm1, %v13167_v33  ;;  %6941 = vmatpush1.bf16.msra.mxu1 %v10757_v38  ;;  %v10816_v38 = vld [vmem:[%s13733_s5 + $0x394] ss:$8 sps:$4 sm:$0xff]  }
 0x7ec   : > { %6942 = vmatprep.subr.bf16.mxu1 %v10762_v32  ;;  %v10814_v32 = vld [vmem:[%s13733_s5 + $0x390] ss:$8 sps:$4 sm:$0xff]  }
 0x7ef   : > { %6943 = vmatpush1.bf16.msra.mxu1 %v10760_v44  ;;  %v10817_v44 = vld [vmem:[%s13733_s5 + $0x3a0] ss:$8 sps:$4 sm:$0xff]  }
 0x7f0   : > { %6944 = vmatprep.subr.bf16.mxu1 %v10765_v15  ;;  %v10825_v15 = vld [vmem:[%s13733_s5 + $0x3c4] ss:$8 sps:$4 sm:$0xff]  }
 0x7f2   : > { %6721 = vmatmul.mubr.bf16.gmra.mrb[112].mxu1 %v13027_v37 }
 0x7f3   : > { %9206 = vmatprep.mubr.msk.bf16.mxu1 %vm3849_vm1, %v13184_v23  ;;  %6945 = vmatpush1.bf16.msra.mxu1 %v10763_v20  ;;  %v10823_v20 = vld [vmem:[%s13733_s5 + $0x3c0] ss:$8 sps:$4 sm:$0xff]  }
 0x7f4   : > { %6946 = vmatprep.subr.bf16.mxu1 %v10768_v14  ;;  %v10831_v14 = vld [vmem:[%s13733_s5 + $0x3e4] ss:$8 sps:$4 sm:$0xff]  }
 0x7f7   : > { %6947 = vmatpush1.bf16.msra.mxu1 %v10766_v47  ;;  %v10829_v47 = vld [vmem:[%s13733_s5 + $0x3e0] ss:$8 sps:$4 sm:$0xff]  }
 0x7f8   : > { %7233 = vmatprep.subr.bf16.mxu1 %v10771_v4  ;;  %v10837_v4 = vld [vmem:[%s13733_s5 + $0x404] ss:$8 sps:$4 sm:$0xff]  }
 0x7fa   : > { %6731 = vmatmul.mubr.bf16.gmra.mrb[116].mxu1 %v13039_v16 }
 0x7fb   : > { %9235 = vmatprep.mubr.msk.bf16.mxu1 %vm3849_vm1, %v13102_v0  ;;  %v10795_v0 = vld [vmem:[%s13733_s5 + $0x324] ss:$8 sps:$4 sm:$0xff]  }
 0x802   : > { %6953 = vmatmul.mubr.bf16.vlgmr.msra.gmra.mrb[88].mxu1 %v12956_v56  ;;  %v10780_v56 = vld [vmem:[%s13733_s5 + $0x2d4] ss:$8 sps:$4 sm:$0xff]  }
 0x803   : > { %9236 = vmatprep.mubr.msk.bf16.mxu1 %vm3849_vm1, %v6117_v43  ;;  %7234 = vmatpush1.bf16.msra.mxu1 %v10769_v10  ;;  %v10799_v43 = vld [vmem:[%s13733_s5 + $0x340] ss:$8 sps:$4 sm:$0xff]  }
 0x804   : > { %7235 = vmatprep.subr.bf16.mxu1 %v10774_v42  ;;  %v10835_v10 = vld [vmem:[%s13733_s5 + $0x400] ss:$8 sps:$4 sm:$0xff]   ;;  %v10843_v42 = vld [vmem:[%s13733_s5 + $0x424] ss:$8 sps:$4 sm:$0xff]  }
 0x807   : > { %7236 = vmatpush1.bf16.msra.mxu1 %v10772_v31  ;;  %v10841_v31 = vld [vmem:[%s13733_s5 + $0x420] ss:$8 sps:$4 sm:$0xff]  }
 0x808   : > { %7237 = vmatprep.subr.bf16.mxu1 %v10777_v17  ;;  %v10849_v17 = vld [vmem:[%s13733_s5 + $0x444] ss:$8 sps:$4 sm:$0xff]  }
 0x80a   : > { %6963 = vmatmul.mubr.bf16.gmra.mrb[92].mxu1 %v12963_v1  ;;  %v10786_v1 = vld [vmem:[%s13733_s5 + $0x2f4] ss:$8 sps:$4 sm:$0xff]  }
 0x80b   : > { %9237 = vmatprep.mubr.msk.bf16.mxu1 %vm3849_vm1, %v13133_v24  ;;  %7238 = vmatpush1.bf16.msra.mxu1 %v10775_v48  ;;  %v10847_v48 = vld [vmem:[%s13733_s5 + $0x440] ss:$8 sps:$4 sm:$0xff]  }
 0x80c   : > { %7239 = vmatprep.subr.bf16.mxu1 %v10780_v56  ;;  %v10850_v56 = vld [vmem:[%s13733_s5 + $0x450] ss:$8 sps:$4 sm:$0xff]  }
 0x80f   : > { %7240 = vmatpush1.bf16.msra.mxu1 %v10778_v50  ;;  %v10853_v50 = vld [vmem:[%s13735_s7 + $0x40] sm:$0xff]  }
 0x810   : > { %7241 = vmatprep.subr.bf16.mxu1 %v10783_v62  ;;  %v10854_v62 = vld [vmem:[%s13735_s7] sm:$0xff]  }
 0x812   : > { %6973 = vmatmul.mubr.bf16.gmra.mrb[96].mxu1 %v12989_v36 }
 0x813   : > { %9238 = vmatprep.mubr.msk.bf16.mxu1 %vm3849_vm1, %v13150_v12  ;;  %7242 = vmatpush1.bf16.msra.mxu1 %v10781_v5  ;;  %v10855_v5 = vld [vmem:[%s13735_s7 + $0x48] sm:$0xff]  }
 0x814   : > { %7243 = vmatprep.subr.bf16.mxu1 %v10786_v1  ;;  %v10856_v1 = vld [vmem:[%s13735_s7 + $0x8] sm:$0xff]  }
 0x817   : > { %7244 = vmatpush1.bf16.msra.mxu1 %v10784_v61  ;;  %v10858_v61 = vld [vmem:[%s13735_s7 + $0x10] sm:$0xff]  }
 0x818   : > { %7245 = vmatprep.subr.bf16.mxu1 %v10789_v45  ;;  %v10861_v45 = vld [vmem:[%s13735_s7 + $0x60] sm:$0xff]  }
 0x81a   : > { %6983 = vmatmul.mubr.bf16.gmra.mrb[100].mxu1 %v13001_v3 }
 0x81b   : > { %9239 = vmatprep.mubr.msk.bf16.mxu1 %vm3849_vm1, %v13167_v33  ;;  %7246 = vmatpush1.bf16.msra.mxu1 %v10787_v49  ;;  %v10862_v49 = vld [vmem:[%s13735_s7 + $0x20] sm:$0xff]  }
 0x81c   : > { %7247 = vmatprep.subr.bf16.mxu1 %v10792_v54  ;;  %v10865_v54 = vld [vmem:[%s13735_s7 + $0x70] sm:$0xff]  }
 0x81f   : > { %7248 = vmatpush1.bf16.msra.mxu1 %v10790_v35  ;;  %v10866_v35 = vld [vmem:[%s13735_s7 + $0x30] sm:$0xff]  }
 0x820   : > { %7249 = vmatprep.subr.bf16.mxu1 %v10795_v0 }
 0x822   : > { %6993 = vmatmul.mubr.bf16.gmra.mrb[104].mxu1 %v13027_v37 }
 0x823   : > { %9240 = vmatprep.mubr.msk.bf16.mxu1 %vm3849_vm1, %v13184_v23  ;;  %7250 = vmatpush1.bf16.msra.mxu1 %v10793_v55 }
 0x824   : > { %7251 = vmatprep.subr.bf16.mxu1 %v10798_v34 }
 0x827   : > { %7252 = vmatpush1.bf16.msra.mxu1 %v10796_v18 }
 0x828   : > { %7253 = vmatprep.subr.bf16.mxu1 %v10801_v39 }
 0x82a   : > { %7003 = vmatmul.mubr.bf16.gmra.mrb[108].mxu1 %v13039_v16 }
 0x82b   : > { %9241 = vmatprep.mubr.msk.bf16.mxu1 %vm3849_vm1, %v13278_v40  ;;  %7254 = vmatpush1.bf16.msra.mxu1 %v10799_v43 }
 0x82c   : > { %7255 = vmatprep.subr.bf16.mxu1 %v10804_v27 }
 0x82f   : > { %7256 = vmatpush1.bf16.msra.mxu1 %v10802_v7 }
 0x830   : > { %7257 = vmatprep.subr.bf16.mxu1 %v10807_v21 }
 0x832   : > { %7013 = vmatmul.mubr.bf16.gmra.mrb[112].mxu1 %v13065_v51 }
 0x833   : > { %9242 = vmatprep.mubr.msk.bf16.mxu1 %vm3849_vm1, %v13295_v52  ;;  %7258 = vmatpush1.bf16.msra.mxu1 %v10805_v29 }
 0x834   : > { %7259 = vmatprep.subr.bf16.mxu1 %v10810_v57 }
 0x837   : > { %7260 = vmatpush1.bf16.msra.mxu1 %v10808_v28  ;;  %v10870_v28 = vld [vmem:[%s13735_s7 + $0x80] sm:$0xff]  }
 0x838   : > { %7546 = vmatprep.subr.bf16.mxu1 %v10813_v53 }
 0x83a   : > { %7023 = vmatmul.mubr.bf16.gmra.mrb[116].mxu1 %v13078_v46 }
 0x83b   : > { %9271 = vmatprep.mubr.msk.bf16.mxu1 %vm3849_vm1, %v12980_v8  ;;  %v10819_v8 = vld [vmem:[%s13733_s5 + $0x3a4] ss:$8 sps:$4 sm:$0xff]  }
 0x842   : > { %7266 = vmatmul.mubr.bf16.vlgmr.msra.gmra.mrb[88].mxu1 %v12970_v22  ;;  %v10822_v22 = vld [vmem:[%s13733_s5 + $0x3b4] ss:$8 sps:$4 sm:$0xff]  }
 0x843   : > { %9272 = vmatprep.mubr.msk.bf16.mxu1 %vm3849_vm1, %v12992_v9  ;;  %7547 = vmatpush1.bf16.msra.mxu1 %v10811_v19  ;;  %v10820_v9 = vld [vmem:[%s13733_s5 + $0x3b0] ss:$8 sps:$4 sm:$0xff]  }
 0x844   : > { %7548 = vmatprep.subr.bf16.mxu1 %v10816_v38  ;;  %v10871_v38 = vld [vmem:[%s13735_s7 + $0xc8] sm:$0xff]  }
 0x847   : > { %7549 = vmatpush1.bf16.msra.mxu1 %v10814_v32 }
 0x848   : > { %7550 = vmatprep.subr.bf16.mxu1 %v10819_v8 }
 0x84a   : > { %7276 = vmatmul.mubr.bf16.gmra.mrb[92].mxu1 %v12977_v11  ;;  %v10828_v11 = vld [vmem:[%s13733_s5 + $0x3d4] ss:$8 sps:$4 sm:$0xff]  }
 0x84b   : > { %9273 = vmatprep.mubr.msk.bf16.mxu1 %vm3849_vm1, %v13018_v6  ;;  %7551 = vmatpush1.bf16.msra.mxu1 %v10817_v44  ;;  %v10826_v6 = vld [vmem:[%s13733_s5 + $0x3d0] ss:$8 sps:$4 sm:$0xff]  }
 0x84c   : > { %7552 = vmatprep.subr.bf16.mxu1 %v10822_v22 }
 0x84f   : > { %7553 = vmatpush1.bf16.msra.mxu1 %v10820_v9 }
 0x850   : > { %7554 = vmatprep.subr.bf16.mxu1 %v10825_v15  ;;  %v10872_v15 = vld [vmem:[%s13735_s7 + $0x88] sm:$0xff]  }
 0x852   : > { %7286 = vmatmul.mubr.bf16.gmra.mrb[96].mxu1 %v13008_v25  ;;  %v10834_v25 = vld [vmem:[%s13733_s5 + $0x3f4] ss:$8 sps:$4 sm:$0xff]  }
 0x853   : > { %9274 = vmatprep.mubr.msk.bf16.mxu1 %vm3849_vm1, %v13030_v63  ;;  %7555 = vmatpush1.bf16.msra.mxu1 %v10823_v20  ;;  %v10832_v63 = vld [vmem:[%s13733_s5 + $0x3f0] ss:$8 sps:$4 sm:$0xff]  }
 0x854   : > { %7556 = vmatprep.subr.bf16.mxu1 %v10828_v11 }
 0x857   : > { %7557 = vmatpush1.bf16.msra.mxu1 %v10826_v6  ;;  %v10873_v6 = vld [vmem:[%s13735_s7 + $0xd0] sm:$0xff]  }
 0x858   : > { %7558 = vmatprep.subr.bf16.mxu1 %v10831_v14 }
 0x85a   : > { %7296 = vmatmul.mubr.bf16.gmra.mrb[100].mxu1 %v13015_v60  ;;  %v10840_v60 = vld [vmem:[%s13733_s5 + $0x414] ss:$8 sps:$4 sm:$0xff]  }
 0x85b   : > { %9275 = vmatprep.mubr.msk.bf16.mxu1 %vm3849_vm1, %v13056_v13  ;;  %7559 = vmatpush1.bf16.msra.mxu1 %v10829_v47  ;;  %v10838_v13 = vld [vmem:[%s13733_s5 + $0x410] ss:$8 sps:$4 sm:$0xff]  }
 0x85c   : > { %7560 = vmatprep.subr.bf16.mxu1 %v10834_v25 }
 0x85f   : > { %7561 = vmatpush1.bf16.msra.mxu1 %v10832_v63 }
 0x860   : > { %7562 = vmatprep.subr.bf16.mxu1 %v10837_v4 }
 0x862   : > { %7306 = vmatmul.mubr.bf16.gmra.mrb[104].mxu1 %v13046_v26  ;;  %v10846_v26 = vld [vmem:[%s13733_s5 + $0x434] ss:$8 sps:$4 sm:$0xff]  }
 0x863   : > { %9276 = vmatprep.mubr.msk.bf16.mxu1 %vm3849_vm1, %v13068_v30  ;;  %7563 = vmatpush1.bf16.msra.mxu1 %v10835_v10  ;;  %v10844_v30 = vld [vmem:[%s13733_s5 + $0x430] ss:$8 sps:$4 sm:$0xff]  }
 0x864   : > { %7564 = vmatprep.subr.bf16.mxu1 %v10840_v60  ;;  %v10874_v10 = vld [vmem:[%s13735_s7 + $0x90] sm:$0xff]  }
 0x867   : > { %7565 = vmatpush1.bf16.msra.mxu1 %v10838_v13 }
 0x868   : > { %7566 = vmatprep.subr.bf16.mxu1 %v10843_v42  ;;  %v10875_v42 = vld [vmem:[%s13735_s7 + $0xd8] sm:$0xff]  }
 0x86a   : > { %7316 = vmatmul.mubr.bf16.gmra.mrb[108].mxu1 %v13053_v41  ;;  %v10852_v41 = vld [vmem:[%s13733_s5 + $0x454] ss:$8 sps:$4 sm:$0xff]  }
 0x86b   : > { %7325 = vmatprep.mubr.bf16.mxu1 %v11008_v2  ;;  %7567 = vmatpush1.bf16.msra.mxu1 %v10841_v31 }
 0x86c   : > { %7568 = vmatprep.subr.bf16.mxu1 %v10846_v26 }
 0x86f   : > { %7569 = vmatpush1.bf16.msra.mxu1 %v10844_v30 }
 0x870   : > { %7570 = vmatprep.subr.bf16.mxu1 %v10849_v17 }
 0x872   : > { %7326 = vmatmul.mubr.bf16.gmra.mrb[112].mxu1 %v11008_v2 }
 0x873   : > { %7335 = vmatprep.mubr.bf16.mxu1 %v11008_v2  ;;  %7571 = vmatpush1.bf16.msra.mxu1 %v10847_v48 }
 0x874   : > { %7572 = vmatprep.subr.bf16.mxu1 %v10852_v41  ;;  %v10876_v41 = vld [vmem:[%s13735_s7 + $0x98] sm:$0xff]  }
 0x877   : > { %7573 = vmatpush1.bf16.msra.mxu1 %v10850_v56 }
 0x878   : > { %9383 = vmatprep.subr.bf16.mxu1 %v10853_v50 }
 0x87a   : > { %7336 = vmatmul.mubr.bf16.gmra.mrb[116].mxu1 %v11008_v2 }
 0x87b   : > { %9305 = vmatprep.mubr.msk.bf16.mxu1 %vm3849_vm1, %v13133_v24  ;;  %v10857_v24 = vld [vmem:[%s13735_s7 + $0x50] sm:$0xff]  }
 0x882   : > { %7579 = vmatmul.mubr.bf16.vlgmr.msra.gmra.mrb[88].mxu1 %v12989_v36  ;;  %v10859_v36 = vld [vmem:[%s13735_s7 + $0x58] sm:$0xff]  }
 0x883   : > { %9306 = vmatprep.mubr.msk.bf16.mxu1 %vm3849_vm1, %v13150_v12  ;;  %9384 = vmatpush3.bf16.msra.mxu1 %v10854_v62  ;;  %v10860_v12 = vld [vmem:[%s13735_s7 + $0x18] sm:$0xff]   ;;  %v10877_v62 = vld [vmem:[%s13735_s7 + $0xe0] sm:$0xff]  }
 0x884   : > { %9385 = vmatprep.subr.bf16.mxu1 %v10855_v5 }
 0x887   : > { %9386 = vmatpush3.bf16.msra.mxu1 %v10856_v1 }
 0x888   : > { %9387 = vmatprep.subr.bf16.mxu1 %v10857_v24 }
 0x88a   : > { %7589 = vmatmul.mubr.bf16.gmra.mrb[92].mxu1 %v13001_v3  ;;  %v10863_v3 = vld [vmem:[%s13735_s7 + $0x68] sm:$0xff]  }
 0x88b   : > { %9307 = vmatprep.mubr.msk.bf16.mxu1 %vm3849_vm1, %v13167_v33  ;;  %9388 = vmatpush3.bf16.msra.mxu1 %v10858_v61  ;;  %v10864_v33 = vld [vmem:[%s13735_s7 + $0x28] sm:$0xff]  }
 0x88c   : > { %9389 = vmatprep.subr.bf16.mxu1 %v10859_v36 }
 0x88f   : > { %9390 = vmatpush3.bf16.msra.mxu1 %v10860_v12  ;;  %v10878_v12 = vld [vmem:[%s13735_s7 + $0xa0] sm:$0xff]  }
 0x890   : > { %9391 = vmatprep.subr.bf16.mxu1 %v10861_v45 }
 0x892   : > { %7599 = vmatmul.mubr.bf16.gmra.mrb[96].mxu1 %v13027_v37  ;;  %v10867_v37 = vld [vmem:[%s13735_s7 + $0x78] sm:$0xff]  }
 0x893   : > { %9308 = vmatprep.mubr.msk.bf16.mxu1 %vm3849_vm1, %v13184_v23  ;;  %9392 = vmatpush3.bf16.msra.mxu1 %v10862_v49 }
 0x894   : > { %9393 = vmatprep.subr.bf16.mxu1 %v10863_v3  ;;  %v10879_v3 = vld [vmem:[%s13735_s7 + $0xe8] sm:$0xff]  }
 0x897   : > { %9394 = vmatpush3.bf16.msra.mxu1 %v10864_v33 }
 0x898   : > { %9395 = vmatprep.subr.bf16.mxu1 %v10865_v54 }
 0x89a   : > { %7609 = vmatmul.mubr.bf16.gmra.mrb[100].mxu1 %v13039_v16  ;;  %v10868_v16 = vld [vmem:[%s13735_s7 + $0x38] sm:$0xff]  }
 0x89b   : > { %9309 = vmatprep.mubr.msk.bf16.mxu1 %vm3849_vm1, %v13278_v40  ;;  %9396 = vmatpush3.bf16.msra.mxu1 %v10866_v35 }
 0x89c   : > { %9397 = vmatprep.subr.bf16.mxu1 %v10867_v37 }
 0x89f   : > { %9398 = vmatpush3.bf16.msra.mxu1 %v10868_v16 }
 0x8a2   : > { %7619 = vmatmul.mubr.bf16.gmra.mrb[104].mxu1 %v13065_v51  ;;  %v10869_v51 = vld [vmem:[%s13735_s7 + $0xc0] sm:$0xff]  }
 0x8a3   : > { %9310 = vmatprep.mubr.msk.bf16.mxu1 %vm3849_vm1, %v13295_v52  ;;  %9411 = vmatprep.subr.bf16.mxu1 %v10869_v51  ;;  %v10880_v51 = vld [vmem:[%s13735_s7 + $0xa8] sm:$0xff]  }
 0x8aa   : > { %7629 = vmatmul.mubr.bf16.gmra.mrb[108].mxu1 %v13078_v46  ;;  %v7691_v46 = vld [vmem:[%s13734_s6] sm:$0x3] }
 0x8ab   : > { %7638 = vmatprep.mubr.bf16.mxu1 %v11008_v2  ;;  %v13489_v23 = vrot.slane %v7691_v46, %v11938_v59 }
 0x8b2   : > { %7639 = vmatmul.mubr.bf16.gmra.mrb[112].mxu1 %v11008_v2 }
 0x8b3   : > { %7648 = vmatprep.mubr.bf16.mxu1 %v11008_v2 }
 0x8ba   : > { %7649 = vmatmul.mubr.bf16.gmra.mrb[116].mxu1 %v11008_v2  ;;  %v13486_v2 = vrot.slane %v7691_v46, %v11936_v58 }
 0x955   : > { %v7580_v0 = vpop.f32.mrb[88].mxu1 }
 0x956   : > { %v7703_v55 = vadd.f32 %v13486_v2, %v7580_v0  ;;  %v7582_v34 = vpop.f32.mrb[89].mxu1 }
 0x957   : > { %v7704_v18 = vadd.f32 %v13489_v23, %v7582_v34  ;;  %v7584_v39 = vpop.f32.mrb[90].mxu1 }
 0x958   : > { %v7705_v43 = vadd.f32 %v13486_v2, %v7584_v39  ;;  %v7586_v27 = vpop.f32.mrb[91].mxu1  ;;  %v7735_v7 = vmax.f32 %v7703_v55, 0.0  ;;  %v10881_v55 = vld [vmem:[%s13735_s7 + $0xf0] sm:$0xff]  }
 0x959   : > { %v7706_v40 = vadd.f32 %v13489_v23, %v7586_v27  ;;  %v7736_v29 = vmax.f32 %v7704_v18, 0.0 }
 0x95a   : > { %v7737_v21 = vmax.f32 %v7705_v43, 0.0 }
 0x95b   : > { %v7738_v58 = vmax.f32 %v7706_v40, 0.0  ;;  %v10882_v40 = vld [vmem:[%s13735_s7 + $0xb0] sm:$0xff]  }
 0x95c   : > { %v7767_v57 = vpack.c.bf16 %v7737_v21, %v7735_v7 }
 0x95d   : > { %v7768_v52 = vpack.c.bf16 %v7738_v58, %v7736_v29  ;;  %v7590_v59 = vpop.f32.mrb[92].mxu1  ;;  %v10883_v29 = vld [vmem:[%s13735_s7 + $0xf8] sm:$0xff]  }
 0x95e   : > { %v7707_v53 = vadd.f32 %v13486_v2, %v7590_v59  ;;  %v7592_v19 = vpop.f32.mrb[93].mxu1 }
 0x95f   : > { %v7708_v32 = vadd.f32 %v13489_v23, %v7592_v19  ;;  %v7594_v8 = vpop.f32.mrb[94].mxu1  ;;  %8334 = vmatprep.mubr.bf16.mxu1 %v7768_v52 }
 0x960   : > { %v7709_v44 = vadd.f32 %v13486_v2, %v7594_v8  ;;  %v7596_v22 = vpop.f32.mrb[95].mxu1  ;;  %8335 = vmatmul.mubr.bf16.vlgmr.msra.gmra.mrb[120].mxu1 %v7767_v57  ;;  %v7739_v20 = vmax.f32 %v7707_v53, 0.0  ;;  %v10884_v53 = vld [vmem:[%s13735_s7 + $0xb8] sm:$0xff]  }
 0x961   : > { %v7710_v9 = vadd.f32 %v13489_v23, %v7596_v22  ;;  %9412 = vmatpush3.bf16.msra.mxu1 %v10870_v28  ;;  %v7740_v14 = vmax.f32 %v7708_v32, 0.0  ;;  %v10885_v32 = vld [vmem:[%s13735_s7 + $0x140] sm:$0xff]  }
 0x962   : > { %v7741_v11 = vmax.f32 %v7709_v44, 0.0  ;;  %9413 = vmatprep.subr.bf16.mxu1 %v10871_v38 }
 0x963   : > { %v7742_v47 = vmax.f32 %v7710_v9, 0.0 }
 0x964   : > { %v7769_v25 = vpack.c.bf16 %v7741_v11, %v7739_v20  ;;  %v10886_v20 = vld [vmem:[%s13735_s7 + $0x100] sm:$0xff]  }
 0x965   : > { %v7770_v63 = vpack.c.bf16 %v7742_v47, %v7740_v14  ;;  %9414 = vmatpush3.bf16.msra.mxu1 %v10872_v15  ;;  %v7600_v4 = vpop.f32.mrb[96].mxu1  ;;  %v10887_v14 = vld [vmem:[%s13735_s7 + $0x148] sm:$0xff]  }
 0x966   : > { %v7711_v60 = vadd.f32 %v13486_v2, %v7600_v4  ;;  %v7602_v13 = vpop.f32.mrb[97].mxu1  ;;  %9415 = vmatprep.subr.bf16.mxu1 %v10873_v6 }
 0x967   : > { %v7712_v31 = vadd.f32 %v13489_v23, %v7602_v13  ;;  %v7604_v26 = vpop.f32.mrb[98].mxu1  ;;  %8342 = vmatprep.mubr.bf16.mxu1 %v7770_v63 }
 0x968   : > { %v7713_v30 = vadd.f32 %v13486_v2, %v7604_v26  ;;  %v7606_v17 = vpop.f32.mrb[99].mxu1  ;;  %8343 = vmatmul.mubr.bf16.gmra.mrb[124].mxu1 %v7769_v25  ;;  %v7743_v56 = vmax.f32 %v7711_v60, 0.0  ;;  %v10888_v60 = vld [vmem:[%s13735_s7 + $0x108] sm:$0xff]  }
 0x969   : > { %v7714_v48 = vadd.f32 %v13489_v23, %v7606_v17  ;;  %9416 = vmatpush3.bf16.msra.mxu1 %v10874_v10  ;;  %v7744_v5 = vmax.f32 %v7712_v31, 0.0  ;;  %v10889_v31 = vld [vmem:[%s13735_s7 + $0x150] sm:$0xff]  }
 0x96a   : > { %v7745_v50 = vmax.f32 %v7713_v30, 0.0  ;;  %9417 = vmatprep.subr.bf16.mxu1 %v10875_v42 }
 0x96b   : > { %v7746_v1 = vmax.f32 %v7714_v48, 0.0 }
 0x96c   : > { %v7771_v24 = vpack.c.bf16 %v7745_v50, %v7743_v56  ;;  %v10890_v56 = vld [vmem:[%s13735_s7 + $0x110] sm:$0xff]  }
 0x96d   : > { %v7772_v61 = vpack.c.bf16 %v7746_v1, %v7744_v5  ;;  %9418 = vmatpush3.bf16.msra.mxu1 %v10876_v41  ;;  %v7610_v36 = vpop.f32.mrb[100].mxu1  ;;  %v10891_v5 = vld [vmem:[%s13735_s7 + $0x158] sm:$0xff]  }
 0x96e   : > { %v7715_v45 = vadd.f32 %v13486_v2, %v7610_v36  ;;  %v7612_v49 = vpop.f32.mrb[101].mxu1  ;;  %9419 = vmatprep.subr.bf16.mxu1 %v10877_v62 }
 0x96f   : > { %v7716_v33 = vadd.f32 %v13489_v23, %v7612_v49  ;;  %v7614_v54 = vpop.f32.mrb[102].mxu1  ;;  %8383 = vmatprep.mubr.bf16.mxu1 %v7772_v61 }
 0x970   : > { %v7717_v35 = vadd.f32 %v13486_v2, %v7614_v54  ;;  %v7616_v37 = vpop.f32.mrb[103].mxu1  ;;  %v7747_v46 = vmax.f32 %v7715_v45, 0.0  ;;  %v10892_v45 = vld [vmem:[%s13735_s7 + $0x118] sm:$0xff]  }
 0x971   : > { %v7718_v16 = vadd.f32 %v13489_v23, %v7616_v37  ;;  %9420 = vmatpush3.bf16.msra.mxu1 %v10878_v12  ;;  %v7748_v34 = vmax.f32 %v7716_v33, 0.0  ;;  %v10893_v33 = vld [vmem:[%s13735_s7 + $0x160] sm:$0xff]  }
 0x972   : > { %v7749_v0 = vmax.f32 %v7717_v35, 0.0  ;;  %9421 = vmatprep.subr.bf16.mxu1 %v10879_v3 }
 0x973   : > { %v7750_v18 = vmax.f32 %v7718_v16, 0.0 }
 0x974   : > { %v7773_v39 = vpack.c.bf16 %v7749_v0, %v7747_v46  ;;  %v10894_v46 = vld [vmem:[%s13735_s7 + $0x120] sm:$0xff]  }
 0x975   : > { %v7774_v43 = vpack.c.bf16 %v7750_v18, %v7748_v34  ;;  %9422 = vmatpush3.bf16.msra.mxu1 %v10880_v51  ;;  %v7620_v27 = vpop.f32.mrb[104].mxu1  ;;  %v10895_v34 = vld [vmem:[%s13735_s7 + $0x168] sm:$0xff]  }
 0x976   : > { %v7719_v7 = vadd.f32 %v13486_v2, %v7620_v27  ;;  %v7622_v21 = vpop.f32.mrb[105].mxu1  ;;  %9423 = vmatprep.subr.bf16.mxu1 %v10881_v55 }
 0x977   : > { %v7720_v58 = vadd.f32 %v13489_v23, %v7622_v21  ;;  %v7624_v57 = vpop.f32.mrb[106].mxu1 }
 0x978   : > { %v7721_v52 = vadd.f32 %v13486_v2, %v7624_v57  ;;  %v7626_v59 = vpop.f32.mrb[107].mxu1  ;;  %v7751_v19 = vmax.f32 %v7719_v7, 0.0  ;;  %v10896_v7 = vld [vmem:[%s13735_s7 + $0x128] sm:$0xff]  }
 0x979   : > { %v7722_v28 = vadd.f32 %v13489_v23, %v7626_v59  ;;  %9424 = vmatpush3.bf16.msra.mxu1 %v10882_v40  ;;  %v7752_v8 = vmax.f32 %v7720_v58, 0.0  ;;  %v10897_v58 = vld [vmem:[%s13735_s7 + $0x170] sm:$0xff]  }
 0x97a   : > { %v7753_v38 = vmax.f32 %v7721_v52, 0.0  ;;  %9425 = vmatprep.subr.bf16.mxu1 %v10883_v29 }
 0x97b   : > { %v7754_v44 = vmax.f32 %v7722_v28, 0.0 }
 0x97c   : > { %v13559_v22 = vpack.c.bf16 %v7753_v38, %v7751_v19  ;;  %v10901_v19 = vld [vmem:[%s13735_s7 + $0x1c0] sm:$0xff]  }
 0x97d   : > { %v7776_v9 = vpack.c.bf16 %v7754_v44, %v7752_v8  ;;  %9426 = vmatpush3.bf16.msra.mxu1 %v10884_v53  ;;  %v7630_v15 = vpop.f32.mrb[108].mxu1  ;;  %v10900_v53 = vld [vmem:[%s13735_s7 + $0x138] sm:$0xff]   ;;  %v10902_v38 = vld [vmem:[%s13735_s7 + $0x180] sm:$0xff]   ;;  %v10904_v8 = vld [vmem:[%s13735_s7 + $0x188] sm:$0xff]  }
 0x97e   : > { %v7723_v11 = vadd.f32 %v13486_v2, %v7630_v15  ;;  %v7632_v6 = vpop.f32.mrb[109].mxu1  ;;  %9439 = vmatprep.subr.bf16.mxu1 %v10885_v32  ;;  %v10903_v32 = vld [vmem:[%s13735_s7 + $0x1c8] sm:$0xff]   ;;  %v10905_v44 = vld [vmem:[%s13735_s7 + $0x1d0] sm:$0xff]   ;;  %v10908_v15 = vld [vmem:[%s13735_s7 + $0x198] sm:$0xff]  }
 0x97f   : > { %v7724_v47 = vadd.f32 %v13489_v23, %v7632_v6  ;;  %v7634_v25 = vpop.f32.mrb[110].mxu1  ;;  %v10911_v6 = vld [vmem:[%s13735_s7 + $0x1e8] sm:$0xff]  }
 0x980   : > { %v7725_v63 = vadd.f32 %v13486_v2, %v7634_v25  ;;  %8384 = vmatmul.mubr.bf16.vlgmr.msra.gmra.mrb[128].mxu1 %v7771_v24  ;;  %v7636_v4 = vpop.f32.mrb[111].mxu1  ;;  %v7755_v13 = vmax.f32 %v7723_v11, 0.0  ;;  %v10910_v11 = vld [vmem:[%s13735_s7 + $0x1a0] sm:$0xff]   ;;  %v10914_v25 = vld [vmem:[%s13735_s7 + $0x1b0] sm:$0xff]  }
 0x981   : > { %v7726_v10 = vadd.f32 %v13489_v23, %v7636_v4  ;;  %8391 = vmatprep.mubr.bf16.mxu1 %v7774_v43  ;;  %9440 = vmatpush3.bf16.msra.mxu1 %v10886_v20  ;;  %v7756_v26 = vmax.f32 %v7724_v47, 0.0  ;;  %v10909_v20 = vld [vmem:[%s13735_s7 + $0x1e0] sm:$0xff]   ;;  %v10913_v47 = vld [vmem:[%s13735_s7 + $0x1f0] sm:$0xff]   ;;  %v10916_v4 = vld [vmem:[%s13735_s7 + $0x1b8] sm:$0xff]  }
 0x982   : > { %v7757_v42 = vmax.f32 %v7725_v63, 0.0  ;;  %9441 = vmatprep.subr.bf16.mxu1 %v10887_v14  ;;  %v10912_v14 = vld [vmem:[%s13735_s7 + $0x1a8] sm:$0xff]   ;;  %v10915_v63 = vld [vmem:[%s13735_s7 + $0x1f8] sm:$0xff]  }
 0x983   : > { %v7758_v30 = vmax.f32 %v7726_v10, 0.0 }
 0x984   : > { %v13577_v17 = vpack.c.bf16 %v7757_v42, %v7755_v13 }
 0x985   : > { %v7778_v48 = vpack.c.bf16 %v7758_v30, %v7756_v26  ;;  %9442 = vmatpush3.bf16.msra.mxu1 %v10888_v60  ;;  %v7640_v41 = vpop.f32.mrb[112].mxu1 }
 0x986   : > { %v7727_v50 = vadd.f32 %v13486_v2, %v7640_v41  ;;  %v7642_v62 = vpop.f32.mrb[113].mxu1  ;;  %9443 = vmatprep.subr.bf16.mxu1 %v10889_v31 }
 0x987   : > { %v7728_v1 = vadd.f32 %v13489_v23, %v7642_v62  ;;  %v7644_v24 = vpop.f32.mrb[114].mxu1  ;;  %v9311_v62 = vld [vmem:[%s13736_s8] ss:$0 sm:$0xff] }
 0x988   : > { %v7729_v61 = vadd.f32 %v13486_v2, %v7644_v24  ;;  %8392 = vmatmul.mubr.bf16.gmra.mrb[132].mxu1 %v7773_v39  ;;  %v7646_v36 = vpop.f32.mrb[115].mxu1  ;;  %v7759_v49 = vmax.f32 %v7727_v50, 0.0 }
 0x989   : > { %v7730_v12 = vadd.f32 %v13489_v23, %v7646_v36  ;;  %9444 = vmatpush3.bf16.msra.mxu1 %v10890_v56  ;;  %8432 = vmatprep.mubr.bf16.mxu1 %v7776_v9  ;;  %v7760_v54 = vmax.f32 %v7728_v1, 0.0  ;;  %v10906_v9 = vld [vmem:[%s13735_s7 + $0x190] sm:$0xff]  }
 0x98a   : > { %v7761_v3 = vmax.f32 %v7729_v61, 0.0  ;;  %9445 = vmatprep.subr.bf16.mxu1 %v10891_v5 }
 0x98b   : > { %v7762_v35 = vmax.f32 %v7730_v12, 0.0 }
 0x98c   : > { %v13595_v37 = vpack.c.bf16 %v7761_v3, %v7759_v49 }
 0x98d   : > { %v7780_v16 = vpack.c.bf16 %v7762_v35, %v7760_v54  ;;  %9446 = vmatpush3.bf16.msra.mxu1 %v10892_v45  ;;  %v7650_v51 = vpop.f32.mrb[116].mxu1 }
 0x98e   : > { %v7731_v0 = vadd.f32 %v13486_v2, %v7650_v51  ;;  %v7652_v55 = vpop.f32.mrb[117].mxu1  ;;  %9447 = vmatprep.subr.bf16.mxu1 %v10893_v33 }
 0x98f   : > { %v7732_v18 = vadd.f32 %v13489_v23, %v7652_v55  ;;  %v7654_v39 = vpop.f32.mrb[118].mxu1 }
 0x990   : > { %v7733_v43 = vadd.f32 %v13486_v2, %v7654_v39  ;;  %v7656_v27 = vpop.f32.mrb[119].mxu1  ;;  %v7763_v21 = vmax.f32 %v7731_v0, 0.0  ;;  %v10898_v2 = vld [vmem:[%s13735_s7 + $0x130] sm:$0xff]  }
 0x991   : > { %v7734_v40 = vadd.f32 %v13489_v23, %v7656_v27  ;;  %9448 = vmatpush3.bf16.msra.mxu1 %v10894_v46  ;;  %v7764_v57 = vmax.f32 %v7732_v18, 0.0  ;;  %v10899_v23 = vld [vmem:[%s13735_s7 + $0x178] sm:$0xff]  }
 0x992   : > { %v7765_v29 = vmax.f32 %v7733_v43, 0.0  ;;  %9449 = vmatprep.subr.bf16.mxu1 %v10895_v34 }
 0x993   : > { %v7766_v52 = vmax.f32 %v7734_v40, 0.0 }
 0x994   : > { %v7781_v59 = vpack.c.bf16 %v7765_v29, %v7763_v21 }
 0x995   : > { %v7782_v28 = vpack.c.bf16 %v7766_v52, %v7764_v57  ;;  %9450 = vmatpush3.bf16.msra.mxu1 %v10896_v7 }
 0x996   : > { %9451 = vmatprep.subr.bf16.mxu1 %v10897_v58 }
 0x999   : > { %9452 = vmatpush3.bf16.msra.mxu1 %v10898_v2 }
 0x99a   : > { %9453 = vmatprep.subr.bf16.mxu1 %v10899_v23 }
 0x99d   : > { %9454 = vmatpush3.bf16.msra.mxu1 %v10900_v53 }
 0x99e   : > { %9467 = vmatprep.subr.bf16.mxu1 %v10901_v19 }
 0x9a0   : > { %8433 = vmatmul.mubr.bf16.vlgmr.msra.gmra.mrb[136].mxu1 %v13559_v22  ;;  %v10907_v22 = vld [vmem:[%s13735_s7 + $0x1d8] sm:$0xff]  }
 0x9a1   : > { %8440 = vmatprep.mubr.bf16.mxu1 %v7778_v48  ;;  %9468 = vmatpush3.bf16.msra.mxu1 %v10902_v38 }
 0x9a2   : > { %9469 = vmatprep.subr.bf16.mxu1 %v10903_v32 }
 0x9a5   : > { %9470 = vmatpush3.bf16.msra.mxu1 %v10904_v8 }
 0x9a6   : > { %9471 = vmatprep.subr.bf16.mxu1 %v10905_v44 }
 0x9a8   : > { %8441 = vmatmul.mubr.bf16.gmra.mrb[140].mxu1 %v13577_v17 }
 0x9a9   : > { %9472 = vmatpush3.bf16.msra.mxu1 %v10906_v9  ;;  %8481 = vmatprep.mubr.bf16.mxu1 %v7780_v16 }
 0x9aa   : > { %9473 = vmatprep.subr.bf16.mxu1 %v10907_v22 }
 0x9ad   : > { %9474 = vmatpush3.bf16.msra.mxu1 %v10908_v15 }
 0x9ae   : > { %9475 = vmatprep.subr.bf16.mxu1 %v10909_v20 }
 0x9b1   : > { %9476 = vmatpush3.bf16.msra.mxu1 %v10910_v11 }
 0x9b2   : > { %9477 = vmatprep.subr.bf16.mxu1 %v10911_v6 }
 0x9b5   : > { %9478 = vmatpush3.bf16.msra.mxu1 %v10912_v14 }
 0x9b6   : > { %9479 = vmatprep.subr.bf16.mxu1 %v10913_v47 }
 0x9b9   : > { %9480 = vmatpush3.bf16.msra.mxu1 %v10914_v25 }
 0x9ba   : > { %9481 = vmatprep.subr.bf16.mxu1 %v10915_v63 }
 0x9bd   : > { %9482 = vmatpush3.bf16.msra.mxu1 %v10916_v4 }
 0x9c0   : > { %8482 = vmatmul.mubr.bf16.vlgmr.msra.gmra.mrb[144].mxu1 %v13595_v37 }
 0x9c1   : > { %8489 = vmatprep.mubr.bf16.mxu1 %v7782_v28 }
 0x9c8   : > { %8490 = vmatmul.mubr.bf16.gmra.mrb[148].mxu1 %v7781_v59 }
 0xa33   : > { %v9399_v10 = vpop.f32.mrb[120].mxu1 }
 0xa34   : > { %v9400_v60 = vpop.f32.mrb[121].mxu1 }
 0xa35   : > { %v9401_v13 = vadd.f32 %v9400_v60, %v9399_v10  ;;  %v9402_v42 = vpop.f32.mrb[122].mxu1 }
 0xa36   : > { %v9403_v31 = vpop.f32.mrb[123].mxu1 }
 0xa37   : > { %v9404_v26 = vadd.f32 %v9403_v31, %v9402_v42  ;;  %v8337_v24 = vadd.f32 %v9401_v13, %v9311_v62 }
 0xa39   : > { %v8340_v45 = vadd.f32 %v9404_v26, %v9311_v62 }
 0xa3b   : > { %v9405_v30 = vpop.f32.mrb[124].mxu1 }
 0xa3c   : > { %v9406_v17 = vpop.f32.mrb[125].mxu1 }
 0xa3d   : > { %v9407_v48 = vadd.f32 %v9406_v17, %v9405_v30  ;;  %v9408_v41 = vpop.f32.mrb[126].mxu1 }
 0xa3e   : > { %v9409_v56 = vpop.f32.mrb[127].mxu1 }
 0xa3f   : > { %v9410_v50 = vadd.f32 %v9409_v56, %v9408_v41  ;;  %v8345_v37 = vadd.f32 %v9407_v48, %v9311_v62 }
 0xa41   : > { %v8348_v0 = vadd.f32 %v9410_v50, %v9311_v62 }
 0xa53   : > { %v9427_v5 = vpop.f32.mrb[128].mxu1 }
 0xa54   : > { %v9428_v1 = vpop.f32.mrb[129].mxu1 }
 0xa55   : > { %v9429_v61 = vadd.f32 %v9428_v1, %v9427_v5  ;;  %v9430_v36 = vpop.f32.mrb[130].mxu1 }
 0xa56   : > { %v9431_v12 = vpop.f32.mrb[131].mxu1 }
 0xa57   : > { %v8386_v49 = vadd.f32 %v9429_v61, %v8337_v24  ;;  %v9432_v3 = vadd.f32 %v9431_v12, %v9430_v36 }
 0xa59   : > { %v8389_v33 = vadd.f32 %v9432_v3, %v8340_v45 }
 0xa5b   : > { %v9433_v54 = vpop.f32.mrb[132].mxu1 }
 0xa5c   : > { %v9434_v35 = vpop.f32.mrb[133].mxu1 }
 0xa5d   : > { %v9435_v16 = vadd.f32 %v9434_v35, %v9433_v54  ;;  %v9436_v51 = vpop.f32.mrb[134].mxu1 }
 0xa5e   : > { %v9437_v46 = vpop.f32.mrb[135].mxu1 }
 0xa5f   : > { %v8394_v55 = vadd.f32 %v9435_v16, %v8345_v37  ;;  %v9438_v34 = vadd.f32 %v9437_v46, %v9436_v51 }
 0xa61   : > { %v8397_v18 = vadd.f32 %v9438_v34, %v8348_v0 }
 0xa73   : > { %v9455_v39 = vpop.f32.mrb[136].mxu1 }
 0xa74   : > { %v9456_v43 = vpop.f32.mrb[137].mxu1 }
 0xa75   : > { %v9457_v27 = vadd.f32 %v9456_v43, %v9455_v39  ;;  %v9458_v40 = vpop.f32.mrb[138].mxu1 }
 0xa76   : > { %v9459_v7 = vpop.f32.mrb[139].mxu1 }
 0xa77   : > { %v8435_v21 = vadd.f32 %v9457_v27, %v8386_v49  ;;  %v9460_v29 = vadd.f32 %v9459_v7, %v9458_v40 }
 0xa79   : > { %v8438_v58 = vadd.f32 %v9460_v29, %v8389_v33 }
 0xa7b   : > { %v9461_v57 = vpop.f32.mrb[140].mxu1 }
 0xa7c   : > { %v9462_v52 = vpop.f32.mrb[141].mxu1 }
 0xa7d   : > { %v9463_v59 = vadd.f32 %v9462_v52, %v9461_v57  ;;  %v9464_v28 = vpop.f32.mrb[142].mxu1 }
 0xa7e   : > { %v9465_v2 = vpop.f32.mrb[143].mxu1 }
 0xa7f   : > { %v8443_v23 = vadd.f32 %v9463_v59, %v8394_v55  ;;  %v9466_v53 = vadd.f32 %v9465_v2, %v9464_v28 }
 0xa81   : > { %v8446_v19 = vadd.f32 %v9466_v53, %v8397_v18 }
 0xa93   : > { %v9483_v38 = vpop.f32.mrb[144].mxu1 }
 0xa94   : > { %v9484_v32 = vpop.f32.mrb[145].mxu1 }
 0xa95   : > { %v9485_v8 = vadd.f32 %v9484_v32, %v9483_v38  ;;  %v9486_v44 = vpop.f32.mrb[146].mxu1 }
 0xa96   : > { %v9487_v9 = vpop.f32.mrb[147].mxu1 }
 0xa97   : > { %v8484_v22 = vadd.f32 %v9485_v8, %v8435_v21  ;;  %v9488_v15 = vadd.f32 %v9487_v9, %v9486_v44 }
 0xa99   : > { %8498 = vst [vmem:[%s880_s29] sm:$0xff] %v8484_v22  ;;  %v8487_v20 = vadd.f32 %v9488_v15, %v8438_v58 }
 0xa9b   : > { %8499 = vst [vmem:[%s880_s29 + $0x8] sm:$0xff] %v8487_v20  ;;  %v9489_v11 = vpop.f32.mrb[148].mxu1 }
 0xa9c   : > { %v9490_v6 = vpop.f32.mrb[149].mxu1 }
 0xa9d   : > { %v9491_v14 = vadd.f32 %v9490_v6, %v9489_v11  ;;  %v9492_v47 = vpop.f32.mrb[150].mxu1 }
 0xa9e   : > { %v9493_v25 = vpop.f32.mrb[151].mxu1 }
 0xa9f   : > { %v8492_v63 = vadd.f32 %v9491_v14, %v8443_v23  ;;  %v9494_v4 = vadd.f32 %v9493_v25, %v9492_v47 }
 0xaa1   : > { %8500 = vst [vmem:[%s880_s29 + $0x10] sm:$0xff] %v8492_v63  ;;  %v8495_v10 = vadd.f32 %v9494_v4, %v8446_v19 }
 0xaa3   : > { %8501 = vst [vmem:[%s880_s29 + $0x18] sm:$0xff] %v8495_v10 }
 0xaa4   : > { %10957 = shalt.err (!%p10954_p5)
}
 0xaa5   : > { %s10958_s28 = scalar_lea.hbm %s13684_s22, 512  ;;  %s10962_s21 = scalar_lea.hbm %s13737_s9, 1024 }
 0xaa6   : > { %p10959_p7 = scmp.ne.s32.totalorder %s13684_s22, %s10958_s28  ;;  %p10963_p12 = scmp.lt.u32.totalorder %s13684_s22, %s13737_s9 }
 0xaa7   : > { %p10964_p13 = scmp.lt.u32.totalorder %s10962_s21, %s10958_s28  ;;  %p10966_p1 = scmp.lt.u32.totalorder %s10958_s28, %s13684_s22 }
 0xaa8   : > { %p10960_p10 = pnand %p10959_p7, %p11100_p6 }
 0xaa9   : > { %p10965_p0 = por %p10964_p13, %p10963_p12 }
 0xaaa   : > { %p10961_p11 = pneg %p10960_p10 }
 0xaab   : > { %p10967_p2 = por %p10966_p1, %p10965_p0 }
 0xaad   : > { %p10968_p3 = pnand %p10967_p2, %p10961_p11 }
 0xaaf   : > { %10971 = shalt.err (!%p10968_p3)
}
 0xab0   : > { %s11010_s24 = smov 128   ;;  %s11011_s25 = smov 8  }
 0xab1   : > { %10299 = dma.vmem_to_hbm [thread:$0]  (%p11100_p6), %s13679_s16, 512, %s13684_s22, %s8503_s23, %s11010_s24, %s11010_s24, %s11011_s25  }
 0xab2 PF: > { %s8531_s27 = sand.u32 1, %s10994_s30   ;;  %p10302_p4 = pnand %p8586_p9, %p11104_p8 }
 0xab3   : > { %s8532_s28 = scalar_lea.sflag [#allocation6], %s8531_s27 }
 0xab4   : > { %10989 = dma.done.wait (!%p10302_p4), %s8532_s28, 512  }
 0xab5   : > { %10991 = vsyncadd (!%p10302_p4), %s8532_s28, 4294966784  ;;  %p19_p5 = scmp.ge.s32.totalorder %s11085_s15, 4   ;;  %s13740_s30 = smov %s10998_s10 }
 0xab6   : > { %s13741_s10 = smov %s11002_s11  ;;  %s13742_s11 = smov %s11098_s18 }
 0xab7   : > { %s13743_s12 = smov %s11085_s15  ;;  %21 = sbr.rel (!%p19_p5) target bundleno = 3 (0x3), region = 186 }
 0xabe   :  { %8537 = vsyncpa [#allocation6], 1 }
 0xabf   :  { %8539 = vsyncpa [#allocation6 + $0x1], 1 }

</bundles_post_ra>
